<compile_context>
chip_gen: v6e
topology: v6e:2x2x1
jax: 0.10.0
libtpu: 0.0.40
codegen_flags: <defaults>
</compile_context>

<pallas_src>
import functools
import math

import jax
import jax.numpy as jnp
from jax.experimental import pallas as pl
from jax.experimental.pallas import tpu as pltpu


def _largest_divisor(n, cap):
    for d in range(min(n, cap), 0, -1):
        if n % d == 0:
            return d
    return 1


# ---------------------------------------------------------------------------
# Kernel A: fused pixel-encoder conv stack.
#
# The stride-2 3x3 conv is rewritten as a 2x2 stride-1 conv on the
# space-to-depth image (done once in the wrapper).  Every activation lives in
# a VMEM slab of shape (positions, channels) with position = row*pitch + col
# (constant pitch = W//2); each conv tap is a contiguous 2-D slice of that
# slab @ a (K, OC) bf16 weight, accumulated in f32.  Out-of-image "garbage"
# positions stay finite and are never read by valid outputs; the FC weight has
# zero rows there.
# ---------------------------------------------------------------------------
def _encoder_conv_kernel(*refs, num_layers, pitch, layer_dims, num_filters,
                         batch_block, chunk_rows):
    n_in = 1 + 2 * num_layers
    obs_ref = refs[0]
    w_refs = [refs[1 + 2 * i] for i in range(num_layers)]
    b_refs = [refs[2 + 2 * i] for i in range(num_layers)]
    out_ref = refs[n_in]
    scratch = list(refs[n_in + 1:])            # num_layers - 1 bf16 slabs

    # TODO(synk): for very large batch_block * num_layers the static unroll below
    # gets big; a lax.fori_loop over `b` would cap trace size if needed.
    for b in range(batch_block):               # images in this grid block
        for l in range(num_layers):
            oh, ow = layer_dims[l]
            n_pos = (oh - 1) * pitch + ow
            ksz = 2 if l == 0 else 3            # layer 0 = s2d'd 3x3/stride-2
            w_ref, bias_ref = w_refs[l], b_refs[l]
            src = obs_ref if l == 0 else scratch[l - 1]
            dst = out_ref if l == num_layers - 1 else scratch[l]
            # Row-chunked so the f32 accumulator stays in vregs across the tap
            # accumulation (no per-tap VMEM spill round trip).
            for r0 in range(0, n_pos, chunk_rows):
                rows = min(chunk_rows, n_pos - r0)
                acc = jnp.zeros((rows, num_filters), jnp.float32) + bias_ref[...]
                t = 0
                for kh in range(ksz):
                    for kw in range(ksz):
                        off = kh * pitch + kw + r0
                        xs = src[b, off:off + rows, :]        # bf16 MXU operand
                        acc = acc + jnp.dot(xs, w_ref[t],
                                            preferred_element_type=jnp.float32)
                        t += 1
                act = jnp.maximum(acc, 0.0)                   # ReLU in f32
                dst[b, r0:r0 + rows, :] = act.astype(jnp.bfloat16)


def encoder_convs(obs_s2d, conv_ws, conv_bs, layer_dims, pitch, num_filters,
                  batch_block, chunk_rows=256):
    B, S0, K1 = obs_s2d.shape
    L = len(conv_ws)
    ohL, owL = layer_dims[-1]
    n_out = (ohL - 1) * pitch + owL

    in_specs = [pl.BlockSpec((batch_block, S0, K1), lambda i: (i, 0, 0))]
    args = [obs_s2d]
    for w, bia in zip(conv_ws, conv_bs):
        in_specs.append(pl.BlockSpec(w.shape, lambda i: (0, 0, 0)))
        in_specs.append(pl.BlockSpec(bia.shape, lambda i: (0, 0)))
        args.extend([w, bia])

    scratch = []
    for l in range(L - 1):
        oh, ow = layer_dims[l]
        scratch.append(pltpu.VMEM((batch_block, (oh - 1) * pitch + ow,
                                   num_filters), jnp.bfloat16))

    flops = 0
    for l in range(L):
        oh, ow = layer_dims[l]
        n_pos = (oh - 1) * pitch + ow
        ksz = 2 if l == 0 else 3
        kdim = K1 if l == 0 else num_filters
        flops += 2 * (ksz * ksz) * n_pos * kdim * num_filters
    flops *= B
    bytes_accessed = (2 * (obs_s2d.size + B * n_out * num_filters)   # bf16 act
                      + sum(2 * int(w.size) + 4 * int(b.size)
                            for w, b in zip(conv_ws, conv_bs)))

    kernel = functools.partial(_encoder_conv_kernel, num_layers=L, pitch=pitch,
                               layer_dims=layer_dims, num_filters=num_filters,
                               batch_block=batch_block, chunk_rows=chunk_rows)
    return pl.pallas_call(
        kernel,
        out_shape=jax.ShapeDtypeStruct((B, n_out, num_filters), jnp.bfloat16),
        grid=(B // batch_block,),
        in_specs=in_specs,
        out_specs=pl.BlockSpec((batch_block, n_out, num_filters),
                               lambda i: (i, 0, 0)),
        scratch_shapes=scratch,
        compiler_params=pltpu.CompilerParams(
            dimension_semantics=("parallel",),
            vmem_limit_bytes=32 * 1024 * 1024),
        cost_estimate=pl.CostEstimate(flops=int(flops), transcendentals=0,
                                      bytes_accessed=int(bytes_accessed)),
    )(*args)


# ---------------------------------------------------------------------------
# Kernel B: fused tail = encoder FC + LayerNorm + trunk MLP + actor head.
# bf16 MXU operands / f32 accumulation; elementwise in f32.
# ---------------------------------------------------------------------------
def _tail_kernel(x_ref, noise_ref, fcw_ref, fcb_ref, lng_ref, lnb_ref,
                 t1w_ref, t1b_ref, t2w_ref, t2b_ref, t3w_ref, t3b_ref,
                 mu_out, pi_out, logpi_out, logstd_out,
                 *, eps, log_std_min, log_std_max, action_dim):
    # encoder fc + LayerNorm (output_logits=True -> no tanh at encoder output)
    h = jnp.dot(x_ref[...], fcw_ref[...],
                preferred_element_type=jnp.float32) + fcb_ref[...]
    mean = jnp.mean(h, axis=-1, keepdims=True)
    var = jnp.mean((h - mean) ** 2, axis=-1, keepdims=True)
    h = (h - mean) * jax.lax.rsqrt(var + eps) * lng_ref[...] + lnb_ref[...]

    # trunk MLP
    t = jnp.dot(h.astype(jnp.bfloat16), t1w_ref[...],
                preferred_element_type=jnp.float32) + t1b_ref[...]
    t = jnp.maximum(t, 0.0)
    t = jnp.dot(t.astype(jnp.bfloat16), t2w_ref[...],
                preferred_element_type=jnp.float32) + t2b_ref[...]
    t = jnp.maximum(t, 0.0)
    # single head matmul, then slice mu / log_std columns
    y = jnp.dot(t.astype(jnp.bfloat16), t3w_ref[...],
                preferred_element_type=jnp.float32) + t3b_ref[...]
    mu = y[:, :action_dim]
    ls = y[:, action_dim:]

    # actor head: log_std = tanh(raw) rescaled to [log_std_min, log_std_max]
    log_std = jnp.tanh(ls)
    log_std = log_std_min + 0.5 * (log_std_max - log_std_min) * (log_std + 1.0)
    std = jnp.exp(log_std)

    noise = noise_ref[...]
    pi = mu + noise * std                      # reparameterized sample

    residual = jnp.sum(-0.5 * noise * noise - log_std, axis=-1, keepdims=True)
    log_pi = residual - 0.5 * jnp.log(2.0 * jnp.pi) * action_dim

    mu_t = jnp.tanh(mu)                        # squash
    pi_t = jnp.tanh(pi)
    log_pi = log_pi - jnp.sum(
        jnp.log(jnp.maximum(1.0 - pi_t * pi_t, 0.0) + 1e-6),
        axis=-1, keepdims=True)

    mu_out[...] = mu_t
    pi_out[...] = pi_t
    logpi_out[...] = log_pi
    logstd_out[...] = log_std


def actor_tail(x_flat, noise, lp, log_std_min, log_std_max, eps=1e-5):
    B, D = x_flat.shape
    A = noise.shape[-1]
    TB = _largest_divisor(B, 64)               # v7x-safe with bf16 x / fc_w
    grid = (B // TB,)

    weights = [lp["fc_w"], lp["fc_b"], lp["ln_g"], lp["ln_b"],
               lp["t1_w"], lp["t1_b"], lp["t2_w"], lp["t2_b"],
               lp["t3_w"], lp["t3_b"]]

    in_specs = [pl.BlockSpec((TB, D), lambda i: (i, 0)),
                pl.BlockSpec((TB, A), lambda i: (i, 0))]
    for w in weights:                          # all 2-D, kept fully resident
        in_specs.append(pl.BlockSpec(w.shape, lambda i: (0, 0)))

    out_specs = (pl.BlockSpec((TB, A), lambda i: (i, 0)),
                 pl.BlockSpec((TB, A), lambda i: (i, 0)),
                 pl.BlockSpec((TB, 1), lambda i: (i, 0)),
                 pl.BlockSpec((TB, A), lambda i: (i, 0)))
    out_shape = (jax.ShapeDtypeStruct((B, A), jnp.float32),
                 jax.ShapeDtypeStruct((B, A), jnp.float32),
                 jax.ShapeDtypeStruct((B, 1), jnp.float32),
                 jax.ShapeDtypeStruct((B, A), jnp.float32))

    feat = lp["fc_w"].shape[1]
    hidden = lp["t1_w"].shape[1]
    flops = 2 * B * (D * feat + feat * hidden + hidden * hidden + hidden * 2 * A)
    transcendentals = B * (5 * A + 2)
    bytes_accessed = (2 * B * D + 4 * B * A + 4 * B * (3 * A + 1)
                      + sum(int(w.size) * w.dtype.itemsize for w in weights))

    kernel = functools.partial(_tail_kernel, eps=float(eps),
                               log_std_min=float(log_std_min),
                               log_std_max=float(log_std_max),
                               action_dim=int(A))
    return pl.pallas_call(
        kernel, out_shape=out_shape, grid=grid,
        in_specs=in_specs, out_specs=out_specs,
        compiler_params=pltpu.CompilerParams(
            dimension_semantics=("parallel",),
            vmem_limit_bytes=48 * 1024 * 1024),
        cost_estimate=pl.CostEstimate(flops=int(flops),
                                      transcendentals=int(transcendentals),
                                      bytes_accessed=int(bytes_accessed)),
    )(x_flat, noise, *weights)


# ---------------------------------------------------------------------------
# Parameter init (PyTorch layout, matching weight_init) + one-time lowering
# into the kernel layout.
# ---------------------------------------------------------------------------
def _orthogonal(key, shape, gain=1.0):
    return (gain * jax.nn.initializers.orthogonal()(key, shape)).astype(jnp.float32)


def init_actor_params(key, obs_shape, action_dim, hidden_dim, feature_dim,
                      num_layers, num_filters):
    C, H, W = obs_shape
    keys = jax.random.split(key, num_layers + 4)
    relu_gain = math.sqrt(2.0)

    params = {"convs": []}
    in_c = C
    for i in range(num_layers):
        # weight_init: zeros, orthogonal(gain=relu) on the center tap, zero bias
        w = jnp.zeros((num_filters, in_c, 3, 3), jnp.float32)
        center = _orthogonal(keys[i], (num_filters, in_c), gain=relu_gain)
        w = w.at[:, :, 1, 1].set(center)
        params["convs"].append((w, jnp.zeros((num_filters,), jnp.float32)))
        in_c = num_filters

    oh = (H - 3) // 2 + 1
    ow = (W - 3) // 2 + 1
    for _ in range(num_layers - 1):
        oh, ow = oh - 2, ow - 2
    flat = num_filters * oh * ow

    params["fc_w"] = _orthogonal(keys[num_layers], (feature_dim, flat))
    params["fc_b"] = jnp.zeros((feature_dim,), jnp.float32)
    params["ln_g"] = jnp.ones((feature_dim,), jnp.float32)
    params["ln_b"] = jnp.zeros((feature_dim,), jnp.float32)
    params["t1_w"] = _orthogonal(keys[num_layers + 1], (hidden_dim, feature_dim))
    params["t1_b"] = jnp.zeros((hidden_dim,), jnp.float32)
    params["t2_w"] = _orthogonal(keys[num_layers + 2], (hidden_dim, hidden_dim))
    params["t2_b"] = jnp.zeros((hidden_dim,), jnp.float32)
    params["t3_w"] = _orthogonal(keys[num_layers + 3], (2 * action_dim, hidden_dim))
    params["t3_b"] = jnp.zeros((2 * action_dim,), jnp.float32)
    return params


def conv_geometry(obs_shape, num_layers):
    C, H, W = obs_shape
    # TODO(synk): odd H/W would need one extra row/col of padding in the
    # space-to-depth step; DMControl obs (84x84) and the demo (16x16) are even.
    assert H % 2 == 0 and W % 2 == 0, "even spatial dims required"
    H2, W2 = H // 2, W // 2
    pitch = W2
    dims = [(H2 - 1, W2 - 1)]                  # 3x3/s2 conv output (even H/W)
    for _ in range(num_layers - 1):
        oh, ow = dims[-1]
        dims.append((oh - 2, ow - 2))          # 3x3/s1 conv outputs
    return H2, W2, pitch, dims


def lower_params(params, obs_shape, num_layers, num_filters, feature_dim,
                 action_dim):
    """One-time re-layout of the PyTorch-style weights into the kernel layout."""
    C, H, W = obs_shape
    H2, W2, pitch, dims = conv_geometry(obs_shape, num_layers)
    F = num_filters
    lp = {}

    # conv layer 1: 3x3 stride-2 -> 2x2 stride-1 taps on the s2d image.
    # The 1/255 pixel scale is folded into these weights (perf review item).
    w0, b0 = params["convs"][0]                               # (F, C, 3, 3)
    w0p = jnp.pad(w0, ((0, 0), (0, 0), (0, 1), (0, 1)))       # (F, C, 4, 4)
    w0p = w0p.reshape(F, C, 2, 2, 2, 2)                       # (o,c,dh,p,dw,q)
    w0p = w0p.transpose(2, 4, 3, 5, 1, 0)                     # (dh,dw,p,q,c,o)
    lp["conv_ws"] = [(w0p.reshape(4, 4 * C, F) * (1.0 / 255.0)
                      ).astype(jnp.bfloat16)]
    lp["conv_bs"] = [b0.reshape(1, F)]                        # f32

    # conv layers 2..L: 3x3 stride-1, taps as (9, IC, OC) bf16 matmul weights.
    for l in range(1, num_layers):
        wl, bl = params["convs"][l]                           # (F, F, 3, 3)
        lp["conv_ws"].append(
            wl.transpose(2, 3, 1, 0).reshape(9, F, F).astype(jnp.bfloat16))
        lp["conv_bs"].append(bl.reshape(1, F))

    # encoder FC: permute from torch (c,i,j) flatten order to the pitched
    # channels-last layout produced by the conv kernel; zero rows on the
    # pitch padding so garbage positions contribute exactly 0.
    ohL, owL = dims[-1]
    n_out = (ohL - 1) * pitch + owL
    wfc = params["fc_w"].reshape(feature_dim, F, ohL, owL)    # (f, c, i, j)
    wfc = wfc.transpose(2, 3, 1, 0)                           # (i, j, c, f)
    wfc = jnp.pad(wfc, ((0, 0), (0, pitch - owL), (0, 0), (0, 0)))
    lp["fc_w"] = (wfc.reshape(ohL * pitch * F, feature_dim)[:n_out * F]
                  ).astype(jnp.bfloat16)
    lp["fc_b"] = params["fc_b"].reshape(1, feature_dim)
    lp["ln_g"] = params["ln_g"].reshape(1, feature_dim)
    lp["ln_b"] = params["ln_b"].reshape(1, feature_dim)

    # trunk: pre-transposed to (K, N), bf16; biases stay f32.  Final layer kept
    # as one (hidden, 2A) matrix (single head dot, sliced in-kernel).
    lp["t1_w"] = params["t1_w"].T.astype(jnp.bfloat16)
    lp["t1_b"] = params["t1_b"].reshape(1, -1)
    lp["t2_w"] = params["t2_w"].T.astype(jnp.bfloat16)
    lp["t2_b"] = params["t2_b"].reshape(1, -1)
    lp["t3_w"] = params["t3_w"].T.astype(jnp.bfloat16)
    lp["t3_b"] = params["t3_b"].reshape(1, -1)
    return lp


def actor_forward(lowered, obs, noise, log_std_min, log_std_max, num_layers):
    """Equivalent to Actor.forward(obs, compute_pi=True, compute_log_pi=True).
    detach_encoder only affects gradients; it is a no-op for forward values."""
    B, C, H, W = obs.shape
    H2, W2, pitch, dims = conv_geometry((C, H, W), num_layers)
    F = lowered["conv_ws"][0].shape[-1]

    # Single layout pass (NCHW -> space-to-depth, channels-last, flattened
    # rows), done in bf16 so the transpose/DMA moves half the bytes; uint8
    # pixel values are exactly representable in bf16 and the 1/255 scale is
    # already folded into the layer-0 weights.
    x = obs.astype(jnp.bfloat16).reshape(B, C, H2, 2, W2, 2)
    x = x.transpose(0, 2, 4, 3, 5, 1).reshape(B, H2 * W2, 4 * C)

    # fused conv stack: one pallas_call, several images per grid step.
    tb_b = _largest_divisor(B, 8)
    conv_out = encoder_convs(x, lowered["conv_ws"], lowered["conv_bs"],
                             dims, pitch, F, tb_b)

    # free row-major reshape; fc weight rows already match this flatten order.
    x_flat = conv_out.reshape(B, -1)

    # fused tail: fc + LayerNorm + trunk + sample / log-prob / squash.
    return actor_tail(x_flat, noise, lowered, log_std_min, log_std_max)


if __name__ == "__main__":
    key = jax.random.PRNGKey(0)
    pkey, okey, nkey = jax.random.split(key, 3)

    B = 2
    obs_shape = (4, 16, 16)      # (C, H, W)
    action_dim = 6
    hidden_dim = 32
    feature_dim = 32
    num_layers = 2
    num_filters = 8
    log_std_min, log_std_max = -10.0, 2.0

    params = init_actor_params(pkey, obs_shape, action_dim, hidden_dim,
                               feature_dim, num_layers, num_filters)
    lowered = lower_params(params, obs_shape, num_layers, num_filters,
                           feature_dim, action_dim)

    obs = jax.random.uniform(okey, (B,) + obs_shape, jnp.float32, 0.0, 255.0)
    # torch.randn_like(mu) equivalent, generated deterministically in glue.
    noise = jax.random.normal(nkey, (B, action_dim), jnp.float32)

    fwd = jax.jit(functools.partial(actor_forward,
                                    log_std_min=log_std_min,
                                    log_std_max=log_std_max,
                                    num_layers=num_layers))
    mu, pi, log_pi, log_std = fwd(lowered, obs, noise)
    jax.block_until_ready((mu, pi, log_pi, log_std))

    assert mu.shape == (B, action_dim) and pi.shape == (B, action_dim)
    assert log_pi.shape == (B, 1) and log_std.shape == (B, action_dim)
    assert bool(jnp.all(jnp.abs(mu) <= 1.0)) and bool(jnp.all(jnp.abs(pi) <= 1.0))
    assert bool(jnp.all(jnp.isfinite(log_pi)))
    assert bool(jnp.all(log_std >= log_std_min)) and bool(jnp.all(log_std <= log_std_max))
    print("KERNEL_OK")
</pallas_src>

<mosaic_0001>
module attributes {stable_mosaic.version = 11 : i64} {
  func.func @_encoder_conv_kernel(%arg0: i32, %arg1: memref<2x64x16xbf16, #tpu.memory_space<vmem>>, %arg2: memref<4x16x8xbf16, #tpu.memory_space<vmem>>, %arg3: memref<1x8xf32, #tpu.memory_space<vmem>>, %arg4: memref<9x8x8xbf16, #tpu.memory_space<vmem>>, %arg5: memref<1x8xf32, #tpu.memory_space<vmem>>, %arg6: memref<2x37x8xbf16, #tpu.memory_space<vmem>>, %arg7: memref<2x55x8xbf16, #tpu.memory_space<vmem>>) attributes {dimension_semantics = [#tpu.dimension_semantics<parallel>], iteration_bounds = array<i64: 1>, scalar_prefetch = 0 : i64, scratch_operands = 1 : i64, tpu.core_type = #tpu.core_type<tc>, window_params = [{transform_indices = @transform_0, window_bounds = array<i64: 2, 64, 16>}, {pipeline_mode = #tpu.pipeline_mode<synchronous>, transform_indices = @transform_1, window_bounds = array<i64: 4, 16, 8>}, {pipeline_mode = #tpu.pipeline_mode<synchronous>, transform_indices = @transform_2, window_bounds = array<i64: 1, 8>}, {pipeline_mode = #tpu.pipeline_mode<synchronous>, transform_indices = @transform_3, window_bounds = array<i64: 9, 8, 8>}, {pipeline_mode = #tpu.pipeline_mode<synchronous>, transform_indices = @transform_4, window_bounds = array<i64: 1, 8>}, {transform_indices = @transform_5, window_bounds = array<i64: 2, 37, 8>}]} {
    %cst = arith.constant 0.000000e+00 : f32
    %0 = vector.broadcast %cst : f32 to vector<55x8xf32>
    %c0 = arith.constant 0 : index
    %c0_0 = arith.constant 0 : index
    %1 = vector.load %arg3[%c0, %c0_0] : memref<1x8xf32, #tpu.memory_space<vmem>>, vector<1x8xf32>
    %2 = vector.broadcast %1 : vector<1x8xf32> to vector<55x8xf32>
    %3 = arith.addf %0, %2 : vector<55x8xf32>
    %c0_1 = arith.constant 0 : index
    %c0_2 = arith.constant 0 : index
    %c0_3 = arith.constant 0 : index
    %4 = vector.load %arg1[%c0_1, %c0_2, %c0_3] : memref<2x64x16xbf16, #tpu.memory_space<vmem>>, vector<1x55x16xbf16>
    %5 = vector.shape_cast %4 : vector<1x55x16xbf16> to vector<55x16xbf16>
    %c0_4 = arith.constant 0 : index
    %c0_5 = arith.constant 0 : index
    %c0_6 = arith.constant 0 : index
    %6 = vector.load %arg2[%c0_4, %c0_5, %c0_6] : memref<4x16x8xbf16, #tpu.memory_space<vmem>>, vector<1x16x8xbf16>
    %7 = vector.shape_cast %6 : vector<1x16x8xbf16> to vector<16x8xbf16>
    %cst_7 = arith.constant dense<0.000000e+00> : vector<55x8xf32>
    %8 = tpu.matmul %5, %7, %cst_7 {dimension_numbers = #tpu.dot_dimension_numbers<[1], [0], [0], [1], [0, 0, 1, 1], [], []>} : vector<55x16xbf16>, vector<16x8xbf16>, vector<55x8xf32> -> vector<55x8xf32>
    %9 = arith.addf %3, %8 : vector<55x8xf32>
    %c0_8 = arith.constant 0 : index
    %c1 = arith.constant 1 : index
    %c0_9 = arith.constant 0 : index
    %10 = vector.load %arg1[%c0_8, %c1, %c0_9] : memref<2x64x16xbf16, #tpu.memory_space<vmem>>, vector<1x55x16xbf16>
    %11 = vector.shape_cast %10 : vector<1x55x16xbf16> to vector<55x16xbf16>
    %c1_10 = arith.constant 1 : index
    %c0_11 = arith.constant 0 : index
    %c0_12 = arith.constant 0 : index
    %12 = vector.load %arg2[%c1_10, %c0_11, %c0_12] : memref<4x16x8xbf16, #tpu.memory_space<vmem>>, vector<1x16x8xbf16>
    %13 = vector.shape_cast %12 : vector<1x16x8xbf16> to vector<16x8xbf16>
    %cst_13 = arith.constant dense<0.000000e+00> : vector<55x8xf32>
    %14 = tpu.matmul %11, %13, %cst_13 {dimension_numbers = #tpu.dot_dimension_numbers<[1], [0], [0], [1], [0, 0, 1, 1], [], []>} : vector<55x16xbf16>, vector<16x8xbf16>, vector<55x8xf32> -> vector<55x8xf32>
    %15 = arith.addf %9, %14 : vector<55x8xf32>
    %c0_14 = arith.constant 0 : index
    %c8 = arith.constant 8 : index
    %c0_15 = arith.constant 0 : index
    %16 = vector.load %arg1[%c0_14, %c8, %c0_15] : memref<2x64x16xbf16, #tpu.memory_space<vmem>>, vector<1x55x16xbf16>
    %17 = vector.shape_cast %16 : vector<1x55x16xbf16> to vector<55x16xbf16>
    %c2 = arith.constant 2 : index
    %c0_16 = arith.constant 0 : index
    %c0_17 = arith.constant 0 : index
    %18 = vector.load %arg2[%c2, %c0_16, %c0_17] : memref<4x16x8xbf16, #tpu.memory_space<vmem>>, vector<1x16x8xbf16>
    %19 = vector.shape_cast %18 : vector<1x16x8xbf16> to vector<16x8xbf16>
    %cst_18 = arith.constant dense<0.000000e+00> : vector<55x8xf32>
    %20 = tpu.matmul %17, %19, %cst_18 {dimension_numbers = #tpu.dot_dimension_numbers<[1], [0], [0], [1], [0, 0, 1, 1], [], []>} : vector<55x16xbf16>, vector<16x8xbf16>, vector<55x8xf32> -> vector<55x8xf32>
    %21 = arith.addf %15, %20 : vector<55x8xf32>
    %c0_19 = arith.constant 0 : index
    %c9 = arith.constant 9 : index
    %c0_20 = arith.constant 0 : index
    %22 = vector.load %arg1[%c0_19, %c9, %c0_20] : memref<2x64x16xbf16, #tpu.memory_space<vmem>>, vector<1x55x16xbf16>
    %23 = vector.shape_cast %22 : vector<1x55x16xbf16> to vector<55x16xbf16>
    %c3 = arith.constant 3 : index
    %c0_21 = arith.constant 0 : index
    %c0_22 = arith.constant 0 : index
    %24 = vector.load %arg2[%c3, %c0_21, %c0_22] : memref<4x16x8xbf16, #tpu.memory_space<vmem>>, vector<1x16x8xbf16>
    %25 = vector.shape_cast %24 : vector<1x16x8xbf16> to vector<16x8xbf16>
    %cst_23 = arith.constant dense<0.000000e+00> : vector<55x8xf32>
    %26 = tpu.matmul %23, %25, %cst_23 {dimension_numbers = #tpu.dot_dimension_numbers<[1], [0], [0], [1], [0, 0, 1, 1], [], []>} : vector<55x16xbf16>, vector<16x8xbf16>, vector<55x8xf32> -> vector<55x8xf32>
    %27 = arith.addf %21, %26 : vector<55x8xf32>
    %cst_24 = arith.constant 0.000000e+00 : f32
    %28 = vector.broadcast %cst_24 : f32 to vector<55x8xf32>
    %29 = arith.maximumf %27, %28 : vector<55x8xf32>
    %30 = arith.truncf %29 : vector<55x8xf32> to vector<55x8xbf16>
    %c0_25 = arith.constant 0 : index
    %c0_26 = arith.constant 0 : index
    %c0_27 = arith.constant 0 : index
    %31 = vector.load %arg7[%c0_25, %c0_26, %c0_27] : memref<2x55x8xbf16, #tpu.memory_space<vmem>>, vector<1x55x8xbf16>
    %32 = vector.shape_cast %31 : vector<1x55x8xbf16> to vector<55x8xbf16>
    %33 = vector.shape_cast %30 : vector<55x8xbf16> to vector<1x55x8xbf16>
    tpu.vector_store %arg7[%c0_25, %c0_26, %c0_27], %33 {strides = array<i32>} : memref<2x55x8xbf16, #tpu.memory_space<vmem>>, vector<1x55x8xbf16>,
    %cst_28 = arith.constant 0.000000e+00 : f32
    %34 = vector.broadcast %cst_28 : f32 to vector<37x8xf32>
    %c0_29 = arith.constant 0 : index
    %c0_30 = arith.constant 0 : index
    %35 = vector.load %arg5[%c0_29, %c0_30] : memref<1x8xf32, #tpu.memory_space<vmem>>, vector<1x8xf32>
    %36 = vector.broadcast %35 : vector<1x8xf32> to vector<37x8xf32>
    %37 = arith.addf %34, %36 : vector<37x8xf32>
    %c0_31 = arith.constant 0 : index
    %c0_32 = arith.constant 0 : index
    %c0_33 = arith.constant 0 : index
    %38 = vector.load %arg7[%c0_31, %c0_32, %c0_33] : memref<2x55x8xbf16, #tpu.memory_space<vmem>>, vector<1x37x8xbf16>
    %39 = vector.shape_cast %38 : vector<1x37x8xbf16> to vector<37x8xbf16>
    %c0_34 = arith.constant 0 : index
    %c0_35 = arith.constant 0 : index
    %c0_36 = arith.constant 0 : index
    %40 = vector.load %arg4[%c0_34, %c0_35, %c0_36] : memref<9x8x8xbf16, #tpu.memory_space<vmem>>, vector<1x8x8xbf16>
    %41 = vector.shape_cast %40 : vector<1x8x8xbf16> to vector<8x8xbf16>
    %cst_37 = arith.constant dense<0.000000e+00> : vector<37x8xf32>
    %42 = tpu.matmul %39, %41, %cst_37 {dimension_numbers = #tpu.dot_dimension_numbers<[1], [0], [0], [1], [0, 0, 1, 1], [], []>} : vector<37x8xbf16>, vector<8x8xbf16>, vector<37x8xf32> -> vector<37x8xf32>
    %43 = arith.addf %37, %42 : vector<37x8xf32>
    %c0_38 = arith.constant 0 : index
    %c1_39 = arith.constant 1 : index
    %c0_40 = arith.constant 0 : index
    %44 = vector.load %arg7[%c0_38, %c1_39, %c0_40] : memref<2x55x8xbf16, #tpu.memory_space<vmem>>, vector<1x37x8xbf16>
    %45 = vector.shape_cast %44 : vector<1x37x8xbf16> to vector<37x8xbf16>
    %c1_41 = arith.constant 1 : index
    %c0_42 = arith.constant 0 : index
    %c0_43 = arith.constant 0 : index
    %46 = vector.load %arg4[%c1_41, %c0_42, %c0_43] : memref<9x8x8xbf16, #tpu.memory_space<vmem>>, vector<1x8x8xbf16>
    %47 = vector.shape_cast %46 : vector<1x8x8xbf16> to vector<8x8xbf16>
    %cst_44 = arith.constant dense<0.000000e+00> : vector<37x8xf32>
    %48 = tpu.matmul %45, %47, %cst_44 {dimension_numbers = #tpu.dot_dimension_numbers<[1], [0], [0], [1], [0, 0, 1, 1], [], []>} : vector<37x8xbf16>, vector<8x8xbf16>, vector<37x8xf32> -> vector<37x8xf32>
    %49 = arith.addf %43, %48 : vector<37x8xf32>
    %c0_45 = arith.constant 0 : index
    %c2_46 = arith.constant 2 : index
    %c0_47 = arith.constant 0 : index
    %50 = vector.load %arg7[%c0_45, %c2_46, %c0_47] : memref<2x55x8xbf16, #tpu.memory_space<vmem>>, vector<1x37x8xbf16>
    %51 = vector.shape_cast %50 : vector<1x37x8xbf16> to vector<37x8xbf16>
    %c2_48 = arith.constant 2 : index
    %c0_49 = arith.constant 0 : index
    %c0_50 = arith.constant 0 : index
    %52 = vector.load %arg4[%c2_48, %c0_49, %c0_50] : memref<9x8x8xbf16, #tpu.memory_space<vmem>>, vector<1x8x8xbf16>
    %53 = vector.shape_cast %52 : vector<1x8x8xbf16> to vector<8x8xbf16>
    %cst_51 = arith.constant dense<0.000000e+00> : vector<37x8xf32>
    %54 = tpu.matmul %51, %53, %cst_51 {dimension_numbers = #tpu.dot_dimension_numbers<[1], [0], [0], [1], [0, 0, 1, 1], [], []>} : vector<37x8xbf16>, vector<8x8xbf16>, vector<37x8xf32> -> vector<37x8xf32>
    %55 = arith.addf %49, %54 : vector<37x8xf32>
    %c0_52 = arith.constant 0 : index
    %c8_53 = arith.constant 8 : index
    %c0_54 = arith.constant 0 : index
    %56 = vector.load %arg7[%c0_52, %c8_53, %c0_54] : memref<2x55x8xbf16, #tpu.memory_space<vmem>>, vector<1x37x8xbf16>
    %57 = vector.shape_cast %56 : vector<1x37x8xbf16> to vector<37x8xbf16>
    %c3_55 = arith.constant 3 : index
    %c0_56 = arith.constant 0 : index
    %c0_57 = arith.constant 0 : index
    %58 = vector.load %arg4[%c3_55, %c0_56, %c0_57] : memref<9x8x8xbf16, #tpu.memory_space<vmem>>, vector<1x8x8xbf16>
    %59 = vector.shape_cast %58 : vector<1x8x8xbf16> to vector<8x8xbf16>
    %cst_58 = arith.constant dense<0.000000e+00> : vector<37x8xf32>
    %60 = tpu.matmul %57, %59, %cst_58 {dimension_numbers = #tpu.dot_dimension_numbers<[1], [0], [0], [1], [0, 0, 1, 1], [], []>} : vector<37x8xbf16>, vector<8x8xbf16>, vector<37x8xf32> -> vector<37x8xf32>
    %61 = arith.addf %55, %60 : vector<37x8xf32>
    %c0_59 = arith.constant 0 : index
    %c9_60 = arith.constant 9 : index
    %c0_61 = arith.constant 0 : index
    %62 = vector.load %arg7[%c0_59, %c9_60, %c0_61] : memref<2x55x8xbf16, #tpu.memory_space<vmem>>, vector<1x37x8xbf16>
    %63 = vector.shape_cast %62 : vector<1x37x8xbf16> to vector<37x8xbf16>
    %c4 = arith.constant 4 : index
    %c0_62 = arith.constant 0 : index
    %c0_63 = arith.constant 0 : index
    %64 = vector.load %arg4[%c4, %c0_62, %c0_63] : memref<9x8x8xbf16, #tpu.memory_space<vmem>>, vector<1x8x8xbf16>
    %65 = vector.shape_cast %64 : vector<1x8x8xbf16> to vector<8x8xbf16>
    %cst_64 = arith.constant dense<0.000000e+00> : vector<37x8xf32>
    %66 = tpu.matmul %63, %65, %cst_64 {dimension_numbers = #tpu.dot_dimension_numbers<[1], [0], [0], [1], [0, 0, 1, 1], [], []>} : vector<37x8xbf16>, vector<8x8xbf16>, vector<37x8xf32> -> vector<37x8xf32>
    %67 = arith.addf %61, %66 : vector<37x8xf32>
    %c0_65 = arith.constant 0 : index
    %c10 = arith.constant 10 : index
    %c0_66 = arith.constant 0 : index
    %68 = vector.load %arg7[%c0_65, %c10, %c0_66] : memref<2x55x8xbf16, #tpu.memory_space<vmem>>, vector<1x37x8xbf16>
    %69 = vector.shape_cast %68 : vector<1x37x8xbf16> to vector<37x8xbf16>
    %c5 = arith.constant 5 : index
    %c0_67 = arith.constant 0 : index
    %c0_68 = arith.constant 0 : index
    %70 = vector.load %arg4[%c5, %c0_67, %c0_68] : memref<9x8x8xbf16, #tpu.memory_space<vmem>>, vector<1x8x8xbf16>
    %71 = vector.shape_cast %70 : vector<1x8x8xbf16> to vector<8x8xbf16>
    %cst_69 = arith.constant dense<0.000000e+00> : vector<37x8xf32>
    %72 = tpu.matmul %69, %71, %cst_69 {dimension_numbers = #tpu.dot_dimension_numbers<[1], [0], [0], [1], [0, 0, 1, 1], [], []>} : vector<37x8xbf16>, vector<8x8xbf16>, vector<37x8xf32> -> vector<37x8xf32>
    %73 = arith.addf %67, %72 : vector<37x8xf32>
    %c0_70 = arith.constant 0 : index
    %c16 = arith.constant 16 : index
    %c0_71 = arith.constant 0 : index
    %74 = vector.load %arg7[%c0_70, %c16, %c0_71] : memref<2x55x8xbf16, #tpu.memory_space<vmem>>, vector<1x37x8xbf16>
    %75 = vector.shape_cast %74 : vector<1x37x8xbf16> to vector<37x8xbf16>
    %c6 = arith.constant 6 : index
    %c0_72 = arith.constant 0 : index
    %c0_73 = arith.constant 0 : index
    %76 = vector.load %arg4[%c6, %c0_72, %c0_73] : memref<9x8x8xbf16, #tpu.memory_space<vmem>>, vector<1x8x8xbf16>
    %77 = vector.shape_cast %76 : vector<1x8x8xbf16> to vector<8x8xbf16>
    %cst_74 = arith.constant dense<0.000000e+00> : vector<37x8xf32>
    %78 = tpu.matmul %75, %77, %cst_74 {dimension_numbers = #tpu.dot_dimension_numbers<[1], [0], [0], [1], [0, 0, 1, 1], [], []>} : vector<37x8xbf16>, vector<8x8xbf16>, vector<37x8xf32> -> vector<37x8xf32>
    %79 = arith.addf %73, %78 : vector<37x8xf32>
    %c0_75 = arith.constant 0 : index
    %c17 = arith.constant 17 : index
    %c0_76 = arith.constant 0 : index
    %80 = vector.load %arg7[%c0_75, %c17, %c0_76] : memref<2x55x8xbf16, #tpu.memory_space<vmem>>, vector<1x37x8xbf16>
    %81 = vector.shape_cast %80 : vector<1x37x8xbf16> to vector<37x8xbf16>
    %c7 = arith.constant 7 : index
    %c0_77 = arith.constant 0 : index
    %c0_78 = arith.constant 0 : index
    %82 = vector.load %arg4[%c7, %c0_77, %c0_78] : memref<9x8x8xbf16, #tpu.memory_space<vmem>>, vector<1x8x8xbf16>
    %83 = vector.shape_cast %82 : vector<1x8x8xbf16> to vector<8x8xbf16>
    %cst_79 = arith.constant dense<0.000000e+00> : vector<37x8xf32>
    %84 = tpu.matmul %81, %83, %cst_79 {dimension_numbers = #tpu.dot_dimension_numbers<[1], [0], [0], [1], [0, 0, 1, 1], [], []>} : vector<37x8xbf16>, vector<8x8xbf16>, vector<37x8xf32> -> vector<37x8xf32>
    %85 = arith.addf %79, %84 : vector<37x8xf32>
    %c0_80 = arith.constant 0 : index
    %c18 = arith.constant 18 : index
    %c0_81 = arith.constant 0 : index
    %86 = vector.load %arg7[%c0_80, %c18, %c0_81] : memref<2x55x8xbf16, #tpu.memory_space<vmem>>, vector<1x37x8xbf16>
    %87 = vector.shape_cast %86 : vector<1x37x8xbf16> to vector<37x8xbf16>
    %c8_82 = arith.constant 8 : index
    %c0_83 = arith.constant 0 : index
    %c0_84 = arith.constant 0 : index
    %88 = vector.load %arg4[%c8_82, %c0_83, %c0_84] : memref<9x8x8xbf16, #tpu.memory_space<vmem>>, vector<1x8x8xbf16>
    %89 = vector.shape_cast %88 : vector<1x8x8xbf16> to vector<8x8xbf16>
    %cst_85 = arith.constant dense<0.000000e+00> : vector<37x8xf32>
    %90 = tpu.matmul %87, %89, %cst_85 {dimension_numbers = #tpu.dot_dimension_numbers<[1], [0], [0], [1], [0, 0, 1, 1], [], []>} : vector<37x8xbf16>, vector<8x8xbf16>, vector<37x8xf32> -> vector<37x8xf32>
    %91 = arith.addf %85, %90 : vector<37x8xf32>
    %cst_86 = arith.constant 0.000000e+00 : f32
    %92 = vector.broadcast %cst_86 : f32 to vector<37x8xf32>
    %93 = arith.maximumf %91, %92 : vector<37x8xf32>
    %94 = arith.truncf %93 : vector<37x8xf32> to vector<37x8xbf16>
    %c0_87 = arith.constant 0 : index
    %c0_88 = arith.constant 0 : index
    %c0_89 = arith.constant 0 : index
    %95 = vector.load %arg6[%c0_87, %c0_88, %c0_89] : memref<2x37x8xbf16, #tpu.memory_space<vmem>>, vector<1x37x8xbf16>
    %96 = vector.shape_cast %95 : vector<1x37x8xbf16> to vector<37x8xbf16>
    %97 = vector.shape_cast %94 : vector<37x8xbf16> to vector<1x37x8xbf16>
    tpu.vector_store %arg6[%c0_87, %c0_88, %c0_89], %97 {strides = array<i32>} : memref<2x37x8xbf16, #tpu.memory_space<vmem>>, vector<1x37x8xbf16>,
    %cst_90 = arith.constant 0.000000e+00 : f32
    %98 = vector.broadcast %cst_90 : f32 to vector<55x8xf32>
    %c0_91 = arith.constant 0 : index
    %c0_92 = arith.constant 0 : index
    %99 = vector.load %arg3[%c0_91, %c0_92] : memref<1x8xf32, #tpu.memory_space<vmem>>, vector<1x8xf32>
    %100 = vector.broadcast %99 : vector<1x8xf32> to vector<55x8xf32>
    %101 = arith.addf %98, %100 : vector<55x8xf32>
    %c1_93 = arith.constant 1 : index
    %c0_94 = arith.constant 0 : index
    %c0_95 = arith.constant 0 : index
    %102 = vector.load %arg1[%c1_93, %c0_94, %c0_95] : memref<2x64x16xbf16, #tpu.memory_space<vmem>>, vector<1x55x16xbf16>
    %103 = vector.shape_cast %102 : vector<1x55x16xbf16> to vector<55x16xbf16>
    %c0_96 = arith.constant 0 : index
    %c0_97 = arith.constant 0 : index
    %c0_98 = arith.constant 0 : index
    %104 = vector.load %arg2[%c0_96, %c0_97, %c0_98] : memref<4x16x8xbf16, #tpu.memory_space<vmem>>, vector<1x16x8xbf16>
    %105 = vector.shape_cast %104 : vector<1x16x8xbf16> to vector<16x8xbf16>
    %cst_99 = arith.constant dense<0.000000e+00> : vector<55x8xf32>
    %106 = tpu.matmul %103, %105, %cst_99 {dimension_numbers = #tpu.dot_dimension_numbers<[1], [0], [0], [1], [0, 0, 1, 1], [], []>} : vector<55x16xbf16>, vector<16x8xbf16>, vector<55x8xf32> -> vector<55x8xf32>
    %107 = arith.addf %101, %106 : vector<55x8xf32>
    %c1_100 = arith.constant 1 : index
    %c1_101 = arith.constant 1 : index
    %c0_102 = arith.constant 0 : index
    %108 = vector.load %arg1[%c1_100, %c1_101, %c0_102] : memref<2x64x16xbf16, #tpu.memory_space<vmem>>, vector<1x55x16xbf16>
    %109 = vector.shape_cast %108 : vector<1x55x16xbf16> to vector<55x16xbf16>
    %c1_103 = arith.constant 1 : index
    %c0_104 = arith.constant 0 : index
    %c0_105 = arith.constant 0 : index
    %110 = vector.load %arg2[%c1_103, %c0_104, %c0_105] : memref<4x16x8xbf16, #tpu.memory_space<vmem>>, vector<1x16x8xbf16>
    %111 = vector.shape_cast %110 : vector<1x16x8xbf16> to vector<16x8xbf16>
    %cst_106 = arith.constant dense<0.000000e+00> : vector<55x8xf32>
    %112 = tpu.matmul %109, %111, %cst_106 {dimension_numbers = #tpu.dot_dimension_numbers<[1], [0], [0], [1], [0, 0, 1, 1], [], []>} : vector<55x16xbf16>, vector<16x8xbf16>, vector<55x8xf32> -> vector<55x8xf32>
    %113 = arith.addf %107, %112 : vector<55x8xf32>
    %c1_107 = arith.constant 1 : index
    %c8_108 = arith.constant 8 : index
    %c0_109 = arith.constant 0 : index
    %114 = vector.load %arg1[%c1_107, %c8_108, %c0_109] : memref<2x64x16xbf16, #tpu.memory_space<vmem>>, vector<1x55x16xbf16>
    %115 = vector.shape_cast %114 : vector<1x55x16xbf16> to vector<55x16xbf16>
    %c2_110 = arith.constant 2 : index
    %c0_111 = arith.constant 0 : index
    %c0_112 = arith.constant 0 : index
    %116 = vector.load %arg2[%c2_110, %c0_111, %c0_112] : memref<4x16x8xbf16, #tpu.memory_space<vmem>>, vector<1x16x8xbf16>
    %117 = vector.shape_cast %116 : vector<1x16x8xbf16> to vector<16x8xbf16>
    %cst_113 = arith.constant dense<0.000000e+00> : vector<55x8xf32>
    %118 = tpu.matmul %115, %117, %cst_113 {dimension_numbers = #tpu.dot_dimension_numbers<[1], [0], [0], [1], [0, 0, 1, 1], [], []>} : vector<55x16xbf16>, vector<16x8xbf16>, vector<55x8xf32> -> vector<55x8xf32>
    %119 = arith.addf %113, %118 : vector<55x8xf32>
    %c1_114 = arith.constant 1 : index
    %c9_115 = arith.constant 9 : index
    %c0_116 = arith.constant 0 : index
    %120 = vector.load %arg1[%c1_114, %c9_115, %c0_116] : memref<2x64x16xbf16, #tpu.memory_space<vmem>>, vector<1x55x16xbf16>
    %121 = vector.shape_cast %120 : vector<1x55x16xbf16> to vector<55x16xbf16>
    %c3_117 = arith.constant 3 : index
    %c0_118 = arith.constant 0 : index
    %c0_119 = arith.constant 0 : index
    %122 = vector.load %arg2[%c3_117, %c0_118, %c0_119] : memref<4x16x8xbf16, #tpu.memory_space<vmem>>, vector<1x16x8xbf16>
    %123 = vector.shape_cast %122 : vector<1x16x8xbf16> to vector<16x8xbf16>
    %cst_120 = arith.constant dense<0.000000e+00> : vector<55x8xf32>
    %124 = tpu.matmul %121, %123, %cst_120 {dimension_numbers = #tpu.dot_dimension_numbers<[1], [0], [0], [1], [0, 0, 1, 1], [], []>} : vector<55x16xbf16>, vector<16x8xbf16>, vector<55x8xf32> -> vector<55x8xf32>
    %125 = arith.addf %119, %124 : vector<55x8xf32>
    %cst_121 = arith.constant 0.000000e+00 : f32
    %126 = vector.broadcast %cst_121 : f32 to vector<55x8xf32>
    %127 = arith.maximumf %125, %126 : vector<55x8xf32>
    %128 = arith.truncf %127 : vector<55x8xf32> to vector<55x8xbf16>
    %c1_122 = arith.constant 1 : index
    %c0_123 = arith.constant 0 : index
    %c0_124 = arith.constant 0 : index
    %129 = vector.load %arg7[%c1_122, %c0_123, %c0_124] : memref<2x55x8xbf16, #tpu.memory_space<vmem>>, vector<1x55x8xbf16>
    %130 = vector.shape_cast %129 : vector<1x55x8xbf16> to vector<55x8xbf16>
    %131 = vector.shape_cast %128 : vector<55x8xbf16> to vector<1x55x8xbf16>
    tpu.vector_store %arg7[%c1_122, %c0_123, %c0_124], %131 {strides = array<i32>} : memref<2x55x8xbf16, #tpu.memory_space<vmem>>, vector<1x55x8xbf16>,
    %cst_125 = arith.constant 0.000000e+00 : f32
    %132 = vector.broadcast %cst_125 : f32 to vector<37x8xf32>
    %c0_126 = arith.constant 0 : index
    %c0_127 = arith.constant 0 : index
    %133 = vector.load %arg5[%c0_126, %c0_127] : memref<1x8xf32, #tpu.memory_space<vmem>>, vector<1x8xf32>
    %134 = vector.broadcast %133 : vector<1x8xf32> to vector<37x8xf32>
    %135 = arith.addf %132, %134 : vector<37x8xf32>
    %c1_128 = arith.constant 1 : index
    %c0_129 = arith.constant 0 : index
    %c0_130 = arith.constant 0 : index
    %136 = vector.load %arg7[%c1_128, %c0_129, %c0_130] : memref<2x55x8xbf16, #tpu.memory_space<vmem>>, vector<1x37x8xbf16>
    %137 = vector.shape_cast %136 : vector<1x37x8xbf16> to vector<37x8xbf16>
    %c0_131 = arith.constant 0 : index
    %c0_132 = arith.constant 0 : index
    %c0_133 = arith.constant 0 : index
    %138 = vector.load %arg4[%c0_131, %c0_132, %c0_133] : memref<9x8x8xbf16, #tpu.memory_space<vmem>>, vector<1x8x8xbf16>
    %139 = vector.shape_cast %138 : vector<1x8x8xbf16> to vector<8x8xbf16>
    %cst_134 = arith.constant dense<0.000000e+00> : vector<37x8xf32>
    %140 = tpu.matmul %137, %139, %cst_134 {dimension_numbers = #tpu.dot_dimension_numbers<[1], [0], [0], [1], [0, 0, 1, 1], [], []>} : vector<37x8xbf16>, vector<8x8xbf16>, vector<37x8xf32> -> vector<37x8xf32>
    %141 = arith.addf %135, %140 : vector<37x8xf32>
    %c1_135 = arith.constant 1 : index
    %c1_136 = arith.constant 1 : index
    %c0_137 = arith.constant 0 : index
    %142 = vector.load %arg7[%c1_135, %c1_136, %c0_137] : memref<2x55x8xbf16, #tpu.memory_space<vmem>>, vector<1x37x8xbf16>
    %143 = vector.shape_cast %142 : vector<1x37x8xbf16> to vector<37x8xbf16>
    %c1_138 = arith.constant 1 : index
    %c0_139 = arith.constant 0 : index
    %c0_140 = arith.constant 0 : index
    %144 = vector.load %arg4[%c1_138, %c0_139, %c0_140] : memref<9x8x8xbf16, #tpu.memory_space<vmem>>, vector<1x8x8xbf16>
    %145 = vector.shape_cast %144 : vector<1x8x8xbf16> to vector<8x8xbf16>
    %cst_141 = arith.constant dense<0.000000e+00> : vector<37x8xf32>
    %146 = tpu.matmul %143, %145, %cst_141 {dimension_numbers = #tpu.dot_dimension_numbers<[1], [0], [0], [1], [0, 0, 1, 1], [], []>} : vector<37x8xbf16>, vector<8x8xbf16>, vector<37x8xf32> -> vector<37x8xf32>
    %147 = arith.addf %141, %146 : vector<37x8xf32>
    %c1_142 = arith.constant 1 : index
    %c2_143 = arith.constant 2 : index
    %c0_144 = arith.constant 0 : index
    %148 = vector.load %arg7[%c1_142, %c2_143, %c0_144] : memref<2x55x8xbf16, #tpu.memory_space<vmem>>, vector<1x37x8xbf16>
    %149 = vector.shape_cast %148 : vector<1x37x8xbf16> to vector<37x8xbf16>
    %c2_145 = arith.constant 2 : index
    %c0_146 = arith.constant 0 : index
    %c0_147 = arith.constant 0 : index
    %150 = vector.load %arg4[%c2_145, %c0_146, %c0_147] : memref<9x8x8xbf16, #tpu.memory_space<vmem>>, vector<1x8x8xbf16>
    %151 = vector.shape_cast %150 : vector<1x8x8xbf16> to vector<8x8xbf16>
    %cst_148 = arith.constant dense<0.000000e+00> : vector<37x8xf32>
    %152 = tpu.matmul %149, %151, %cst_148 {dimension_numbers = #tpu.dot_dimension_numbers<[1], [0], [0], [1], [0, 0, 1, 1], [], []>} : vector<37x8xbf16>, vector<8x8xbf16>, vector<37x8xf32> -> vector<37x8xf32>
    %153 = arith.addf %147, %152 : vector<37x8xf32>
    %c1_149 = arith.constant 1 : index
    %c8_150 = arith.constant 8 : index
    %c0_151 = arith.constant 0 : index
    %154 = vector.load %arg7[%c1_149, %c8_150, %c0_151] : memref<2x55x8xbf16, #tpu.memory_space<vmem>>, vector<1x37x8xbf16>
    %155 = vector.shape_cast %154 : vector<1x37x8xbf16> to vector<37x8xbf16>
    %c3_152 = arith.constant 3 : index
    %c0_153 = arith.constant 0 : index
    %c0_154 = arith.constant 0 : index
    %156 = vector.load %arg4[%c3_152, %c0_153, %c0_154] : memref<9x8x8xbf16, #tpu.memory_space<vmem>>, vector<1x8x8xbf16>
    %157 = vector.shape_cast %156 : vector<1x8x8xbf16> to vector<8x8xbf16>
    %cst_155 = arith.constant dense<0.000000e+00> : vector<37x8xf32>
    %158 = tpu.matmul %155, %157, %cst_155 {dimension_numbers = #tpu.dot_dimension_numbers<[1], [0], [0], [1], [0, 0, 1, 1], [], []>} : vector<37x8xbf16>, vector<8x8xbf16>, vector<37x8xf32> -> vector<37x8xf32>
    %159 = arith.addf %153, %158 : vector<37x8xf32>
    %c1_156 = arith.constant 1 : index
    %c9_157 = arith.constant 9 : index
    %c0_158 = arith.constant 0 : index
    %160 = vector.load %arg7[%c1_156, %c9_157, %c0_158] : memref<2x55x8xbf16, #tpu.memory_space<vmem>>, vector<1x37x8xbf16>
    %161 = vector.shape_cast %160 : vector<1x37x8xbf16> to vector<37x8xbf16>
    %c4_159 = arith.constant 4 : index
    %c0_160 = arith.constant 0 : index
    %c0_161 = arith.constant 0 : index
    %162 = vector.load %arg4[%c4_159, %c0_160, %c0_161] : memref<9x8x8xbf16, #tpu.memory_space<vmem>>, vector<1x8x8xbf16>
    %163 = vector.shape_cast %162 : vector<1x8x8xbf16> to vector<8x8xbf16>
    %cst_162 = arith.constant dense<0.000000e+00> : vector<37x8xf32>
    %164 = tpu.matmul %161, %163, %cst_162 {dimension_numbers = #tpu.dot_dimension_numbers<[1], [0], [0], [1], [0, 0, 1, 1], [], []>} : vector<37x8xbf16>, vector<8x8xbf16>, vector<37x8xf32> -> vector<37x8xf32>
    %165 = arith.addf %159, %164 : vector<37x8xf32>
    %c1_163 = arith.constant 1 : index
    %c10_164 = arith.constant 10 : index
    %c0_165 = arith.constant 0 : index
    %166 = vector.load %arg7[%c1_163, %c10_164, %c0_165] : memref<2x55x8xbf16, #tpu.memory_space<vmem>>, vector<1x37x8xbf16>
    %167 = vector.shape_cast %166 : vector<1x37x8xbf16> to vector<37x8xbf16>
    %c5_166 = arith.constant 5 : index
    %c0_167 = arith.constant 0 : index
    %c0_168 = arith.constant 0 : index
    %168 = vector.load %arg4[%c5_166, %c0_167, %c0_168] : memref<9x8x8xbf16, #tpu.memory_space<vmem>>, vector<1x8x8xbf16>
    %169 = vector.shape_cast %168 : vector<1x8x8xbf16> to vector<8x8xbf16>
    %cst_169 = arith.constant dense<0.000000e+00> : vector<37x8xf32>
    %170 = tpu.matmul %167, %169, %cst_169 {dimension_numbers = #tpu.dot_dimension_numbers<[1], [0], [0], [1], [0, 0, 1, 1], [], []>} : vector<37x8xbf16>, vector<8x8xbf16>, vector<37x8xf32> -> vector<37x8xf32>
    %171 = arith.addf %165, %170 : vector<37x8xf32>
    %c1_170 = arith.constant 1 : index
    %c16_171 = arith.constant 16 : index
    %c0_172 = arith.constant 0 : index
    %172 = vector.load %arg7[%c1_170, %c16_171, %c0_172] : memref<2x55x8xbf16, #tpu.memory_space<vmem>>, vector<1x37x8xbf16>
    %173 = vector.shape_cast %172 : vector<1x37x8xbf16> to vector<37x8xbf16>
    %c6_173 = arith.constant 6 : index
    %c0_174 = arith.constant 0 : index
    %c0_175 = arith.constant 0 : index
    %174 = vector.load %arg4[%c6_173, %c0_174, %c0_175] : memref<9x8x8xbf16, #tpu.memory_space<vmem>>, vector<1x8x8xbf16>
    %175 = vector.shape_cast %174 : vector<1x8x8xbf16> to vector<8x8xbf16>
    %cst_176 = arith.constant dense<0.000000e+00> : vector<37x8xf32>
    %176 = tpu.matmul %173, %175, %cst_176 {dimension_numbers = #tpu.dot_dimension_numbers<[1], [0], [0], [1], [0, 0, 1, 1], [], []>} : vector<37x8xbf16>, vector<8x8xbf16>, vector<37x8xf32> -> vector<37x8xf32>
    %177 = arith.addf %171, %176 : vector<37x8xf32>
    %c1_177 = arith.constant 1 : index
    %c17_178 = arith.constant 17 : index
    %c0_179 = arith.constant 0 : index
    %178 = vector.load %arg7[%c1_177, %c17_178, %c0_179] : memref<2x55x8xbf16, #tpu.memory_space<vmem>>, vector<1x37x8xbf16>
    %179 = vector.shape_cast %178 : vector<1x37x8xbf16> to vector<37x8xbf16>
    %c7_180 = arith.constant 7 : index
    %c0_181 = arith.constant 0 : index
    %c0_182 = arith.constant 0 : index
    %180 = vector.load %arg4[%c7_180, %c0_181, %c0_182] : memref<9x8x8xbf16, #tpu.memory_space<vmem>>, vector<1x8x8xbf16>
    %181 = vector.shape_cast %180 : vector<1x8x8xbf16> to vector<8x8xbf16>
    %cst_183 = arith.constant dense<0.000000e+00> : vector<37x8xf32>
    %182 = tpu.matmul %179, %181, %cst_183 {dimension_numbers = #tpu.dot_dimension_numbers<[1], [0], [0], [1], [0, 0, 1, 1], [], []>} : vector<37x8xbf16>, vector<8x8xbf16>, vector<37x8xf32> -> vector<37x8xf32>
    %183 = arith.addf %177, %182 : vector<37x8xf32>
    %c1_184 = arith.constant 1 : index
    %c18_185 = arith.constant 18 : index
    %c0_186 = arith.constant 0 : index
    %184 = vector.load %arg7[%c1_184, %c18_185, %c0_186] : memref<2x55x8xbf16, #tpu.memory_space<vmem>>, vector<1x37x8xbf16>
    %185 = vector.shape_cast %184 : vector<1x37x8xbf16> to vector<37x8xbf16>
    %c8_187 = arith.constant 8 : index
    %c0_188 = arith.constant 0 : index
    %c0_189 = arith.constant 0 : index
    %186 = vector.load %arg4[%c8_187, %c0_188, %c0_189] : memref<9x8x8xbf16, #tpu.memory_space<vmem>>, vector<1x8x8xbf16>
    %187 = vector.shape_cast %186 : vector<1x8x8xbf16> to vector<8x8xbf16>
    %cst_190 = arith.constant dense<0.000000e+00> : vector<37x8xf32>
    %188 = tpu.matmul %185, %187, %cst_190 {dimension_numbers = #tpu.dot_dimension_numbers<[1], [0], [0], [1], [0, 0, 1, 1], [], []>} : vector<37x8xbf16>, vector<8x8xbf16>, vector<37x8xf32> -> vector<37x8xf32>
    %189 = arith.addf %183, %188 : vector<37x8xf32>
    %cst_191 = arith.constant 0.000000e+00 : f32
    %190 = vector.broadcast %cst_191 : f32 to vector<37x8xf32>
    %191 = arith.maximumf %189, %190 : vector<37x8xf32>
    %192 = arith.truncf %191 : vector<37x8xf32> to vector<37x8xbf16>
    %c1_192 = arith.constant 1 : index
    %c0_193 = arith.constant 0 : index
    %c0_194 = arith.constant 0 : index
    %193 = vector.load %arg6[%c1_192, %c0_193, %c0_194] : memref<2x37x8xbf16, #tpu.memory_space<vmem>>, vector<1x37x8xbf16>
    %194 = vector.shape_cast %193 : vector<1x37x8xbf16> to vector<37x8xbf16>
    %195 = vector.shape_cast %192 : vector<37x8xbf16> to vector<1x37x8xbf16>
    tpu.vector_store %arg6[%c1_192, %c0_193, %c0_194], %195 {strides = array<i32>} : memref<2x37x8xbf16, #tpu.memory_space<vmem>>, vector<1x37x8xbf16>,
    return
  }
  func.func @transform_0(%arg0: i32) -> (i32, i32, i32) {
    %c0_i32 = arith.constant 0 : i32
    %c0_i32_0 = arith.constant 0 : i32
    %c0_i32_1 = arith.constant 0 : i32
    return %arg0, %c0_i32, %c0_i32_0 : i32, i32, i32
  }
  func.func @transform_1(%arg0: i32) -> (i32, i32, i32) {
    %c0_i32 = arith.constant 0 : i32
    %c0_i32_0 = arith.constant 0 : i32
    %c0_i32_1 = arith.constant 0 : i32
    %c0_i32_2 = arith.constant 0 : i32
    return %c0_i32, %c0_i32_0, %c0_i32_1 : i32, i32, i32
  }
  func.func @transform_2(%arg0: i32) -> (i32, i32) {
    %c0_i32 = arith.constant 0 : i32
    %c0_i32_0 = arith.constant 0 : i32
    %c0_i32_1 = arith.constant 0 : i32
    return %c0_i32, %c0_i32_0 : i32, i32
  }
  func.func @transform_3(%arg0: i32) -> (i32, i32, i32) {
    %c0_i32 = arith.constant 0 : i32
    %c0_i32_0 = arith.constant 0 : i32
    %c0_i32_1 = arith.constant 0 : i32
    %c0_i32_2 = arith.constant 0 : i32
    return %c0_i32, %c0_i32_0, %c0_i32_1 : i32, i32, i32
  }
  func.func @transform_4(%arg0: i32) -> (i32, i32) {
    %c0_i32 = arith.constant 0 : i32
    %c0_i32_0 = arith.constant 0 : i32
    %c0_i32_1 = arith.constant 0 : i32
    return %c0_i32, %c0_i32_0 : i32, i32
  }
  func.func @transform_5(%arg0: i32) -> (i32, i32, i32) {
    %c0_i32 = arith.constant 0 : i32
    %c0_i32_0 = arith.constant 0 : i32
    %c0_i32_1 = arith.constant 0 : i32
    return %arg0, %c0_i32, %c0_i32_0 : i32, i32, i32
  }
}

module attributes {stable_mosaic.version = 11 : i64} {
  func.func @_tail_kernel(%arg0: i32, %arg1: memref<2x296xbf16, #tpu.memory_space<vmem>>, %arg2: memref<2x6xf32, #tpu.memory_space<vmem>>, %arg3: memref<296x32xbf16, #tpu.memory_space<vmem>>, %arg4: memref<1x32xf32, #tpu.memory_space<vmem>>, %arg5: memref<1x32xf32, #tpu.memory_space<vmem>>, %arg6: memref<1x32xf32, #tpu.memory_space<vmem>>, %arg7: memref<32x32xbf16, #tpu.memory_space<vmem>>, %arg8: memref<1x32xf32, #tpu.memory_space<vmem>>, %arg9: memref<32x32xbf16, #tpu.memory_space<vmem>>, %arg10: memref<1x32xf32, #tpu.memory_space<vmem>>, %arg11: memref<32x12xbf16, #tpu.memory_space<vmem>>, %arg12: memref<1x12xf32, #tpu.memory_space<vmem>>, %arg13: memref<2x6xf32, #tpu.memory_space<vmem>>, %arg14: memref<2x6xf32, #tpu.memory_space<vmem>>, %arg15: memref<2x1xf32, #tpu.memory_space<vmem>>, %arg16: memref<2x6xf32, #tpu.memory_space<vmem>>) attributes {dimension_semantics = [#tpu.dimension_semantics<parallel>], iteration_bounds = array<i64: 1>, scalar_prefetch = 0 : i64, scratch_operands = 0 : i64, tpu.core_type = #tpu.core_type<tc>, window_params = [{transform_indices = @transform_0, window_bounds = array<i64: 2, 296>}, {transform_indices = @transform_1, window_bounds = array<i64: 2, 6>}, {pipeline_mode = #tpu.pipeline_mode<synchronous>, transform_indices = @transform_2, window_bounds = array<i64: 296, 32>}, {pipeline_mode = #tpu.pipeline_mode<synchronous>, transform_indices = @transform_3, window_bounds = array<i64: 1, 32>}, {pipeline_mode = #tpu.pipeline_mode<synchronous>, transform_indices = @transform_4, window_bounds = array<i64: 1, 32>}, {pipeline_mode = #tpu.pipeline_mode<synchronous>, transform_indices = @transform_5, window_bounds = array<i64: 1, 32>}, {pipeline_mode = #tpu.pipeline_mode<synchronous>, transform_indices = @transform_6, window_bounds = array<i64: 32, 32>}, {pipeline_mode = #tpu.pipeline_mode<synchronous>, transform_indices = @transform_7, window_bounds = array<i64: 1, 32>}, {pipeline_mode = #tpu.pipeline_mode<synchronous>, transform_indices = @transform_8, window_bounds = array<i64: 32, 32>}, {pipeline_mode = #tpu.pipeline_mode<synchronous>, transform_indices = @transform_9, window_bounds = array<i64: 1, 32>}, {pipeline_mode = #tpu.pipeline_mode<synchronous>, transform_indices = @transform_10, window_bounds = array<i64: 32, 12>}, {pipeline_mode = #tpu.pipeline_mode<synchronous>, transform_indices = @transform_11, window_bounds = array<i64: 1, 12>}, {transform_indices = @transform_12, window_bounds = array<i64: 2, 6>}, {transform_indices = @transform_13, window_bounds = array<i64: 2, 6>}, {transform_indices = @transform_14, window_bounds = array<i64: 2, 1>}, {transform_indices = @transform_15, window_bounds = array<i64: 2, 6>}]} {
    %c0 = arith.constant 0 : index
    %c0_0 = arith.constant 0 : index
    %0 = vector.load %arg1[%c0, %c0_0] : memref<2x296xbf16, #tpu.memory_space<vmem>>, vector<2x296xbf16>
    %c0_1 = arith.constant 0 : index
    %c0_2 = arith.constant 0 : index
    %1 = vector.load %arg3[%c0_1, %c0_2] : memref<296x32xbf16, #tpu.memory_space<vmem>>, vector<296x32xbf16>
    %cst = arith.constant dense<0.000000e+00> : vector<2x32xf32>
    %2 = tpu.matmul %0, %1, %cst {dimension_numbers = #tpu.dot_dimension_numbers<[1], [0], [0], [1], [0, 0, 1, 1], [], []>} : vector<2x296xbf16>, vector<296x32xbf16>, vector<2x32xf32> -> vector<2x32xf32>
    %c0_3 = arith.constant 0 : index
    %c0_4 = arith.constant 0 : index
    %3 = vector.load %arg4[%c0_3, %c0_4] : memref<1x32xf32, #tpu.memory_space<vmem>>, vector<1x32xf32>
    %4 = vector.broadcast %3 : vector<1x32xf32> to vector<2x32xf32>
    %5 = arith.addf %2, %4 : vector<2x32xf32>
    %cst_5 = arith.constant dense<0.000000e+00> : vector<2xf32>
    %6 = vector.multi_reduction <add>, %5, %cst_5 [1] : vector<2x32xf32> to vector<2xf32>
    %7 = vector.shape_cast %6 : vector<2xf32> to vector<2x1xf32>
    %cst_6 = arith.constant 3.200000e+01 : f32
    %8 = vector.broadcast %cst_6 : f32 to vector<2x1xf32>
    %9 = arith.divf %7, %8 : vector<2x1xf32>
    %10 = vector.broadcast %9 : vector<2x1xf32> to vector<2x32xf32>
    %11 = arith.subf %5, %10 : vector<2x32xf32>
    %12 = arith.mulf %11, %11 : vector<2x32xf32>
    %cst_7 = arith.constant dense<0.000000e+00> : vector<2xf32>
    %13 = vector.multi_reduction <add>, %12, %cst_7 [1] : vector<2x32xf32> to vector<2xf32>
    %14 = vector.shape_cast %13 : vector<2xf32> to vector<2x1xf32>
    %cst_8 = arith.constant 3.200000e+01 : f32
    %15 = vector.broadcast %cst_8 : f32 to vector<2x1xf32>
    %16 = arith.divf %14, %15 : vector<2x1xf32>
    %17 = vector.broadcast %9 : vector<2x1xf32> to vector<2x32xf32>
    %18 = arith.subf %5, %17 : vector<2x32xf32>
    %cst_9 = arith.constant 9.99999974E-6 : f32
    %19 = vector.broadcast %cst_9 : f32 to vector<2x1xf32>
    %20 = arith.addf %16, %19 : vector<2x1xf32>
    %21 = math.rsqrt %20 : vector<2x1xf32>
    %22 = vector.broadcast %21 : vector<2x1xf32> to vector<2x32xf32>
    %23 = arith.mulf %18, %22 : vector<2x32xf32>
    %c0_10 = arith.constant 0 : index
    %c0_11 = arith.constant 0 : index
    %24 = vector.load %arg5[%c0_10, %c0_11] : memref<1x32xf32, #tpu.memory_space<vmem>>, vector<1x32xf32>
    %25 = vector.broadcast %24 : vector<1x32xf32> to vector<2x32xf32>
    %26 = arith.mulf %23, %25 : vector<2x32xf32>
    %c0_12 = arith.constant 0 : index
    %c0_13 = arith.constant 0 : index
    %27 = vector.load %arg6[%c0_12, %c0_13] : memref<1x32xf32, #tpu.memory_space<vmem>>, vector<1x32xf32>
    %28 = vector.broadcast %27 : vector<1x32xf32> to vector<2x32xf32>
    %29 = arith.addf %26, %28 : vector<2x32xf32>
    %30 = arith.truncf %29 : vector<2x32xf32> to vector<2x32xbf16>
    %c0_14 = arith.constant 0 : index
    %c0_15 = arith.constant 0 : index
    %31 = vector.load %arg7[%c0_14, %c0_15] : memref<32x32xbf16, #tpu.memory_space<vmem>>, vector<32x32xbf16>
    %cst_16 = arith.constant dense<0.000000e+00> : vector<2x32xf32>
    %32 = tpu.matmul %30, %31, %cst_16 {dimension_numbers = #tpu.dot_dimension_numbers<[1], [0], [0], [1], [0, 0, 1, 1], [], []>} : vector<2x32xbf16>, vector<32x32xbf16>, vector<2x32xf32> -> vector<2x32xf32>
    %c0_17 = arith.constant 0 : index
    %c0_18 = arith.constant 0 : index
    %33 = vector.load %arg8[%c0_17, %c0_18] : memref<1x32xf32, #tpu.memory_space<vmem>>, vector<1x32xf32>
    %34 = vector.broadcast %33 : vector<1x32xf32> to vector<2x32xf32>
    %35 = arith.addf %32, %34 : vector<2x32xf32>
    %cst_19 = arith.constant 0.000000e+00 : f32
    %36 = vector.broadcast %cst_19 : f32 to vector<2x32xf32>
    %37 = arith.maximumf %35, %36 : vector<2x32xf32>
    %38 = arith.truncf %37 : vector<2x32xf32> to vector<2x32xbf16>
    %c0_20 = arith.constant 0 : index
    %c0_21 = arith.constant 0 : index
    %39 = vector.load %arg9[%c0_20, %c0_21] : memref<32x32xbf16, #tpu.memory_space<vmem>>, vector<32x32xbf16>
    %cst_22 = arith.constant dense<0.000000e+00> : vector<2x32xf32>
    %40 = tpu.matmul %38, %39, %cst_22 {dimension_numbers = #tpu.dot_dimension_numbers<[1], [0], [0], [1], [0, 0, 1, 1], [], []>} : vector<2x32xbf16>, vector<32x32xbf16>, vector<2x32xf32> -> vector<2x32xf32>
    %c0_23 = arith.constant 0 : index
    %c0_24 = arith.constant 0 : index
    %41 = vector.load %arg10[%c0_23, %c0_24] : memref<1x32xf32, #tpu.memory_space<vmem>>, vector<1x32xf32>
    %42 = vector.broadcast %41 : vector<1x32xf32> to vector<2x32xf32>
    %43 = arith.addf %40, %42 : vector<2x32xf32>
    %cst_25 = arith.constant 0.000000e+00 : f32
    %44 = vector.broadcast %cst_25 : f32 to vector<2x32xf32>
    %45 = arith.maximumf %43, %44 : vector<2x32xf32>
    %46 = arith.truncf %45 : vector<2x32xf32> to vector<2x32xbf16>
    %c0_26 = arith.constant 0 : index
    %c0_27 = arith.constant 0 : index
    %47 = vector.load %arg11[%c0_26, %c0_27] : memref<32x12xbf16, #tpu.memory_space<vmem>>, vector<32x12xbf16>
    %cst_28 = arith.constant dense<0.000000e+00> : vector<2x12xf32>
    %48 = tpu.matmul %46, %47, %cst_28 {dimension_numbers = #tpu.dot_dimension_numbers<[1], [0], [0], [1], [0, 0, 1, 1], [], []>} : vector<2x32xbf16>, vector<32x12xbf16>, vector<2x12xf32> -> vector<2x12xf32>
    %c0_29 = arith.constant 0 : index
    %c0_30 = arith.constant 0 : index
    %49 = vector.load %arg12[%c0_29, %c0_30] : memref<1x12xf32, #tpu.memory_space<vmem>>, vector<1x12xf32>
    %50 = vector.broadcast %49 : vector<1x12xf32> to vector<2x12xf32>
    %51 = arith.addf %48, %50 : vector<2x12xf32>
    %52 = vector.extract_strided_slice %51 {offsets = [0, 0], sizes = [2, 6], strides = [1, 1]} : vector<2x12xf32> to vector<2x6xf32>
    %53 = vector.extract_strided_slice %51 {offsets = [0, 6], sizes = [2, 6], strides = [1, 1]} : vector<2x12xf32> to vector<2x6xf32>
    %54 = math.tanh %53 : vector<2x6xf32>
    %cst_31 = arith.constant 1.000000e+00 : f32
    %55 = vector.broadcast %cst_31 : f32 to vector<2x6xf32>
    %56 = arith.addf %54, %55 : vector<2x6xf32>
    %cst_32 = arith.constant 6.000000e+00 : f32
    %57 = vector.broadcast %cst_32 : f32 to vector<2x6xf32>
    %58 = arith.mulf %57, %56 : vector<2x6xf32>
    %cst_33 = arith.constant -1.000000e+01 : f32
    %59 = vector.broadcast %cst_33 : f32 to vector<2x6xf32>
    %60 = arith.addf %59, %58 : vector<2x6xf32>
    %61 = math.exp %60 : vector<2x6xf32>
    %c0_34 = arith.constant 0 : index
    %c0_35 = arith.constant 0 : index
    %62 = vector.load %arg2[%c0_34, %c0_35] : memref<2x6xf32, #tpu.memory_space<vmem>>, vector<2x6xf32>
    %63 = arith.mulf %62, %61 : vector<2x6xf32>
    %64 = arith.addf %52, %63 : vector<2x6xf32>
    %cst_36 = arith.constant -5.000000e-01 : f32
    %65 = vector.broadcast %cst_36 : f32 to vector<2x6xf32>
    %66 = arith.mulf %65, %62 : vector<2x6xf32>
    %67 = arith.mulf %66, %62 : vector<2x6xf32>
    %68 = arith.subf %67, %60 : vector<2x6xf32>
    %cst_37 = arith.constant dense<0.000000e+00> : vector<2xf32>
    %69 = vector.multi_reduction <add>, %68, %cst_37 [1] : vector<2x6xf32> to vector<2xf32>
    %70 = vector.shape_cast %69 : vector<2xf32> to vector<2x1xf32>
    %cst_38 = arith.constant 6.28318548 : f32
    %71 = math.log %cst_38 : f32
    %cst_39 = arith.constant 5.000000e-01 : f32
    %72 = arith.mulf %cst_39, %71 : f32
    %cst_40 = arith.constant 6.000000e+00 : f32
    %73 = arith.mulf %72, %cst_40 : f32
    %74 = vector.broadcast %73 : f32 to vector<2x1xf32>
    %75 = arith.subf %70, %74 : vector<2x1xf32>
    %76 = math.tanh %52 : vector<2x6xf32>
    %77 = math.tanh %64 : vector<2x6xf32>
    %78 = arith.mulf %77, %77 : vector<2x6xf32>
    %cst_41 = arith.constant 1.000000e+00 : f32
    %79 = vector.broadcast %cst_41 : f32 to vector<2x6xf32>
    %80 = arith.subf %79, %78 : vector<2x6xf32>
    %cst_42 = arith.constant 0.000000e+00 : f32
    %81 = vector.broadcast %cst_42 : f32 to vector<2x6xf32>
    %82 = arith.maximumf %80, %81 : vector<2x6xf32>
    %cst_43 = arith.constant 9.99999997E-7 : f32
    %83 = vector.broadcast %cst_43 : f32 to vector<2x6xf32>
    %84 = arith.addf %82, %83 : vector<2x6xf32>
    %85 = math.log %84 : vector<2x6xf32>
    %cst_44 = arith.constant dense<0.000000e+00> : vector<2xf32>
    %86 = vector.multi_reduction <add>, %85, %cst_44 [1] : vector<2x6xf32> to vector<2xf32>
    %87 = vector.shape_cast %86 : vector<2xf32> to vector<2x1xf32>
    %88 = arith.subf %75, %87 : vector<2x1xf32>
    %c0_45 = arith.constant 0 : index
    %c0_46 = arith.constant 0 : index
    %89 = vector.load %arg13[%c0_45, %c0_46] : memref<2x6xf32, #tpu.memory_space<vmem>>, vector<2x6xf32>
    tpu.vector_store %arg13[%c0_45, %c0_46], %76 {strides = array<i32>} : memref<2x6xf32, #tpu.memory_space<vmem>>, vector<2x6xf32>,
    %c0_47 = arith.constant 0 : index
    %c0_48 = arith.constant 0 : index
    %90 = vector.load %arg14[%c0_47, %c0_48] : memref<2x6xf32, #tpu.memory_space<vmem>>, vector<2x6xf32>
    tpu.vector_store %arg14[%c0_47, %c0_48], %77 {strides = array<i32>} : memref<2x6xf32, #tpu.memory_space<vmem>>, vector<2x6xf32>,
    %c0_49 = arith.constant 0 : index
    %c0_50 = arith.constant 0 : index
    %91 = vector.load %arg15[%c0_49, %c0_50] : memref<2x1xf32, #tpu.memory_space<vmem>>, vector<2x1xf32>
    tpu.vector_store %arg15[%c0_49, %c0_50], %88 {strides = array<i32>} : memref<2x1xf32, #tpu.memory_space<vmem>>, vector<2x1xf32>,
    %c0_51 = arith.constant 0 : index
    %c0_52 = arith.constant 0 : index
    %92 = vector.load %arg16[%c0_51, %c0_52] : memref<2x6xf32, #tpu.memory_space<vmem>>, vector<2x6xf32>
    tpu.vector_store %arg16[%c0_51, %c0_52], %60 {strides = array<i32>} : memref<2x6xf32, #tpu.memory_space<vmem>>, vector<2x6xf32>,
    return
  }
  func.func @transform_0(%arg0: i32) -> (i32, i32) {
    %c0_i32 = arith.constant 0 : i32
    %c0_i32_0 = arith.constant 0 : i32
    return %arg0, %c0_i32 : i32, i32
  }
  func.func @transform_1(%arg0: i32) -> (i32, i32) {
    %c0_i32 = arith.constant 0 : i32
    %c0_i32_0 = arith.constant 0 : i32
    return %arg0, %c0_i32 : i32, i32
  }
  func.func @transform_2(%arg0: i32) -> (i32, i32) {
    %c0_i32 = arith.constant 0 : i32
    %c0_i32_0 = arith.constant 0 : i32
    %c0_i32_1 = arith.constant 0 : i32
    return %c0_i32, %c0_i32_0 : i32, i32
  }
  func.func @transform_3(%arg0: i32) -> (i32, i32) {
    %c0_i32 = arith.constant 0 : i32
    %c0_i32_0 = arith.constant 0 : i32
    %c0_i32_1 = arith.constant 0 : i32
    return %c0_i32, %c0_i32_0 : i32, i32
  }
  func.func @transform_4(%arg0: i32) -> (i32, i32) {
    %c0_i32 = arith.constant 0 : i32
    %c0_i32_0 = arith.constant 0 : i32
    %c0_i32_1 = arith.constant 0 : i32
    return %c0_i32, %c0_i32_0 : i32, i32
  }
  func.func @transform_5(%arg0: i32) -> (i32, i32) {
    %c0_i32 = arith.constant 0 : i32
    %c0_i32_0 = arith.constant 0 : i32
    %c0_i32_1 = arith.constant 0 : i32
    return %c0_i32, %c0_i32_0 : i32, i32
  }
  func.func @transform_6(%arg0: i32) -> (i32, i32) {
    %c0_i32 = arith.constant 0 : i32
    %c0_i32_0 = arith.constant 0 : i32
    %c0_i32_1 = arith.constant 0 : i32
    return %c0_i32, %c0_i32_0 : i32, i32
  }
  func.func @transform_7(%arg0: i32) -> (i32, i32) {
    %c0_i32 = arith.constant 0 : i32
    %c0_i32_0 = arith.constant 0 : i32
    %c0_i32_1 = arith.constant 0 : i32
    return %c0_i32, %c0_i32_0 : i32, i32
  }
  func.func @transform_8(%arg0: i32) -> (i32, i32) {
    %c0_i32 = arith.constant 0 : i32
    %c0_i32_0 = arith.constant 0 : i32
    %c0_i32_1 = arith.constant 0 : i32
    return %c0_i32, %c0_i32_0 : i32, i32
  }
  func.func @transform_9(%arg0: i32) -> (i32, i32) {
    %c0_i32 = arith.constant 0 : i32
    %c0_i32_0 = arith.constant 0 : i32
    %c0_i32_1 = arith.constant 0 : i32
    return %c0_i32, %c0_i32_0 : i32, i32
  }
  func.func @transform_10(%arg0: i32) -> (i32, i32) {
    %c0_i32 = arith.constant 0 : i32
    %c0_i32_0 = arith.constant 0 : i32
    %c0_i32_1 = arith.constant 0 : i32
    return %c0_i32, %c0_i32_0 : i32, i32
  }
  func.func @transform_11(%arg0: i32) -> (i32, i32) {
    %c0_i32 = arith.constant 0 : i32
    %c0_i32_0 = arith.constant 0 : i32
    %c0_i32_1 = arith.constant 0 : i32
    return %c0_i32, %c0_i32_0 : i32, i32
  }
  func.func @transform_12(%arg0: i32) -> (i32, i32) {
    %c0_i32 = arith.constant 0 : i32
    %c0_i32_0 = arith.constant 0 : i32
    return %arg0, %c0_i32 : i32, i32
  }
  func.func @transform_13(%arg0: i32) -> (i32, i32) {
    %c0_i32 = arith.constant 0 : i32
    %c0_i32_0 = arith.constant 0 : i32
    return %arg0, %c0_i32 : i32, i32
  }
  func.func @transform_14(%arg0: i32) -> (i32, i32) {
    %c0_i32 = arith.constant 0 : i32
    %c0_i32_0 = arith.constant 0 : i32
    return %arg0, %c0_i32 : i32, i32
  }
  func.func @transform_15(%arg0: i32) -> (i32, i32) {
    %c0_i32 = arith.constant 0 : i32
    %c0_i32_0 = arith.constant 0 : i32
    return %arg0, %c0_i32 : i32, i32
  }
}

</mosaic_0001>

<bundles_post_ra>
// kernel: actor_forward.3
= control target key start
LH: loop header
LB: loop body
LE: loop exit
PB: predicated region body
PF: predicated region fallthrough
CT: control target
= control target key end

     0   :  { %21 = vsyncpa [#allocation3], 0  ;;  %v851_v2 = vmov 0.0   ;;  %vm852_vm0 = vmmov 0   ;;  %vm234_vm1 = vcmask 1043456   ;;  %v105_v11 = vlaneseq  ;;  %s1074_s0 = inlined_call_operand.vmem [shape: bf16[2,296], index: 0, kind: input, shape index: {}]   ;;  %s1075_s1 = inlined_call_operand.vmem [shape: f32[2,6], index: 1, kind: input, shape index: {}]   ;;  %s1076_s2 = inlined_call_operand.vmem [shape: bf16[296,32], index: 2, kind: input, shape index: {}]   ;;  %s1077_s3 = inlined_call_operand.vmem [shape: f32[1,32], index: 3, kind: input, shape index: {}]   ;;  %s1078_s4 = inlined_call_operand.vmem [shape: f32[1,32], index: 4, kind: input, shape index: {}]   ;;  %s1079_s5 = inlined_call_operand.vmem [shape: f32[1,32], index: 5, kind: input, shape index: {}]   ;;  %s1080_s6 = inlined_call_operand.vmem [shape: bf16[32,32], index: 6, kind: input, shape index: {}]   ;;  %s1081_s7 = inlined_call_operand.vmem [shape: f32[1,32], index: 7, kind: input, shape index: {}]   ;;  %s1082_s8 = inlined_call_operand.vmem [shape: bf16[32,32], index: 8, kind: input, shape index: {}]   ;;  %s1083_s9 = inlined_call_operand.vmem [shape: f32[1,32], index: 9, kind: input, shape index: {}]   ;;  %s1084_s10 = inlined_call_operand.vmem [shape: bf16[32,12], index: 10, kind: input, shape index: {}]   ;;  %s1085_s11 = inlined_call_operand.vmem [shape: f32[1,12], index: 11, kind: input, shape index: {}]   ;;  %s1086_s12 = inlined_call_operand.hbm [shape: f32[2,6], index: 12, kind: output, shape index: {0}]   ;;  %s1087_s13 = inlined_call_operand.hbm [shape: f32[2,6], index: 13, kind: output, shape index: {1}]   ;;  %s1088_s14 = inlined_call_operand.vmem [shape: f32[2,1], index: 14, kind: output, shape index: {2}]   ;;  %s1089_s15 = inlined_call_operand.hbm [shape: f32[2,6], index: 15, kind: output, shape index: {3}]  }
   0x1   :  { %v752_v0 = vld [vmem:[%s1076_s2 + $0x78] sm:$0xff]   ;;  %711 = vmatprep.subr.bf16.mxu1 %v851_v2  ;;  %v754_v3 = vld [vmem:[%s1076_s2 + $0x70] sm:$0xff]   ;;  %v756_v5 = vld [vmem:[%s1076_s2 + $0x68] sm:$0xff]   ;;  %717 = vmatprep.mubr.msk.bf16.mxu1 %vm852_vm0, %v851_v2  ;;  %v853_v21 = vmov 1966171168  }
   0x2   :  { %v753_v1 = vld [vmem:[%s1076_s2 + $0x38] sm:$0xff]   ;;  %676 = vmatprep.subr.bf16.mxu0 %v752_v0  ;;  %v755_v4 = vld [vmem:[%s1076_s2 + $0x30] sm:$0xff]   ;;  %v757_v6 = vld [vmem:[%s1076_s2 + $0x28] sm:$0xff]   ;;  %v106_v17 = vshrl.u32 %v105_v11, 7  ;;  %v103_v22 = vunpack.c.l.s4 %v853_v21 }
   0x3   :  { %677 = vmatpush3.bf16.msra.mxu0 %v753_v1  ;;  %v758_v7 = vld [vmem:[%s1076_s2 + $0x60] sm:$0xff]   ;;  %v760_v9 = vld [vmem:[%s1076_s2 + $0x58] sm:$0xff]   ;;  %v764_v10 = vld [vmem:[%s1076_s2 + $0x90] ss:$0 sps:$4 sm:$0xff]  }
   0x4   :  { %678 = vmatprep.subr.bf16.mxu0 %v754_v3  ;;  %v759_v8 = vld [vmem:[%s1076_s2 + $0x20] sm:$0xff]   ;;  %v761_v12 = vld [vmem:[%s1076_s2 + $0x18] sm:$0xff]   ;;  %v236_v13 = vsel %vm234_vm1, %v764_v10, 0  ;;  %v767_v14 = vld [vmem:[%s1076_s2 + $0x88] sm:$0xff]   ;;  %v104_v25 = vunpack.c.0.s8 %v103_v22 }
   0x5   :  { %712 = vmatpush3.bf16.msra.mxu1 %v236_v13  ;;  %v762_v15 = vld [vmem:[%s1076_s2 + $0x50] sm:$0xff]   ;;  %v765_v18 = vld [vmem:[%s1076_s2 + $0x48] sm:$0xff]   ;;  %v770_v19 = vld [vmem:[%s1076_s2 + $0x80] sm:$0xff]  }
   0x6   :  { %713 = vmatprep.subr.bf16.mxu1 %v851_v2  ;;  %v763_v16 = vld [vmem:[%s1076_s2 + $0x10] sm:$0xff]   ;;  %v640_v20 = vld.sshfl [vmem:[%s1074_s0] sm:$0x13 pattern:$0x75316420]  ;;  %v766_v23 = vld [vmem:[%s1076_s2 + $0x8] sm:$0xff]   ;;  %v107_v26 = vsub.s32 %v104_v25, %v106_v17 }
   0x7   :  { %679 = vmatpush3.bf16.msra.mxu0 %v755_v4  ;;  %v101_v24 = vcombine.high %v640_v20, %v640_v20 }
   0x8   :  { %680 = vmatprep.subr.bf16.mxu0 %v756_v5 }
   0x9   :  { %714 = vmatpush3.bf16.msra.mxu1 %v767_v14 }
   0xa   :  { %715 = vmatprep.subr.bf16.mxu1 %v851_v2 }
   0xb   :  { %681 = vmatpush3.bf16.msra.mxu0 %v757_v6 }
   0xc   :  { %682 = vmatprep.subr.bf16.mxu0 %v758_v7 }
   0xd   :  { %716 = vmatpush3.bf16.msra.mxu1 %v770_v19 }
   0xf   :  { %683 = vmatpush3.bf16.msra.mxu0 %v759_v8 }
  0x10   :  { %684 = vmatprep.subr.bf16.mxu0 %v760_v9 }
  0x13   :  { %685 = vmatpush3.bf16.msra.mxu0 %v761_v12 }
  0x14   :  { %686 = vmatprep.subr.bf16.mxu0 %v762_v15 }
  0x17   :  { %687 = vmatpush3.bf16.msra.mxu0 %v763_v16 }
  0x18   :  { %22 = vsyncpa [#allocation5], 0  ;;  %688 = vmatprep.subr.bf16.mxu0 %v765_v18  ;;  %v768_v27 = vld [vmem:[%s1076_s2 + $0x40] sm:$0xff]   ;;  %721 = vmatprep.subr.bf16.mxu1 %v851_v2  ;;  %v115_v28 = vrot.slane %v101_v24, %v107_v26  ;;  %v108_v29 = vrot.slane %v640_v20, %v107_v26  ;;  %vm230_vm2 = vcmask 326656   ;;  %vm318_vm3 = vcmask 254976   ;;  %v771_v50 = vld [vmem:[%s1080_s6 + $0x8] sm:$0xff]  }
  0x19   :  { %v769_v30 = vld [vmem:[%s1076_s2] sm:$0xff]   ;;  %vm373_vm4 = vcmask 261120   ;;  %v773_v61 = vld [vmem:[%s1082_s8 + $0x8] sm:$0xff]   ;;  %vm573_vm5 = vcmask 41984   ;;  %s856_s2 = smov [#allocation2]  }
  0x1a   :  { %270 = vmatprep.mubr.bf16.mxu0 %v115_v28  ;;  %v116_v31 = vcombine.high %v108_v29, %v108_v29  ;;  %v639_v37 = vld [vmem:[%s1077_s3] ss:$0 sm:$0xff]  ;;  %v775_v7 = vld [vmem:[%s1084_s10 + $0x8] sm:$0xff]   ;;  %s600_s29 = sshll.u32 %s856_s2, 4  ;;  %s601_s29 = int_to_ptr.vmem [resolvable:$true] %s600_s29 }
  0x1b   :  { %689 = vmatpush3.bf16.msra.mxu0 %v766_v23  ;;  %v772_v51 = vld [vmem:[%s1080_s6] sm:$0xff]  }
  0x1c   :  { %690 = vmatprep.subr.bf16.mxu0 %v768_v27  ;;  %718 = vmatmul.mubr.msk.bf16.vlgmr.msra.gmra.mxu1 %vm230_vm2, %v116_v31  ;;  %v661_v56 = vld [vmem:[%s1078_s4] ss:$0 sm:$0xff] }
  0x1d   :  { %725 = vmatprep.mubr.msk.bf16.mxu1 %vm852_vm0, %v851_v2  ;;  %722 = vmatpush3.bf16.msra.mxu1 %v771_v50  ;;  %v662_v58 = vld [vmem:[%s1079_s5] ss:$0 sm:$0xff] }
  0x1e   :  { %723 = vmatprep.subr.bf16.mxu1 %v851_v2  ;;  %v774_v63 = vld [vmem:[%s1082_s8] sm:$0xff]  }
  0x1f   :  { %691 = vmatpush3.bf16.msra.mxu0 %v769_v30  ;;  %v663_v0 = vld [vmem:[%s1081_s7] ss:$0 sm:$0xff] }
  0x20   :  { %v776_v10 = vld [vmem:[%s1084_s10] sm:$0xff]  }
  0x21   :  { %724 = vmatpush3.bf16.msra.mxu1 %v772_v51  ;;  %v667_v11 = vld [vmem:[%s1083_s9] ss:$0 sm:$0xff]  ;;  %s854_s9 = smov 122  }
  0x22   :  { %271 = vmatmul.mubr.bf16.vlgmr.msra.gmra.mxu0 %v108_v29  ;;  %729 = vmatprep.subr.bf16.mxu1 %v851_v2  ;;  %v559_v30 = vld [vmem:[%s1075_s1] sm:$0x3]  ;;  %s855_s1 = smov [#allocation4]  }
  0x23   :  { %v566_v31 = vmul.f32 -0.5, %v559_v30  ;;  %s610_s28 = sshll.u32 %s855_s1, 4  ;;  %s611_s28 = int_to_ptr.vmem [resolvable:$true] %s610_s28 }
  0x24   :  { %s787_s3 = scalar_lea.vmem %s611_s28, 32  ;;  %p792_p1 = scmp.lt.s32.totalorder %s611_s28, %s611_s28 }
  0x25   :  { %p788_p0 = scmp.ne.s32.totalorder %s611_s28, %s787_s3  ;;  %p793_p2 = scmp.lt.s32.totalorder %s787_s3, %s787_s3 }
  0x27   :  { %p794_p3 = por %p793_p2, %p792_p1 }
  0x29   :  { %p795_p4 = pnand %p794_p3, %p788_p0 }
  0xdc   :  { %v312_v32 = vpop.f32.mrf.mxu1 }
  0xde   :  { %v719_v33 = vpop.f32.mrf.mxu1 }
  0xe0   :  { %v315_v34 = vpop.f32.mrf.mxu1 }
  0xe1   :  { %v567_v34 = vmul.f32 %v566_v31, %v559_v30 }
  0xe2   :  { %v692_v35 = vpop.f32.mrf.mxu0  ;;  %v720_v36 = vpop.f32.mrf.mxu1 }
  0xe4   :  { %v693_v38 = vpop.f32.mrf.mxu0 }
  0xe5   :  { %v694_v39 = vadd.f32 %v693_v38, %v692_v35 }
  0xe6   :  { %v695_v40 = vpop.f32.mrf.mxu0 }
  0xe7   :  { %v273_v41 = vadd.f32 %v694_v39, %v639_v37 }
  0xe8   :  { %v696_v42 = vpop.f32.mrf.mxu0 }
  0xe9   :  { %v313_v43 = vadd.f32 %v312_v32, %v273_v41 }
  0xeb   :  { %v319_v44 = vsel %vm318_vm3, %v313_v43, 0.0 }
  0xec   :  { %320 = vadd.xlane.f32.xlu0 %v319_v44 }
 0x175   :  { %v321_v45 = vpop.xlane.xlu0 %320 }
 0x176   :  { %v323_v46 = vmul.f32 0.03125, %v321_v45 }
 0x178   :  { %v324_v47 = vsub.f32 %v313_v43, %v323_v46 }
 0x17a   :  { %v325_v48 = vmul.f32 %v324_v47, %v324_v47 }
 0x17c   :  { %v326_v49 = vsel %vm318_vm3, %v325_v48, 0.0 }
 0x17d   :  { %327 = vadd.xlane.f32.xlu0 %v326_v49 }
 0x206   :  { %v328_v52 = vpop.xlane.xlu0 %327 }
 0x207   :  { %v329_v53 = vmul.f32 0.03125, %v328_v52 }
 0x209   :  { %v330_v54 = vadd.f32 1e-05, %v329_v53 }
 0x20b   :  { %777 = vrsqrt.f32 %v330_v54 }
 0x218   :  { %v778_v55 = vpop.eup %777 }
 0x219   :  { %v332_v57 = vmul.f32 %v778_v55, %v324_v47 }
 0x21b   :  { %v340_v59 = vmul.f32 %v661_v56, %v332_v57 }
 0x21d   :  { %v348_v60 = vadd.f32 %v662_v58, %v340_v59 }
 0x21f   :  { %v349_v62 = vpack.c.bf16 %v348_v60, %v348_v60 }
 0x221   :  { %726 = vmatmul.mubr.msk.bf16.vlgmr.msra.gmra.mxu1 %vm373_vm4, %v349_v62 }
 0x222   :  { %730 = vmatpush3.bf16.msra.mxu1 %v773_v61  ;;  %733 = vmatprep.mubr.msk.bf16.mxu1 %vm852_vm0, %v851_v2 }
 0x223   :  { %731 = vmatprep.subr.bf16.mxu1 %v851_v2 }
 0x226   :  { %732 = vmatpush3.bf16.msra.mxu1 %v774_v63 }
 0x227   :  { %737 = vmatprep.subr.bf16.mxu1 %v851_v2 }
 0x2e1   :  { %v411_v1 = vpop.f32.mrf.mxu1 }
 0x2e2   :  { %v412_v3 = vadd.f32 %v663_v0, %v411_v1 }
 0x2e3   :  { %v727_v4 = vpop.f32.mrf.mxu1 }
 0x2e4   :  { %v417_v5 = vmax.f32 %v412_v3, 0.0 }
 0x2e5   :  { %v414_v6 = vpop.f32.mrf.mxu1 }
 0x2e6   :  { %v418_v8 = vpack.c.bf16 %v417_v5, %v417_v5 }
 0x2e7   :  { %v728_v9 = vpop.f32.mrf.mxu1 }
 0x2e8   :  { %734 = vmatmul.mubr.msk.bf16.vlgmr.msra.gmra.mxu1 %vm373_vm4, %v418_v8 }
 0x2e9   :  { %738 = vmatpush3.bf16.msra.mxu1 %v775_v7  ;;  %741 = vmatprep.mubr.msk.bf16.mxu1 %vm852_vm0, %v851_v2 }
 0x2ea   :  { %739 = vmatprep.subr.bf16.mxu1 %v851_v2  ;;  %v671_v2 = vld [vmem:[%s1085_s11] ss:$0 sm:$0xff] }
 0x2ed   :  { %740 = vmatpush3.bf16.msra.mxu1 %v776_v10 }
 0x3a8   :  { %v479_v12 = vpop.f32.mrf.mxu1 }
 0x3a9   :  { %v480_v13 = vadd.f32 %v667_v11, %v479_v12 }
 0x3aa   :  { %v735_v14 = vpop.f32.mrf.mxu1 }
 0x3ab   :  { %v485_v15 = vmax.f32 %v480_v13, 0.0 }
 0x3ac   :  { %v482_v16 = vpop.f32.mrf.mxu1 }
 0x3ad   :  { %v486_v17 = vpack.c.bf16 %v485_v15, %v485_v15 }
 0x3ae   :  { %v736_v18 = vpop.f32.mrf.mxu1 }
 0x3af   :  { %742 = vmatmul.mubr.msk.bf16.vlgmr.msra.gmra.mxu1 %vm373_vm4, %v486_v17 }
 0x46f   :  { %v547_v19 = vpop.f32.mrf.mxu1 }
 0x470   :  { %v548_v20 = vadd.f32 %v671_v2, %v547_v19 }
 0x471   :  { %v743_v21 = vpop.f32.mrf.mxu1 }
 0x472   :  { %779 = vtanh.f32 %v548_v20 }
 0x473   :  { %v550_v22 = vpop.f32.mrf.mxu1 }
 0x475   :  { %v744_v23 = vpop.f32.mrf.mxu1 }
 0x47f   :  { %v780_v24 = vpop.eup %779 }
 0x480   :  { %v554_v25 = vadd.f32 1.0, %v780_v24  ;;  %589 = vst.msk [vmem:[#allocation2] sm:$0x3] %vm573_vm5, %v780_v24 }
 0x482   :  { %v555_v26 = vmul.f32 6.0, %v554_v25 }
 0x484   :  { %v556_v27 = vadd.f32 -10.0, %v555_v26 }
 0x486   :  { %v557_v28 = vmul.f32 1.442695, %v556_v27 }
 0x488   :  { %781 = vpow2.f32 %v557_v28 }
 0x495   :  { %v782_v29 = vpop.eup %781 }
 0x496   :  { %561 = vrot.lane.b32.xlu1 %v782_v29, %s854_s9 }
 0x49a   :  { %569 = vrot.lane.b32.xlu1 %v556_v27, %s854_s9 }
 0x508   :  { %v562_v32 = vpop.permute.xlu1 %561 }
 0x509   :  { %v564_v33 = vmul.f32 %v562_v32, %v559_v30 }
 0x50b   :  { %v565_v35 = vadd.f32 %v564_v33, %v548_v20 }
 0x50c   :  { %v570_v36 = vpop.permute.xlu1 %569 }
 0x50d   :  { %783 = vtanh.f32 %v565_v35  ;;  %v572_v37 = vsub.f32 %v567_v34, %v570_v36  ;;  %593 = vst.msk [vmem:[#allocation6] sm:$0x3] %vm573_vm5, %v570_v36 }
 0x50f   :  { %v574_v38 = vsel %vm573_vm5, %v572_v37, 0.0 }
 0x510   :  { %575 = vadd.xlane.f32.xlu0 %v574_v38 }
 0x51a   :  { %v784_v39 = vpop.eup %783 }
 0x51b   :  { %590 = vst.msk [vmem:[#allocation4] sm:$0x3] %vm573_vm5, %v784_v39  ;;  %v579_v40 = vmul.f32 %v784_v39, %v784_v39 }
 0x51d   :  { %v580_v41 = vsub.f32 1.0, %v579_v40 }
 0x51f   :  { %v581_v42 = vmax.f32 %v580_v41, 0.0 }
 0x521   :  { %v582_v43 = vadd.f32 1e-06, %v581_v42 }
 0x523   :  { %785 = vlog2.f32 %v582_v43 }
 0x530   :  { %v786_v44 = vpop.eup %785 }
 0x531   :  { %v584_v45 = vmul.f32 0.6931472, %v786_v44 }
 0x533   :  { %v585_v46 = vsel %vm573_vm5, %v584_v45, 0.0 }
 0x534   :  { %586 = vadd.xlane.f32.xlu1 %v585_v46 }
 0x535   :  { %798 = shalt.err (!%p795_p4)
}
 0x536   :  { %613 = dma.vmem_to_hbm [thread:$0]  %s611_s28, 32, %s1087_s13, [#allocation5]  }
 0x537   :  { %s807_s17 = scalar_lea.vmem %s601_s29, 32  ;;  %p812_p6 = scmp.lt.s32.totalorder %s601_s29, %s601_s29 }
 0x538   :  { %p808_p5 = scmp.ne.s32.totalorder %s601_s29, %s807_s17  ;;  %p813_p7 = scmp.lt.s32.totalorder %s807_s17, %s807_s17 }
 0x53a   :  { %p814_p8 = por %p813_p7, %p812_p6 }
 0x53c   :  { %p815_p9 = pnand %p814_p8, %p808_p5 }
 0x53e   :  { %818 = shalt.err (!%p815_p9)
}
 0x53f   :  { %603 = dma.vmem_to_hbm [thread:$0]  %s601_s29, 32, %s1086_s12, [#allocation3]  }
 0x540   :  { %s857_s6 = smov [#allocation6]  }
 0x541   :  { %s622_s20 = sshll.u32 %s857_s6, 4  ;;  %s623_s20 = int_to_ptr.vmem [resolvable:$true] %s622_s20 }
 0x542   :  { %s827_s4 = scalar_lea.vmem %s623_s20, 32  ;;  %p832_p11 = scmp.lt.s32.totalorder %s623_s20, %s623_s20 }
 0x543   :  { %p828_p10 = scmp.ne.s32.totalorder %s623_s20, %s827_s4  ;;  %p833_p12 = scmp.lt.s32.totalorder %s827_s4, %s827_s4 }
 0x545   :  { %p834_p13 = por %p833_p12, %p832_p11 }
 0x547   :  { %p835_p0 = pnand %p834_p13, %p828_p10 }
 0x549   :  { %838 = shalt.err (!%p835_p0)
}
 0x54a   :  { %625 = dma.vmem_to_hbm [thread:$0]  %s623_s20, 32, %s1089_s15, [#allocation5]   ;;  %vm591_vm6 = vcmask 1024  }
 0x599   :  { %v576_v47 = vpop.xlane.xlu0 %575 }
 0x59a   :  { %v675_v48 = vadd.f32 -5.513631, %v576_v47 }
 0x5bd   :  { %v587_v49 = vpop.xlane.xlu1 %586 }
 0x5be   :  { %v588_v50 = vsub.f32 %v675_v48, %v587_v49 }
 0x5c0   :  { %592 = vst.msk [vmem:[%s1088_s14] sm:$0x3] %vm591_vm6, %v588_v50 }
 0x5c1   :  { %847 = dma.done.wait [#allocation3], 32  }
 0x5c2   :  { %848 = vsyncadd [#allocation3], 4294967264 }
 0x5c3   :  { %849 = dma.done.wait [#allocation5], 64  }
 0x5c4   :  { %850 = vsyncadd [#allocation5], 4294967232 }
 0x5c5   :  { %637 = vsyncpa [#allocation3], 1 }
 0x5c6   :  { %638 = vsyncpa [#allocation5], 1 }

// kernel: actor_forward.2
= control target key start
LH: loop header
LB: loop body
LE: loop exit
PB: predicated region body
PF: predicated region fallthrough
CT: control target
= control target key end

     0   :  { %vm149_vm0 = vsmask.f32 7424  ;;  %vm62_vm1 = vcmask 130048   ;;  %vm588_vm2 = vcmask 1043456   ;;  %v3555_v51 = vmov 0.0   ;;  %s4166_s1 = inlined_call_operand.vmem [shape: bf16[4,16,8], index: 1, kind: input, shape index: {}]   ;;  %s4167_s0 = inlined_call_operand.vmem [shape: bf16[2,64,16], index: 0, kind: input, shape index: {}]   ;;  %s4168_s3 = inlined_call_operand.vmem [shape: bf16[9,8,8], index: 3, kind: input, shape index: {}]   ;;  %s4169_s2 = inlined_call_operand.vmem [shape: f32[1,8], index: 2, kind: input, shape index: {}]   ;;  %s4170_s4 = inlined_call_operand.vmem [shape: f32[1,8], index: 4, kind: input, shape index: {}]   ;;  %s4171_s5 = inlined_call_operand.vmem [shape: bf16[2,37,8], index: 5, kind: output, shape index: {}]  }
   0x1   :  { %v3501_v0 = vld [vmem:[%s4166_s1] sm:$0xff]   ;;  %v3502_v1 = vld [vmem:[%s4167_s0 + $0x10] sm:$0xff]   ;;  %v3503_v2 = vld [vmem:[%s4167_s0 + $0x18] ss:$0 sps:$4 sm:$0xff]   ;;  %vm3556_vm3 = vmmov 0   ;;  %vm538_vm4 = vcmask 60416  }
   0x2   :  { %3497 = vmatprep.subr.bf16.mxu1 %v3501_v0  ;;  %3165 = vmatprep.subr.bf16.mxu0 %v3501_v0  ;;  %v163_v3 = vshll.u32 %v3502_v1, 16  ;;  %v167_v4 = vshrl.u32 %v3502_v1, 16  ;;  %v3504_v5 = vld [vmem:[%s4166_s1 + $0x8] sm:$0xff]   ;;  %v3505_v6 = vld [vmem:[%s4167_s0] sm:$0xff]   ;;  %v3507_v11 = vld [vmem:[%s4166_s1 + $0x10] sm:$0xff]   ;;  %v170_v12 = vshll.u32 %v3503_v2, 16 }
   0x3   :  { %3498 = vmatpush3.bf16.msra.mxu1 %v3501_v0  ;;  %3166 = vmatpush3.bf16.msra.mxu0 %v3501_v0  ;;  %v150_v8 = vshrl.u32 %v3505_v6, 16  ;;  %v152_v9 = vshll.u32 %v3505_v6, 16  ;;  %v3506_v10 = vld [vmem:[%s4167_s0 + $0x8] sm:$0xff]   ;;  %v3508_v16 = vld [vmem:[%s4166_s1 + $0x18] sm:$0xff]   ;;  %v174_v26 = vshrl.u32 %v3503_v2, 16  ;;  %vm578_vm7 = vcmask 64512  }
   0x4   :  { %3171 = vmatprep.mubr.msk.bf16.mxu1 %vm62_vm1, %v3502_v1  ;;  %v165_v7 = vrot.slane %v163_v3, 1  ;;  %3175 = vmatprep.subr.bf16.mxu1 %v3504_v5  ;;  %v156_v14 = vshll.u32 %v3506_v10, 16  ;;  %v160_v15 = vshrl.u32 %v3506_v10, 16  ;;  %v3509_v20 = vld [vmem:[%s4167_s0 + $0x4] sm:$0xff]   ;;  %v172_v21 = vrot.slane %v170_v12, 1  ;;  %v3510_v24 = vld [vmem:[%s4167_s0 + $0xc] sm:$0xff]  }
   0x5   :  { %3167 = vmatprep.mubr.msk.bf16.mxu0 %vm62_vm1, %v3505_v6  ;;  %v154_v13 = vrot.slane %v152_v9, 1  ;;  %3185 = vmatprep.subr.bf16.mxu0 %v3507_v11  ;;  %v3511_v27 = vld [vmem:[%s4167_s0 + $0x14] sm:$0xff]   ;;  %v386_v29 = vshrl.u32 %v3509_v20, 16  ;;  %v388_v30 = vshll.u32 %v3509_v20, 16  ;;  %v392_v31 = vshll.u32 %v3510_v24, 16 }
   0x6   :  { %3172 = vmatmul.mubr.msk.bf16.vlgmr.msra.gmra.mxu1 %vm62_vm1, %v3503_v2  ;;  %3168 = vmatmul.mubr.msk.bf16.vlgmr.msra.gmra.mxu0 %vm62_vm1, %v3506_v10  ;;  %v169_v17 = vor.u32 %v167_v4, %v165_v7  ;;  %v158_v19 = vrot.slane %v156_v14, 1  ;;  %v399_v32 = vshll.u32 %v3511_v27, 16  ;;  %v3512_v33 = vld [vmem:[%s4167_s0 + $0x1c] ss:$0 sps:$4 sm:$0xff]   ;;  %v396_v34 = vshrl.u32 %v3510_v24, 16 }
   0x7   :  { %3176 = vmatpush3.bf16.msra.mxu1 %v3504_v5  ;;  %v155_v18 = vor.u32 %v154_v13, %v150_v8  ;;  %3186 = vmatpush3.bf16.msra.mxu0 %v3507_v11  ;;  %v390_v35 = vrot.slane %v388_v30, 1  ;;  %v403_v36 = vshrl.u32 %v3511_v27, 16  ;;  %v394_v37 = vrot.slane %v392_v31, 1  ;;  %v564_v50 = vld [vmem:[%s4168_s3] sm:$0xf] }
   0x8   :  { %3195 = vmatprep.subr.bf16.mxu1 %v3508_v16  ;;  %v162_v23 = vor.u32 %v160_v15, %v158_v19  ;;  %3187 = vmatprep.mubr.msk.bf16.mxu0 %vm62_vm1, %v3509_v20  ;;  %v173_v25 = vsel %vm149_vm0, %v169_v17, %v172_v21  ;;  %v406_v38 = vshll.u32 %v3512_v33, 16  ;;  %v176_v40 = vor.u32 %v174_v26, %v172_v21  ;;  %v2862_v53 = vld [vmem:[%s4168_s3 + $0x4] sm:$0xf]  ;;  %v2813_v5 = vld [vmem:[%s4169_s2] ss:$0 sm:$0xff] }
   0x9   :  { %v159_v22 = vsel %vm149_vm0, %v155_v18, %v158_v19  ;;  %v391_v39 = vor.u32 %v390_v35, %v386_v29  ;;  %v401_v42 = vrot.slane %v399_v32, 1  ;;  %v398_v43 = vor.u32 %v396_v34, %v394_v37  ;;  %3205 = vmatprep.subr.bf16.mxu0 %v3555_v51 }
   0xa   :  { %3177 = vmatprep.mubr.msk.bf16.mxu1 %vm62_vm1, %v159_v22  ;;  %v166_v28 = vsel %vm149_vm0, %v162_v23, %v165_v7  ;;  %v408_v45 = vrot.slane %v406_v38, 1  ;;  %v410_v48 = vshrl.u32 %v3512_v33, 16  ;;  %v590_v52 = vsel %vm588_vm2, %v564_v50, 0 }
   0xb   :  { %v395_v41 = vsel %vm149_vm0, %v391_v39, %v394_v37  ;;  %v405_v44 = vor.u32 %v403_v36, %v401_v42  ;;  %v402_v46 = vsel %vm149_vm0, %v398_v43, %v401_v42  ;;  %v685_v54 = vsel %vm588_vm2, %v2862_v53, 0 }
   0xc   :  { %v412_v49 = vor.u32 %v410_v48, %v408_v45  ;;  %vm546_vm5 = vsmask.f32 3328  ;;  %vm758_vm8 = vcmask 1046528   ;;  %vm1419_vm9 = vcmask 59392  }
   0xd   :  { %v409_v47 = vsel %vm149_vm0, %v405_v44, %v408_v45  ;;  %vm3668_vm6 = vmand %vm538_vm4, %vm546_vm5  ;;  %vm1420_vm10 = vsmask.f32 2304 }
   0xe   :  { %3178 = vmatmul.mubr.msk.bf16.vlgmr.msra.gmra.mxu1 %vm62_vm1, %v166_v28  ;;  %3188 = vmatmul.mubr.msk.bf16.vlgmr.msra.gmra.mxu0 %vm62_vm1, %v3510_v24  ;;  %vm3950_vm11 = vmand %vm1419_vm9, %vm1420_vm10 }
   0xf   :  { %3196 = vmatpush3.bf16.msra.mxu1 %v3508_v16  ;;  %3181 = vmatprep.mubr.msk.bf16.mxu1 %vm62_vm1, %v173_v25 }
  0x10   :  { %3191 = vmatprep.mubr.msk.bf16.mxu0 %vm62_vm1, %v3511_v27  ;;  %3219 = vmatprep.subr.bf16.mxu1 %v3555_v51 }
  0x11   :  { %3206 = vmatpush3.bf16.msra.mxu0 %v590_v52 }
  0x12   :  { %3233 = vmatprep.subr.bf16.mxu0 %v3555_v51 }
  0x16   :  { %3182 = vmatmul.mubr.msk.bf16.gmra.mxu1 %vm62_vm1, %v176_v40  ;;  %3192 = vmatmul.mubr.msk.bf16.gmra.mxu0 %vm62_vm1, %v3512_v33 }
  0x17   :  { %3197 = vmatprep.mubr.msk.bf16.mxu1 %vm62_vm1, %v395_v41  ;;  %3207 = vmatprep.mubr.msk.bf16.mxu0 %vm3556_vm3, %v3555_v51 }
  0x1e   :  { %3198 = vmatmul.mubr.msk.bf16.vlgmr.msra.gmra.mxu1 %vm62_vm1, %v402_v46 }
  0x1f   :  { %3201 = vmatprep.mubr.msk.bf16.mxu1 %vm62_vm1, %v409_v47  ;;  %3220 = vmatpush3.bf16.msra.mxu1 %v685_v54 }
  0x20   :  { %3247 = vmatprep.subr.bf16.mxu1 %v3555_v51 }
  0x26   :  { %3202 = vmatmul.mubr.msk.bf16.gmra.mxu1 %vm62_vm1, %v412_v49 }
  0x27   :  { %3221 = vmatprep.mubr.msk.bf16.mxu1 %vm3556_vm3, %v3555_v51 }
  0xc6   :  { %v3173_v55 = vpop.f32.mrf.mxu1  ;;  %v3169_v56 = vpop.f32.mrf.mxu0 }
  0xc7   :  { %v141_v7 = vadd.f32 %v3169_v56, %v2813_v5  ;;  %v145_v24 = vadd.f32 %v3173_v55, %v2813_v5 }
  0xc8   :  { %v125_v57 = vpop.f32.mrf.mxu1  ;;  %v109_v58 = vpop.f32.mrf.mxu0 }
  0xc9   :  { %v139_v10 = vadd.f32 %v2813_v5, %v109_v58  ;;  %v143_v28 = vadd.f32 %v2813_v5, %v125_v57 }
  0xca   :  { %v3174_v59 = vpop.f32.mrf.mxu1  ;;  %v3170_v60 = vpop.f32.mrf.mxu0 }
  0xcb   :  { %v142_v13 = vadd.f32 %v3170_v60, %v2813_v5  ;;  %v548_v59 = vld [vmem:[#allocation2 + $0x18] sm:$0xf] }
  0xcc   :  { %v128_v61 = vpop.f32.mrf.mxu1  ;;  %v112_v62 = vpop.f32.mrf.mxu0 }
  0xcd   :  { %v140_v17 = vadd.f32 %v2813_v5, %v112_v62  ;;  %v144_v40 = vadd.f32 %v2813_v5, %v128_v61  ;;  %v2866_v5 = vld [vmem:[%s4168_s3 + $0x8] sm:$0xf] }
  0xce   :  { %v3179_v63 = vpop.f32.mrf.mxu1  ;;  %v3189_v0 = vpop.f32.mrf.mxu0 }
  0xcf   :  { %v261_v14 = vadd.f32 %v3179_v63, %v141_v7 }
  0xd0   :  { %v229_v1 = vpop.f32.mrf.mxu1  ;;  %v346_v2 = vpop.f32.mrf.mxu0 }
  0xd1   :  { %v259_v18 = vadd.f32 %v229_v1, %v139_v10  ;;  %v378_v21 = vadd.f32 %v3189_v0, %v261_v14 }
  0xd2   :  { %v3180_v3 = vpop.f32.mrf.mxu1  ;;  %v3190_v4 = vpop.f32.mrf.mxu0 }
  0xd3   :  { %v262_v22 = vadd.f32 %v3180_v3, %v142_v13  ;;  %v376_v25 = vadd.f32 %v346_v2, %v259_v18 }
  0xd4   :  { %v232_v6 = vpop.f32.mrf.mxu1  ;;  %v349_v8 = vpop.f32.mrf.mxu0 }
  0xd5   :  { %v260_v26 = vadd.f32 %v232_v6, %v140_v17  ;;  %v379_v30 = vadd.f32 %v3190_v4, %v262_v22 }
  0xd6   :  { %v3183_v9 = vpop.f32.mrf.mxu1  ;;  %v3193_v11 = vpop.f32.mrf.mxu0 }
  0xd7   :  { %v265_v31 = vadd.f32 %v3183_v9, %v145_v24  ;;  %v377_v36 = vadd.f32 %v349_v8, %v260_v26 }
  0xd8   :  { %v245_v12 = vpop.f32.mrf.mxu1  ;;  %v362_v15 = vpop.f32.mrf.mxu0 }
  0xd9   :  { %v263_v34 = vadd.f32 %v245_v12, %v143_v28  ;;  %v382_v42 = vadd.f32 %v3193_v11, %v265_v31  ;;  %v774_v11 = vsel %vm588_vm2, %v2866_v5, 0  ;;  %v2879_v31 = vld [vmem:[%s4168_s3 + $0x10] sm:$0xf]  ;;  %v3525_v5 = vld [vmem:[%s4166_s1] sm:$0xff]  }
  0xda   :  { %v3184_v16 = vpop.f32.mrf.mxu1  ;;  %v3194_v19 = vpop.f32.mrf.mxu0 }
  0xdb   :  { %v380_v46 = vadd.f32 %v362_v15, %v263_v34  ;;  %v2872_v15 = vld [vmem:[%s4168_s3 + $0xc] sm:$0xf]  ;;  %v962_v34 = vsel %vm588_vm2, %v2879_v31, 0 }
  0xdc   :  { %v248_v20 = vpop.f32.mrf.mxu1  ;;  %v365_v53 = vpop.f32.mrf.mxu0 }
  0xdd   :  { %v264_v48 = vadd.f32 %v248_v20, %v144_v40  ;;  %v867_v20 = vsel %vm588_vm2, %v2872_v15, 0  ;;  %v2900_v15 = vld [vmem:[%s4168_s3 + $0x20] sm:$0xf] }
  0xde   :  { %v3199_v23 = vpop.f32.mrf.mxu1 }
  0xdf   :  { %v497_v27 = vadd.f32 %v3199_v23, %v378_v21  ;;  %v381_v61 = vadd.f32 %v365_v53, %v264_v48  ;;  %v2889_v53 = vld [vmem:[%s4168_s3 + $0x18] sm:$0xf] }
  0xe0   :  { %v465_v29 = vpop.f32.mrf.mxu1 }
  0xe1   :  { %v504_v32 = vmax.f32 %v497_v27, 0.0  ;;  %v495_v33 = vadd.f32 %v465_v29, %v376_v25 }
  0xe2   :  { %v3200_v35 = vpop.f32.mrf.mxu1 }
  0xe3   :  { %v3031_v37 = vpack.c.bf16 %v504_v32, %v504_v32  ;;  %v502_v38 = vmax.f32 %v495_v33, 0.0  ;;  %v498_v39 = vadd.f32 %v3200_v35, %v379_v30 }
  0xe4   :  { %v468_v41 = vpop.f32.mrf.mxu1 }
  0xe5   :  { %541 = vst.msk [vmem:[#allocation2 + $0x8] sm:$0xf] %vm538_vm4, %v3031_v37  ;;  %v3029_v43 = vpack.c.bf16 %v502_v38, %v502_v38  ;;  %v505_v44 = vmax.f32 %v498_v39, 0.0  ;;  %v496_v45 = vadd.f32 %v468_v41, %v377_v36  ;;  %v2883_v38 = vld [vmem:[%s4168_s3 + $0x14] sm:$0xf] }
  0xe6   :  { %v3203_v47 = vpop.f32.mrf.mxu1 }
  0xe7   :  { %539 = vst.msk [vmem:[#allocation2] sm:$0xf] %vm538_vm4, %v3029_v43  ;;  %v3032_v49 = vpack.c.bf16 %v505_v44, %v505_v44  ;;  %v503_v50 = vmax.f32 %v496_v45, 0.0  ;;  %v501_v52 = vadd.f32 %v3203_v47, %v382_v42  ;;  %v1050_v42 = vsel %vm588_vm2, %v2883_v38, 0 }
  0xe8   :  { %v481_v54 = vpop.f32.mrf.mxu1 }
  0xe9   :  { %542 = vst.msk [vmem:[#allocation2 + $0xc] sm:$0xf] %vm538_vm4, %v3032_v49  ;;  %v3030_v55 = vpack.c.bf16 %v503_v50, %v503_v50  ;;  %v508_v56 = vmax.f32 %v501_v52, 0.0  ;;  %v499_v57 = vadd.f32 %v481_v54, %v380_v46 }
  0xea   :  { %v3204_v60 = vpop.f32.mrf.mxu1 }
  0xeb   :  { %540 = vst.msk [vmem:[#allocation2 + $0x4] sm:$0xf] %vm538_vm4, %v3030_v55  ;;  %v3035_v62 = vpack.c.bf16 %v508_v56, %v508_v56  ;;  %v506_v63 = vmax.f32 %v499_v57, 0.0  ;;  %v1143_v55 = vsel %vm588_vm2, %v2889_v53, 0  ;;  %v3534_v53 = vld [vmem:[%s4167_s0 + $0x38] ss:$0 sps:$4 sm:$0xff]  }
  0xec   :  { %v484_v0 = vpop.f32.mrf.mxu1  ;;  %v838_v40 = vld [vmem:[#allocation2 + $0x8] sm:$0xf] }
  0xed   :  { %v549_v1 = vsel %vm3668_vm6, %v3035_v62, %v548_v59  ;;  %v3033_v2 = vpack.c.bf16 %v506_v63, %v506_v63  ;;  %v500_v3 = vadd.f32 %v484_v0, %v381_v61  ;;  %v2896_v61 = vld [vmem:[%s4168_s3 + $0x1c] sm:$0xf] }
  0xee   :  { %550 = vst [vmem:[#allocation2 + $0x18] sm:$0xf] %v549_v1  ;;  %v559_v8 = vld [vmem:[#allocation2] sm:$0xf] }
  0xef   :  { %543 = vst.msk [vmem:[#allocation2 + $0x10] sm:$0xf] %vm538_vm4, %v3033_v2  ;;  %v507_v4 = vmax.f32 %v500_v3, 0.0  ;;  %v748_v27 = vld [vmem:[#allocation2] sm:$0xe]  ;;  %v1238_v2 = vsel %vm588_vm2, %v2896_v61, 0 }
  0xf0   :  { %v3514_v7 = vld [vmem:[#allocation2 + $0x8] sm:$0xff]  }
  0xf1   :  { %v3034_v6 = vpack.c.bf16 %v507_v4, %v507_v4  ;;  %v661_v13 = vshll.u32 %v3514_v7, 16  ;;  %v665_v23 = vshrl.u32 %v3514_v7, 16  ;;  %v760_v33 = vrot.slane %v3514_v7, 1 }
  0xf2   :  { %v560_v9 = vld [vmem:[#allocation2 + $0x4] sm:$0xf] }
  0xf3   :  { %544 = vst.msk [vmem:[#allocation2 + $0x14] sm:$0xf] %vm538_vm4, %v3034_v6  ;;  %v2856_v10 = vcombine.low %v559_v8, %v560_v9  ;;  %v663_v19 = vrot.slane %v661_v13, 1  ;;  %v2867_v28 = vcombine.low %v748_v27, %v560_v9  ;;  %v837_v37 = vld [vmem:[#allocation2 + $0x4] sm:$0xf] }
  0xf4   :  { %v2873_v41 = vcombine.low %v837_v37, %v838_v40  ;;  %v1025_v54 = vld [vmem:[#allocation2 + $0x4] sm:$0xe]  ;;  %v1114_v9 = vld [vmem:[#allocation2 + $0xc] sm:$0xf] }
  0xf5   :  { %3208 = vmatmul.mubr.msk.bf16.vlgmr.msra.gmra.mxu0 %vm578_vm7, %v2856_v10  ;;  %v657_v12 = vshll.u32 %v2856_v10, 16  ;;  %v655_v14 = vshrl.u32 %v2856_v10, 16  ;;  %v667_v25 = vor.u32 %v665_v23, %v663_v19  ;;  %v759_v30 = vrot.slane %v2867_v28, 1 }
  0xf6   :  { %3211 = vmatprep.mubr.msk.bf16.mxu0 %vm3556_vm3, %v3555_v51  ;;  %3234 = vmatpush3.bf16.msra.mxu0 %v774_v11  ;;  %v3515_v17 = vld [vmem:[#allocation2 + $0x10] ss:$0 sps:$4 sm:$0x77]   ;;  %v934_v45 = vshll.u32 %v2873_v41, 16  ;;  %v932_v48 = vshrl.u32 %v2873_v41, 16  ;;  %v2884_v59 = vcombine.low %v1025_v54, %v838_v40 }
  0xf7   :  { %v659_v16 = vrot.slane %v657_v12, 1  ;;  %3261 = vmatprep.subr.bf16.mxu0 %v3555_v51  ;;  %v668_v22 = vshll.u32 %v3515_v17, 16  ;;  %v672_v29 = vshrl.u32 %v3515_v17, 16  ;;  %v761_v35 = vsel %vm758_vm8, %v759_v30, %v760_v33  ;;  %v3518_v36 = vld [vmem:[#allocation2 + $0x10] ss:$0 sps:$4 sm:$0xff]  }
  0xf8   :  { %v762_v39 = vrot.slane %v3518_v36, 1  ;;  %v3519_v44 = vld [vmem:[#allocation2 + $0xc] sm:$0xff]   ;;  %v936_v46 = vrot.slane %v934_v45, 1  ;;  %v1035_v0 = vrot.slane %v2884_v59, 1  ;;  %v1113_v12 = vld [vmem:[#allocation2 + $0x8] sm:$0xf] }
  0xf9   :  { %v660_v18 = vor.u32 %v659_v16, %v655_v14  ;;  %v670_v24 = vrot.slane %v668_v22, 1  ;;  %v938_v47 = vshll.u32 %v3519_v44, 16  ;;  %v1036_v60 = vrot.slane %v3519_v44, 1  ;;  %v3528_v36 = vld [vmem:[%s4167_s0 + $0x20] sm:$0xff]   ;;  %v3531_v40 = vld [vmem:[#allocation2 + $0x18] ss:$0 sps:$4 sm:$0xff]  }
  0xfa   :  { %v763_v43 = vsel %vm758_vm8, %v760_v33, %v762_v39  ;;  %v3520_v49 = vld [vmem:[#allocation2 + $0x14] ss:$0 sps:$4 sm:$0x77]   ;;  %v937_v50 = vor.u32 %v936_v46, %v932_v48  ;;  %v942_v62 = vshrl.u32 %v3519_v44, 16  ;;  %v2890_v13 = vcombine.low %v1113_v12, %v1114_v9  ;;  %v3535_v48 = vld [vmem:[%s4166_s1 + $0x18] sm:$0xff]  }
  0xfb   :  { %v664_v21 = vsel %vm149_vm0, %v660_v18, %v663_v19  ;;  %v671_v26 = vsel %vm149_vm0, %v667_v25, %v670_v24  ;;  %v674_v32 = vor.u32 %v672_v29, %v670_v24  ;;  %v940_v52 = vrot.slane %v938_v47, 1  ;;  %v3522_v4 = vld [vmem:[#allocation2 + $0x14] ss:$0 sps:$4 sm:$0xff]   ;;  %v3526_v24 = vld [vmem:[#allocation2 + $0x18] ss:$0 sps:$4 sm:$0x77]  }
  0xfc   :  { %3222 = vmatmul.mubr.msk.bf16.vlgmr.msra.gmra.mxu1 %vm578_vm7, %v664_v21  ;;  %v945_v57 = vshll.u32 %v3520_v49, 16  ;;  %v1037_v3 = vsel %vm758_vm8, %v1035_v0, %v1036_v60  ;;  %v949_v8 = vshrl.u32 %v3520_v49, 16  ;;  %v3524_v14 = vld [vmem:[#allocation2 + $0x10] sm:$0xff]   ;;  %v1210_v16 = vshll.u32 %v2890_v13, 16 }
  0xfd   :  { %3212 = vmatmul.mubr.msk.bf16.gmra.mxu0 %vm578_vm7, %v3514_v7  ;;  %3248 = vmatpush3.bf16.msra.mxu1 %v867_v20  ;;  %v941_v56 = vsel %vm149_vm0, %v937_v50, %v940_v52  ;;  %v944_v1 = vor.u32 %v942_v62, %v940_v52  ;;  %v1038_v7 = vrot.slane %v3522_v4, 1  ;;  %v1326_v18 = vsel %vm588_vm2, %v2900_v15, 0  ;;  %v3532_v19 = vld [vmem:[%s4166_s1 + $0x10] sm:$0xff]  }
  0xfe   :  { %3225 = vmatprep.mubr.msk.bf16.mxu1 %vm3556_vm3, %v3555_v51  ;;  %3215 = vmatprep.mubr.msk.bf16.mxu0 %vm3556_vm3, %v3555_v51  ;;  %v947_v63 = vrot.slane %v945_v57, 1  ;;  %v1212_v20 = vrot.slane %v1210_v16, 1  ;;  %v1208_v21 = vshrl.u32 %v2890_v13, 16  ;;  %v1218_v27 = vshrl.u32 %v3524_v14, 16  ;;  %v3536_v57 = vld [vmem:[%s4167_s0 + $0x24] sm:$0xff]   ;;  %v3538_v4 = vld [vmem:[%s4167_s0 + $0x34] sm:$0xff]  }
  0xff   :  { %3275 = vmatprep.subr.bf16.mxu1 %v3555_v51  ;;  %v1039_v10 = vsel %vm758_vm8, %v1036_v60, %v1038_v7  ;;  %v1221_v28 = vshll.u32 %v3526_v24, 16  ;;  %v1552_v45 = vshrl.u32 %v3528_v36, 16  ;;  %v1572_v60 = vshll.u32 %v3534_v53, 16 }
 0x100   :  { %v948_v6 = vsel %vm149_vm0, %v944_v1, %v947_v63  ;;  %v951_v11 = vor.u32 %v949_v8, %v947_v63  ;;  %v1213_v23 = vor.u32 %v1212_v20, %v1208_v21  ;;  %v1788_v63 = vshll.u32 %v3536_v57, 16 }
 0x101   :  { %v1223_v30 = vrot.slane %v1221_v28, 1  ;;  %v1574_v1 = vrot.slane %v1572_v60, 1  ;;  %v1961_v60 = vld [vmem:[%s4168_s3] sm:$0xf] }
 0x104   :  { %3226 = vmatmul.mubr.msk.bf16.gmra.mxu1 %vm578_vm7, %v671_v26  ;;  %v3530_v26 = vld [vmem:[%s4166_s1 + $0x8] sm:$0xff]  }
 0x105   :  { %3216 = vmatmul.mubr.msk.bf16.gmra.mxu0 %vm578_vm7, %v3515_v17  ;;  %3229 = vmatprep.mubr.msk.bf16.mxu1 %vm3556_vm3, %v3555_v51  ;;  %v1214_v17 = vshll.u32 %v3524_v14, 16 }
 0x106   :  { %3235 = vmatprep.mubr.msk.bf16.mxu0 %vm3556_vm3, %v3555_v51 }
 0x107   :  { %v1216_v22 = vrot.slane %v1214_v17, 1  ;;  %v1803_v17 = vshrl.u32 %v3538_v4, 16 }
 0x109   :  { %v1217_v25 = vsel %vm149_vm0, %v1213_v23, %v1216_v22  ;;  %v1220_v29 = vor.u32 %v1218_v27, %v1216_v22 }
 0x10b   :  { %v1224_v31 = vsel %vm149_vm0, %v1220_v29, %v1223_v30  ;;  %v3866_v29 = vld [vmem:[%s4170_s4] ss:$0 sm:$0xff] }
 0x10c   :  { %3230 = vmatmul.mubr.msk.bf16.gmra.mxu1 %vm578_vm7, %v674_v32  ;;  %v1301_v32 = vld [vmem:[#allocation2 + $0x8] sm:$0xe] }
 0x10d   :  { %3236 = vmatmul.mubr.msk.bf16.vlgmr.msra.gmra.mxu0 %vm578_vm7, %v761_v35  ;;  %3249 = vmatprep.mubr.msk.bf16.mxu1 %vm3556_vm3, %v3555_v51  ;;  %v2901_v33 = vcombine.low %v1301_v32, %v1114_v9  ;;  %v1312_v35 = vrot.slane %v3524_v14, 1  ;;  %v1576_v9 = vshrl.u32 %v3534_v53, 16 }
 0x10e   :  { %3239 = vmatprep.mubr.msk.bf16.mxu0 %vm3556_vm3, %v3555_v51  ;;  %3262 = vmatpush3.bf16.msra.mxu0 %v962_v34  ;;  %v1225_v34 = vshrl.u32 %v3526_v24, 16 }
 0x10f   :  { %3289 = vmatprep.subr.bf16.mxu0 %v3555_v51  ;;  %v1311_v38 = vrot.slane %v2901_v33, 1  ;;  %v1578_v12 = vor.u32 %v1576_v9, %v1574_v1 }
 0x110   :  { %v1227_v37 = vor.u32 %v1225_v34, %v1223_v30 }
 0x114   :  { %3250 = vmatmul.mubr.msk.bf16.vlgmr.msra.gmra.mxu1 %vm578_vm7, %v2873_v41  ;;  %v1554_v41 = vshll.u32 %v3528_v36, 16 }
 0x115   :  { %3240 = vmatmul.mubr.msk.bf16.gmra.mxu0 %vm578_vm7, %v763_v43  ;;  %3276 = vmatpush3.bf16.msra.mxu1 %v1050_v42  ;;  %v3529_v42 = vld [vmem:[%s4167_s0 + $0x28] sm:$0xff]   ;;  %v1314_v43 = vrot.slane %v3531_v40, 1 }
 0x116   :  { %3253 = vmatprep.mubr.msk.bf16.mxu1 %vm3556_vm3, %v3555_v51  ;;  %3243 = vmatprep.mubr.msk.bf16.mxu0 %vm3556_vm3, %v3555_v51  ;;  %v1556_v46 = vrot.slane %v1554_v41, 1  ;;  %v1558_v47 = vshll.u32 %v3529_v42, 16 }
 0x117   :  { %3303 = vmatprep.subr.bf16.mxu1 %v3555_v51 }
 0x118   :  { %v1557_v50 = vor.u32 %v1556_v46, %v1552_v45  ;;  %v1560_v52 = vrot.slane %v1558_v47, 1 }
 0x11c   :  { %3254 = vmatmul.mubr.msk.bf16.gmra.mxu1 %vm578_vm7, %v3519_v44  ;;  %v3533_v44 = vld [vmem:[%s4167_s0 + $0x30] sm:$0xff]  }
 0x11d   :  { %3244 = vmatmul.mubr.msk.bf16.gmra.mxu0 %vm578_vm7, %v762_v39  ;;  %3257 = vmatprep.mubr.msk.bf16.mxu1 %vm3556_vm3, %v3555_v51  ;;  %v1313_v39 = vsel %vm758_vm8, %v1311_v38, %v1312_v35  ;;  %v1565_v54 = vshll.u32 %v3533_v44, 16  ;;  %v1569_v59 = vshrl.u32 %v3533_v44, 16 }
 0x11e   :  { %3263 = vmatprep.mubr.msk.bf16.mxu0 %vm3556_vm3, %v3555_v51 }
 0x11f   :  { %v1567_v61 = vrot.slane %v1565_v54, 1 }
 0x121   :  { %v1571_v0 = vor.u32 %v1569_v59, %v1567_v61 }
 0x123   :  { %v1575_v8 = vsel %vm149_vm0, %v1571_v0, %v1574_v1 }
 0x124   :  { %3258 = vmatmul.mubr.msk.bf16.gmra.mxu1 %vm578_vm7, %v3520_v49  ;;  %v1315_v49 = vsel %vm758_vm8, %v1312_v35, %v1314_v43 }
 0x125   :  { %3264 = vmatmul.mubr.msk.bf16.vlgmr.msra.gmra.mxu0 %vm578_vm7, %v941_v56  ;;  %3277 = vmatprep.mubr.msk.bf16.mxu1 %vm3556_vm3, %v3555_v51  ;;  %v1561_v56 = vsel %vm149_vm0, %v1557_v50, %v1560_v52 }
 0x126   :  { %3267 = vmatprep.mubr.msk.bf16.mxu0 %vm3556_vm3, %v3555_v51  ;;  %3290 = vmatpush3.bf16.msra.mxu0 %v1143_v55  ;;  %v1562_v55 = vshrl.u32 %v3529_v42, 16 }
 0x127   :  { %3317 = vmatprep.subr.bf16.mxu0 %v3555_v51 }
 0x128   :  { %v1564_v62 = vor.u32 %v1562_v55, %v1560_v52 }
 0x12c   :  { %3278 = vmatmul.mubr.msk.bf16.vlgmr.msra.gmra.mxu1 %vm578_vm7, %v1037_v3  ;;  %v1568_v3 = vsel %vm149_vm0, %v1564_v62, %v1567_v61 }
 0x12d   :  { %3268 = vmatmul.mubr.msk.bf16.gmra.mxu0 %vm578_vm7, %v948_v6  ;;  %3304 = vmatpush3.bf16.msra.mxu1 %v1238_v2  ;;  %v3537_v2 = vld [vmem:[%s4167_s0 + $0x2c] sm:$0xff]   ;;  %v1790_v6 = vrot.slane %v1788_v63, 1  ;;  %v1985_v63 = vsel %vm588_vm2, %v1961_v60, 0 }
 0x12e   :  { %3281 = vmatprep.mubr.msk.bf16.mxu1 %vm3556_vm3, %v3555_v51  ;;  %3271 = vmatprep.mubr.msk.bf16.mxu0 %vm3556_vm3, %v3555_v51  ;;  %v1796_v15 = vshrl.u32 %v3537_v2, 16 }
 0x12f   :  { %3331 = vmatprep.subr.bf16.mxu1 %v3525_v5 }
 0x134   :  { %3282 = vmatmul.mubr.msk.bf16.gmra.mxu1 %vm578_vm7, %v1039_v10 }
 0x135   :  { %3272 = vmatmul.mubr.msk.bf16.gmra.mxu0 %vm578_vm7, %v951_v11  ;;  %3285 = vmatprep.mubr.msk.bf16.mxu1 %vm3556_vm3, %v3555_v51 }
 0x136   :  { %3291 = vmatprep.mubr.msk.bf16.mxu0 %vm3556_vm3, %v3555_v51 }
 0x13c   :  { %3286 = vmatmul.mubr.msk.bf16.gmra.mxu1 %vm578_vm7, %v1038_v7  ;;  %v1792_v7 = vshll.u32 %v3537_v2, 16 }
 0x13d   :  { %3292 = vmatmul.mubr.msk.bf16.vlgmr.msra.gmra.mxu0 %vm578_vm7, %v2890_v13  ;;  %3305 = vmatprep.mubr.msk.bf16.mxu1 %vm3556_vm3, %v3555_v51  ;;  %v1799_v13 = vshll.u32 %v3538_v4, 16 }
 0x13e   :  { %3295 = vmatprep.mubr.msk.bf16.mxu0 %vm3556_vm3, %v3555_v51  ;;  %3318 = vmatpush3.bf16.msra.mxu0 %v1326_v18  ;;  %v1794_v11 = vrot.slane %v1792_v7, 1  ;;  %v2974_v7 = vld [vmem:[%s4168_s3 + $0x4] sm:$0xf] }
 0x13f   :  { %3351 = vmatprep.subr.bf16.mxu0 %v3532_v19  ;;  %v2079_v9 = vsel %vm588_vm2, %v2974_v7, 0 }
 0x140   :  { %v1798_v20 = vor.u32 %v1796_v15, %v1794_v11 }
 0x144   :  { %3306 = vmatmul.mubr.msk.bf16.vlgmr.msra.gmra.mxu1 %vm578_vm7, %v1217_v25 }
 0x145   :  { %3296 = vmatmul.mubr.msk.bf16.gmra.mxu0 %vm578_vm7, %v3524_v14  ;;  %3332 = vmatpush3.bf16.msra.mxu1 %v3525_v5  ;;  %v1786_v5 = vshrl.u32 %v3536_v57, 16  ;;  %v3539_v14 = vld [vmem:[%s4167_s0 + $0x3c] ss:$0 sps:$4 sm:$0xff]  }
 0x146   :  { %3309 = vmatprep.mubr.msk.bf16.mxu1 %vm3556_vm3, %v3555_v51  ;;  %3299 = vmatprep.mubr.msk.bf16.mxu0 %vm3556_vm3, %v3555_v51  ;;  %v1806_v18 = vshll.u32 %v3539_v14, 16  ;;  %v1810_v25 = vshrl.u32 %v3539_v14, 16 }
 0x147   :  { %3341 = vmatprep.subr.bf16.mxu1 %v3530_v26  ;;  %v1791_v10 = vor.u32 %v1790_v6, %v1786_v5 }
 0x148   :  { %v1808_v22 = vrot.slane %v1806_v18, 1 }
 0x149   :  { %v1795_v16 = vsel %vm149_vm0, %v1791_v10, %v1794_v11 }
 0x14c   :  { %3310 = vmatmul.mubr.msk.bf16.gmra.mxu1 %vm578_vm7, %v1224_v31 }
 0x14d   :  { %3300 = vmatmul.mubr.msk.bf16.gmra.mxu0 %vm578_vm7, %v3526_v24  ;;  %3313 = vmatprep.mubr.msk.bf16.mxu1 %vm3556_vm3, %v3555_v51 }
 0x14e   :  { %3319 = vmatprep.mubr.msk.bf16.mxu0 %vm3556_vm3, %v3555_v51 }
 0x154   :  { %3314 = vmatmul.mubr.msk.bf16.gmra.mxu1 %vm578_vm7, %v1227_v37 }
 0x155   :  { %3320 = vmatmul.mubr.msk.bf16.vlgmr.msra.gmra.mxu0 %vm578_vm7, %v1313_v39  ;;  %3333 = vmatprep.mubr.msk.bf16.mxu1 %vm62_vm1, %v3528_v36 }
 0x156   :  { %3323 = vmatprep.mubr.msk.bf16.mxu0 %vm3556_vm3, %v3555_v51  ;;  %3352 = vmatpush3.bf16.msra.mxu0 %v3532_v19  ;;  %v1801_v19 = vrot.slane %v1799_v13, 1 }
 0x157   :  { %3371 = vmatprep.subr.bf16.mxu0 %v3555_v51 }
 0x158   :  { %v1805_v21 = vor.u32 %v1803_v17, %v1801_v19  ;;  %v1802_v23 = vsel %vm149_vm0, %v1798_v20, %v1801_v19 }
 0x15a   :  { %v1809_v24 = vsel %vm149_vm0, %v1805_v21, %v1808_v22 }
 0x15c   :  { %3334 = vmatmul.mubr.msk.bf16.vlgmr.msra.gmra.mxu1 %vm62_vm1, %v3529_v42 }
 0x15d   :  { %3324 = vmatmul.mubr.msk.bf16.gmra.mxu0 %vm578_vm7, %v1315_v49  ;;  %3342 = vmatpush3.bf16.msra.mxu1 %v3530_v26  ;;  %v1812_v26 = vor.u32 %v1810_v25, %v1808_v22 }
 0x15e   :  { %3337 = vmatprep.mubr.msk.bf16.mxu1 %vm62_vm1, %v3533_v44  ;;  %3327 = vmatprep.mubr.msk.bf16.mxu0 %vm3556_vm3, %v3555_v51 }
 0x15f   :  { %3361 = vmatprep.subr.bf16.mxu1 %v3535_v48 }
 0x164   :  { %3338 = vmatmul.mubr.msk.bf16.gmra.mxu1 %vm62_vm1, %v3534_v53 }
 0x165   :  { %3328 = vmatmul.mubr.msk.bf16.gmra.mxu0 %vm578_vm7, %v1314_v43  ;;  %3343 = vmatprep.mubr.msk.bf16.mxu1 %vm62_vm1, %v1561_v56 }
 0x166   :  { %3353 = vmatprep.mubr.msk.bf16.mxu0 %vm62_vm1, %v3536_v57 }
 0x16c   :  { %3344 = vmatmul.mubr.msk.bf16.vlgmr.msra.gmra.mxu1 %vm62_vm1, %v1568_v3 }
 0x16d   :  { %3362 = vmatpush3.bf16.msra.mxu1 %v3535_v48  ;;  %3354 = vmatmul.mubr.msk.bf16.vlgmr.msra.gmra.mxu0 %vm62_vm1, %v3537_v2 }
 0x16e   :  { %3347 = vmatprep.mubr.msk.bf16.mxu1 %vm62_vm1, %v1575_v8  ;;  %3357 = vmatprep.mubr.msk.bf16.mxu0 %vm62_vm1, %v3538_v4 }
 0x16f   :  { %3385 = vmatprep.subr.bf16.mxu1 %v3555_v51  ;;  %3372 = vmatpush3.bf16.msra.mxu0 %v1985_v63 }
 0x170   :  { %3399 = vmatprep.subr.bf16.mxu0 %v3555_v51 }
 0x174   :  { %3348 = vmatmul.mubr.msk.bf16.gmra.mxu1 %vm62_vm1, %v1578_v12 }
 0x175   :  { %3358 = vmatmul.mubr.msk.bf16.gmra.mxu0 %vm62_vm1, %v3539_v14  ;;  %3363 = vmatprep.mubr.msk.bf16.mxu1 %vm62_vm1, %v1795_v16 }
 0x176   :  { %3373 = vmatprep.mubr.msk.bf16.mxu0 %vm3556_vm3, %v3555_v51 }
 0x17c   :  { %3364 = vmatmul.mubr.msk.bf16.vlgmr.msra.gmra.mxu1 %vm62_vm1, %v1802_v23 }
 0x17d   :  { %3367 = vmatprep.mubr.msk.bf16.mxu1 %vm62_vm1, %v1809_v24  ;;  %3386 = vmatpush3.bf16.msra.mxu1 %v2079_v9 }
 0x17e   :  { %3413 = vmatprep.subr.bf16.mxu1 %v3555_v51 }
 0x184   :  { %3368 = vmatmul.mubr.msk.bf16.gmra.mxu1 %vm62_vm1, %v1812_v26 }
 0x185   :  { %3387 = vmatprep.mubr.msk.bf16.mxu1 %vm3556_vm3, %v3555_v51 }
 0x1b5   :  { %v626_v27 = vpop.f32.mrf.mxu0 }
 0x1b6   :  { %v648_v31 = vadd.f32 %v3866_v29, %v626_v27 }
 0x1b7   :  { %v3209_v28 = vpop.f32.mrf.mxu0 }
 0x1b9   :  { %v629_v30 = vpop.f32.mrf.mxu0 }
 0x1ba   :  { %v649_v37 = vadd.f32 %v3866_v29, %v629_v30 }
 0x1bb   :  { %v3210_v32 = vpop.f32.mrf.mxu0 }
 0x1bc   :  { %v721_v33 = vpop.f32.mrf.mxu1 }
 0x1bd   :  { %v3869_v34 = vadd.f32 %v721_v33, %v648_v31  ;;  %v634_v35 = vpop.f32.mrf.mxu0 }
 0x1be   :  { %v3223_v36 = vpop.f32.mrf.mxu1  ;;  %v650_v43 = vadd.f32 %v3866_v29, %v634_v35 }
 0x1bf   :  { %v3213_v38 = vpop.f32.mrf.mxu0 }
 0x1c0   :  { %v724_v39 = vpop.f32.mrf.mxu1 }
 0x1c1   :  { %v3872_v40 = vadd.f32 %v724_v39, %v649_v37  ;;  %v637_v41 = vpop.f32.mrf.mxu0 }
 0x1c2   :  { %v3224_v42 = vpop.f32.mrf.mxu1  ;;  %v651_v49 = vadd.f32 %v3866_v29, %v637_v41 }
 0x1c3   :  { %v3214_v44 = vpop.f32.mrf.mxu0 }
 0x1c4   :  { %v729_v45 = vpop.f32.mrf.mxu1 }
 0x1c5   :  { %v3875_v46 = vadd.f32 %v729_v45, %v650_v43  ;;  %v642_v47 = vpop.f32.mrf.mxu0 }
 0x1c6   :  { %v3227_v48 = vpop.f32.mrf.mxu1  ;;  %v652_v56 = vadd.f32 %v3866_v29, %v642_v47 }
 0x1c7   :  { %v3217_v50 = vpop.f32.mrf.mxu0 }
 0x1c8   :  { %v732_v52 = vpop.f32.mrf.mxu1 }
 0x1c9   :  { %v3878_v53 = vadd.f32 %v732_v52, %v651_v49  ;;  %v645_v54 = vpop.f32.mrf.mxu0 }
 0x1ca   :  { %v3228_v55 = vpop.f32.mrf.mxu1 }
 0x1cb   :  { %v3218_v57 = vpop.f32.mrf.mxu0 }
 0x1cc   :  { %v737_v59 = vpop.f32.mrf.mxu1 }
 0x1cd   :  { %v3884_v61 = vadd.f32 %v737_v59, %v652_v56  ;;  %v3886_v62 = vpop.f32.mrf.mxu0 }
 0x1ce   :  { %v3231_v0 = vpop.f32.mrf.mxu1 }
 0x1cf   :  { %v3237_v1 = vpop.f32.mrf.mxu0 }
 0x1d0   :  { %v740_v2 = vpop.f32.mrf.mxu1 }
 0x1d1   :  { %v3890_v3 = vpop.f32.mrf.mxu0 }
 0x1d2   :  { %v3232_v4 = vpop.f32.mrf.mxu1 }
 0x1d3   :  { %v3238_v5 = vpop.f32.mrf.mxu0 }
 0x1d4   :  { %v903_v6 = vpop.f32.mrf.mxu1 }
 0x1d5   :  { %v3895_v8 = vpop.f32.mrf.mxu0 }
 0x1d6   :  { %v3251_v10 = vpop.f32.mrf.mxu1 }
 0x1d7   :  { %v3241_v11 = vpop.f32.mrf.mxu0  ;;  %v832_v10 = vadd.f32 %v3886_v62, %v3869_v34 }
 0x1d8   :  { %v906_v12 = vpop.f32.mrf.mxu1 }
 0x1d9   :  { %v3899_v13 = vpop.f32.mrf.mxu0 }
 0x1da   :  { %v3252_v14 = vpop.f32.mrf.mxu1 }
 0x1db   :  { %v3242_v15 = vpop.f32.mrf.mxu0 }
 0x1dc   :  { %v3901_v16 = vpop.f32.mrf.mxu1  ;;  %v925_v15 = vadd.f32 %v903_v6, %v832_v10 }
 0x1dd   :  { %v3903_v17 = vpop.f32.mrf.mxu0 }
 0x1de   :  { %v3255_v18 = vpop.f32.mrf.mxu1 }
 0x1df   :  { %v3245_v19 = vpop.f32.mrf.mxu0 }
 0x1e0   :  { %v3905_v20 = vpop.f32.mrf.mxu1 }
 0x1e1   :  { %v829_v21 = vpop.f32.mrf.mxu0 }
 0x1e2   :  { %v3256_v22 = vpop.f32.mrf.mxu1  ;;  %v833_v21 = vadd.f32 %v3890_v3, %v3872_v40  ;;  %v835_v3 = vadd.f32 %v3899_v13, %v3878_v53 }
 0x1e3   :  { %v3246_v23 = vpop.f32.mrf.mxu0 }
 0x1e4   :  { %v3907_v24 = vpop.f32.mrf.mxu1 }
 0x1e5   :  { %v998_v25 = vpop.f32.mrf.mxu0 }
 0x1e6   :  { %v3259_v26 = vpop.f32.mrf.mxu1  ;;  %v1020_v22 = vadd.f32 %v998_v25, %v925_v15 }
 0x1e7   :  { %v3265_v27 = vpop.f32.mrf.mxu0 }
 0x1e8   :  { %v922_v28 = vpop.f32.mrf.mxu1  ;;  %v926_v27 = vadd.f32 %v906_v12, %v833_v21 }
 0x1e9   :  { %v1001_v30 = vpop.f32.mrf.mxu0 }
 0x1ea   :  { %v3260_v31 = vpop.f32.mrf.mxu1 }
 0x1eb   :  { %v3266_v32 = vpop.f32.mrf.mxu0 }
 0x1ec   :  { %v1086_v33 = vpop.f32.mrf.mxu1 }
 0x1ed   :  { %v1006_v35 = vpop.f32.mrf.mxu0  ;;  %v1108_v28 = vadd.f32 %v1086_v33, %v1020_v22 }
 0x1ee   :  { %v3279_v36 = vpop.f32.mrf.mxu1 }
 0x1ef   :  { %v3269_v37 = vpop.f32.mrf.mxu0  ;;  %v834_v36 = vadd.f32 %v3895_v8, %v3875_v46  ;;  %v928_v46 = vadd.f32 %v3905_v20, %v835_v3 }
 0x1f0   :  { %v1089_v38 = vpop.f32.mrf.mxu1  ;;  %v1021_v37 = vadd.f32 %v1001_v30, %v926_v27 }
 0x1f1   :  { %v3909_v39 = vpop.f32.mrf.mxu0  ;;  %v927_v6 = vadd.f32 %v3901_v16, %v834_v36  ;;  %v836_v16 = vadd.f32 %v3903_v17, %v3884_v61 }
 0x1f2   :  { %v3280_v41 = vpop.f32.mrf.mxu1 }
 0x1f3   :  { %v3270_v42 = vpop.f32.mrf.mxu0  ;;  %v1022_v12 = vadd.f32 %v1006_v35, %v927_v6 }
 0x1f4   :  { %v1094_v43 = vpop.f32.mrf.mxu1  ;;  %v1109_v42 = vadd.f32 %v1089_v38, %v1021_v37  ;;  %v1422_v37 = vld [vmem:[%s4171_s5 + $0x10] sm:$0x7] }
 0x1f5   :  { %v3911_v44 = vpop.f32.mrf.mxu0  ;;  %v1110_v8 = vadd.f32 %v1094_v43, %v1022_v12 }
 0x1f6   :  { %v3283_v45 = vpop.f32.mrf.mxu1 }
 0x1f7   :  { %v3273_v47 = vpop.f32.mrf.mxu0 }
 0x1f8   :  { %v3913_v48 = vpop.f32.mrf.mxu1 }
 0x1f9   :  { %v1017_v49 = vpop.f32.mrf.mxu0 }
 0x1fa   :  { %v3284_v50 = vpop.f32.mrf.mxu1 }
 0x1fb   :  { %v3274_v52 = vpop.f32.mrf.mxu0 }
 0x1fc   :  { %v3915_v54 = vpop.f32.mrf.mxu1 }
 0x1fd   :  { %v1179_v55 = vpop.f32.mrf.mxu0 }
 0x1fe   :  { %v3287_v56 = vpop.f32.mrf.mxu1  ;;  %v1201_v34 = vadd.f32 %v1179_v55, %v1108_v28 }
 0x1ff   :  { %v3293_v57 = vpop.f32.mrf.mxu0  ;;  %v1023_v56 = vadd.f32 %v3909_v39, %v928_v46 }
 0x200   :  { %v1105_v59 = vpop.f32.mrf.mxu1 }
 0x201   :  { %v1182_v60 = vpop.f32.mrf.mxu0 }
 0x202   :  { %v3288_v63 = vpop.f32.mrf.mxu1  ;;  %v1202_v25 = vadd.f32 %v1182_v60, %v1109_v42  ;;  %v929_v60 = vadd.f32 %v3907_v24, %v836_v16 }
 0x203   :  { %v3294_v0 = vpop.f32.mrf.mxu0  ;;  %v1111_v63 = vadd.f32 %v3913_v48, %v1023_v56 }
 0x204   :  { %v1274_v1 = vpop.f32.mrf.mxu1  ;;  %v1024_v39 = vadd.f32 %v3911_v44, %v929_v60 }
 0x205   :  { %v1187_v2 = vpop.f32.mrf.mxu0  ;;  %v1296_v45 = vadd.f32 %v1274_v1, %v1201_v34 }
 0x206   :  { %v3307_v4 = vpop.f32.mrf.mxu1  ;;  %v1203_v57 = vadd.f32 %v1187_v2, %v1110_v8  ;;  %v1112_v24 = vadd.f32 %v3915_v54, %v1024_v39 }
 0x207   :  { %v3297_v5 = vpop.f32.mrf.mxu0 }
 0x208   :  { %v1277_v7 = vpop.f32.mrf.mxu1 }
 0x209   :  { %v1190_v9 = vpop.f32.mrf.mxu0  ;;  %v1297_v30 = vadd.f32 %v1277_v7, %v1202_v25 }
 0x20a   :  { %v3308_v11 = vpop.f32.mrf.mxu1  ;;  %v1204_v0 = vadd.f32 %v1190_v9, %v1111_v63 }
 0x20b   :  { %v3298_v14 = vpop.f32.mrf.mxu0 }
 0x20c   :  { %v1282_v18 = vpop.f32.mrf.mxu1 }
 0x20d   :  { %v1195_v19 = vpop.f32.mrf.mxu0  ;;  %v1298_v20 = vadd.f32 %v1282_v18, %v1203_v57 }
 0x20e   :  { %v3311_v23 = vpop.f32.mrf.mxu1  ;;  %v1205_v14 = vadd.f32 %v1195_v19, %v1112_v24 }
 0x20f   :  { %v3301_v26 = vpop.f32.mrf.mxu0 }
 0x210   :  { %v1285_v31 = vpop.f32.mrf.mxu1 }
 0x211   :  { %v1198_v32 = vpop.f32.mrf.mxu0  ;;  %v1299_v7 = vadd.f32 %v1285_v31, %v1204_v0 }
 0x212   :  { %v3312_v62 = vpop.f32.mrf.mxu1 }
 0x213   :  { %v3302_v41 = vpop.f32.mrf.mxu0 }
 0x214   :  { %v1290_v47 = vpop.f32.mrf.mxu1 }
 0x215   :  { %v1362_v40 = vpop.f32.mrf.mxu0  ;;  %v1300_v21 = vadd.f32 %v1290_v47, %v1205_v14 }
 0x216   :  { %v1384_v33 = vadd.f32 %v1362_v40, %v1296_v45  ;;  %v3315_v49 = vpop.f32.mrf.mxu1 }
 0x217   :  { %v3321_v50 = vpop.f32.mrf.mxu0 }
 0x218   :  { %v1389_v52 = vmax.f32 %v1384_v33, 0.0  ;;  %v1293_v55 = vpop.f32.mrf.mxu1  ;;  %v2911_v33 = vld [vmem:[%s4169_s2] ss:$0 sm:$0xff] }
 0x219   :  { %v1365_v38 = vpop.f32.mrf.mxu0 }
 0x21a   :  { %v3036_v59 = vpack.c.bf16 %v1389_v52, %v1389_v52  ;;  %v1385_v53 = vadd.f32 %v1365_v38, %v1297_v30  ;;  %v3316_v13 = vpop.f32.mrf.mxu1 }
 0x21b   :  { %v3322_v35 = vpop.f32.mrf.mxu0 }
 0x21c   :  { %1415 = vst.msk [vmem:[%s4171_s5] sm:$0xf] %vm538_vm4, %v3036_v59  ;;  %v1390_v43 = vmax.f32 %v1385_v53, 0.0  ;;  %v3335_v61 = vpop.f32.mrf.mxu1 }
 0x21d   :  { %v1370_v17 = vpop.f32.mrf.mxu0  ;;  %v1545_v8 = vadd.f32 %v3335_v61, %v2911_v33 }
 0x21e   :  { %v3037_v1 = vpack.c.bf16 %v1390_v43, %v1390_v43  ;;  %v1386_v2 = vadd.f32 %v1370_v17, %v1298_v20  ;;  %v1513_v4 = vpop.f32.mrf.mxu1 }
 0x21f   :  { %v3325_v5 = vpop.f32.mrf.mxu0  ;;  %v1543_v55 = vadd.f32 %v2911_v33, %v1513_v4 }
 0x220   :  { %1416 = vst.msk [vmem:[%s4171_s5 + $0x4] sm:$0xf] %vm538_vm4, %v3037_v1  ;;  %v1391_v48 = vmax.f32 %v1386_v2, 0.0  ;;  %v3336_v10 = vpop.f32.mrf.mxu1 }
 0x221   :  { %v1373_v11 = vpop.f32.mrf.mxu0  ;;  %v1546_v57 = vadd.f32 %v3336_v10, %v2911_v33 }
 0x222   :  { %v3038_v15 = vpack.c.bf16 %v1391_v48, %v1391_v48  ;;  %v1387_v18 = vadd.f32 %v1373_v11, %v1299_v7  ;;  %v1516_v44 = vpop.f32.mrf.mxu1 }
 0x223   :  { %v3326_v9 = vpop.f32.mrf.mxu0  ;;  %v1544_v35 = vadd.f32 %v2911_v33, %v1516_v44 }
 0x224   :  { %1417 = vst.msk [vmem:[%s4171_s5 + $0x8] sm:$0xf] %vm538_vm4, %v3038_v15  ;;  %v1392_v54 = vmax.f32 %v1387_v18, 0.0  ;;  %v3339_v22 = vpop.f32.mrf.mxu1 }
 0x225   :  { %v1378_v23 = vpop.f32.mrf.mxu0  ;;  %v1549_v43 = vadd.f32 %v3339_v22, %v2911_v33 }
 0x226   :  { %v3039_v26 = vpack.c.bf16 %v1392_v54, %v1392_v54  ;;  %v1388_v27 = vadd.f32 %v1378_v23, %v1300_v21  ;;  %v1529_v28 = vpop.f32.mrf.mxu1 }
 0x227   :  { %v3329_v31 = vpop.f32.mrf.mxu0  ;;  %v1547_v1 = vadd.f32 %v2911_v33, %v1529_v28 }
 0x228   :  { %1418 = vst.msk [vmem:[%s4171_s5 + $0xc] sm:$0xf] %vm538_vm4, %v3039_v26  ;;  %v1393_v19 = vmax.f32 %v1388_v27, 0.0  ;;  %v3340_v32 = vpop.f32.mrf.mxu1 }
 0x229   :  { %v1381_v34 = vpop.f32.mrf.mxu0 }
 0x22a   :  { %v3040_v62 = vpack.c.bf16 %v1393_v19, %v1393_v19  ;;  %v1532_v41 = vpop.f32.mrf.mxu1 }
 0x22b   :  { %v3330_v6 = vpop.f32.mrf.mxu0  ;;  %v1548_v18 = vadd.f32 %v2911_v33, %v1532_v41 }
 0x22c   :  { %v1423_v42 = vsel %vm3950_vm11, %v3040_v62, %v1422_v37  ;;  %v3345_v45 = vpop.f32.mrf.mxu1  ;;  %v1945_v6 = vld [vmem:[#allocation2 + $0x34] sm:$0xf] }
 0x22d   :  { %1424 = vst [vmem:[%s4171_s5 + $0x10] sm:$0x7] %v1423_v42  ;;  %v3355_v47 = vpop.f32.mrf.mxu0  ;;  %v1663_v16 = vadd.f32 %v3345_v45, %v1545_v8 }
 0x22e   :  { %v1631_v40 = vpop.f32.mrf.mxu1 }
 0x22f   :  { %v1747_v3 = vpop.f32.mrf.mxu0  ;;  %v1661_v59 = vadd.f32 %v1631_v40, %v1543_v55  ;;  %v1779_v60 = vadd.f32 %v3355_v47, %v1663_v16 }
 0x230   :  { %v3346_v12 = vpop.f32.mrf.mxu1 }
 0x231   :  { %v3356_v25 = vpop.f32.mrf.mxu0  ;;  %v1664_v63 = vadd.f32 %v3346_v12, %v1546_v57  ;;  %v1777_v17 = vadd.f32 %v1747_v3, %v1661_v59 }
 0x232   :  { %v1634_v49 = vpop.f32.mrf.mxu1 }
 0x233   :  { %v1750_v50 = vpop.f32.mrf.mxu0  ;;  %v1662_v39 = vadd.f32 %v1634_v49, %v1544_v35  ;;  %v1780_v2 = vadd.f32 %v3356_v25, %v1664_v63 }
 0x234   :  { %v3349_v46 = vpop.f32.mrf.mxu1 }
 0x235   :  { %v3359_v30 = vpop.f32.mrf.mxu0  ;;  %v1667_v5 = vadd.f32 %v3349_v46, %v1549_v43  ;;  %v1778_v10 = vadd.f32 %v1750_v50, %v1662_v39  ;;  %v2978_v50 = vld [vmem:[%s4168_s3 + $0x8] sm:$0xf] }
 0x236   :  { %v1647_v52 = vpop.f32.mrf.mxu1  ;;  %v2166_v58 = vsel %vm588_vm2, %v2978_v50, 0 }
 0x237   :  { %v1763_v38 = vpop.f32.mrf.mxu0  ;;  %v1665_v7 = vadd.f32 %v1647_v52, %v1547_v1  ;;  %v1783_v9 = vadd.f32 %v3359_v30, %v1667_v5 }
 0x238   :  { %v3350_v56 = vpop.f32.mrf.mxu1 }
 0x239   :  { %v3360_v53 = vpop.f32.mrf.mxu0  ;;  %v1781_v23 = vadd.f32 %v1763_v38, %v1665_v7 }
 0x23a   :  { %v1650_v13 = vpop.f32.mrf.mxu1  ;;  %v2984_v53 = vld [vmem:[%s4168_s3 + $0xc] sm:$0xf] }
 0x23b   :  { %v1666_v27 = vadd.f32 %v1650_v13, %v1548_v18  ;;  %v1766_v32 = vpop.f32.mrf.mxu0  ;;  %v2995_v18 = vld [vmem:[%s4168_s3 + $0x14] sm:$0xf] }
 0x23c   :  { %v3365_v20 = vpop.f32.mrf.mxu1 }
 0x23d   :  { %v1897_v0 = vadd.f32 %v3365_v20, %v1779_v60  ;;  %v1782_v45 = vadd.f32 %v1766_v32, %v1666_v27  ;;  %v2258_v20 = vsel %vm588_vm2, %v2984_v53, 0 }
 0x23e   :  { %v1865_v61 = vpop.f32.mrf.mxu1 }
 0x23f   :  { %v1904_v4 = vmax.f32 %v1897_v0, 0.0  ;;  %v1895_v24 = vadd.f32 %v1865_v61, %v1777_v17 }
 0x240   :  { %v3366_v48 = vpop.f32.mrf.mxu1 }
 0x241   :  { %v3043_v11 = vpack.c.bf16 %v1904_v4, %v1904_v4  ;;  %v1902_v14 = vmax.f32 %v1895_v24, 0.0  ;;  %v1898_v15 = vadd.f32 %v3366_v48, %v1780_v2  ;;  %v2991_v4 = vld [vmem:[%s4168_s3 + $0x10] sm:$0xf] }
 0x242   :  { %v1868_v44 = vpop.f32.mrf.mxu1  ;;  %v2352_v48 = vsel %vm588_vm2, %v2991_v4, 0 }
 0x243   :  { %1941 = vst.msk [vmem:[#allocation2 + $0x24] sm:$0xf] %vm538_vm4, %v3043_v11  ;;  %v3041_v21 = vpack.c.bf16 %v1902_v14, %v1902_v14  ;;  %v1905_v54 = vmax.f32 %v1898_v15, 0.0  ;;  %v1896_v22 = vadd.f32 %v1868_v44, %v1778_v10 }
 0x244   :  { %v3369_v26 = vpop.f32.mrf.mxu1 }
 0x245   :  { %1939 = vst.msk [vmem:[#allocation2 + $0x1c] sm:$0xf] %vm538_vm4, %v3041_v21  ;;  %v3044_v28 = vpack.c.bf16 %v1905_v54, %v1905_v54  ;;  %v1903_v31 = vmax.f32 %v1896_v22, 0.0  ;;  %v1901_v19 = vadd.f32 %v3369_v26, %v1783_v9  ;;  %v2439_v21 = vsel %vm588_vm2, %v2995_v18, 0 }
 0x246   :  { %v1881_v37 = vpop.f32.mrf.mxu1 }
 0x247   :  { %1942 = vst.msk [vmem:[#allocation2 + $0x28] sm:$0xf] %vm538_vm4, %v3044_v28  ;;  %v3042_v34 = vpack.c.bf16 %v1903_v31, %v1903_v31  ;;  %v1908_v62 = vmax.f32 %v1901_v19, 0.0  ;;  %v1899_v41 = vadd.f32 %v1881_v37, %v1781_v23  ;;  %v3001_v37 = vld [vmem:[%s4168_s3 + $0x18] sm:$0xf] }
 0x248   :  { %v3370_v42 = vpop.f32.mrf.mxu1 }
 0x249   :  { %1940 = vst.msk [vmem:[#allocation2 + $0x20] sm:$0xf] %vm538_vm4, %v3042_v34  ;;  %v3047_v47 = vpack.c.bf16 %v1908_v62, %v1908_v62  ;;  %v1906_v40 = vmax.f32 %v1899_v41, 0.0  ;;  %v2531_v62 = vsel %vm588_vm2, %v3001_v37, 0 }
 0x24a   :  { %v1884_v3 = vpop.f32.mrf.mxu1  ;;  %v2230_v44 = vld [vmem:[#allocation2 + $0x24] sm:$0xf] }
 0x24b   :  { %v1946_v12 = vsel %vm3668_vm6, %v3047_v47, %v1945_v6  ;;  %v3045_v25 = vpack.c.bf16 %v1906_v40, %v1906_v40  ;;  %v1900_v33 = vadd.f32 %v1884_v3, %v1782_v45  ;;  %v3008_v3 = vld [vmem:[%s4168_s3 + $0x1c] sm:$0xf] }
 0x24c   :  { %1947 = vst [vmem:[#allocation2 + $0x34] sm:$0xf] %v1946_v12  ;;  %v1956_v30 = vld [vmem:[#allocation2 + $0x1c] sm:$0xf]  ;;  %v2625_v50 = vsel %vm588_vm2, %v3008_v3, 0 }
 0x24d   :  { %1943 = vst.msk [vmem:[#allocation2 + $0x2c] sm:$0xf] %vm538_vm4, %v3045_v25  ;;  %v1907_v49 = vmax.f32 %v1900_v33, 0.0  ;;  %v2142_v1 = vld [vmem:[#allocation2 + $0x1c] sm:$0xe] }
 0x24e   :  { %v3541_v8 = vld [vmem:[#allocation2 + $0x24] sm:$0xff]  }
 0x24f   :  { %v3046_v46 = vpack.c.bf16 %v1907_v49, %v1907_v49  ;;  %v2055_v38 = vshll.u32 %v3541_v8, 16  ;;  %v2059_v43 = vshrl.u32 %v3541_v8, 16  ;;  %v2152_v7 = vrot.slane %v3541_v8, 1 }
 0x250   :  { %v1957_v52 = vld [vmem:[#allocation2 + $0x20] sm:$0xf] }
 0x251   :  { %1944 = vst.msk [vmem:[#allocation2 + $0x30] sm:$0xf] %vm538_vm4, %v3046_v46  ;;  %v2968_v55 = vcombine.low %v1956_v30, %v1957_v52  ;;  %v2057_v35 = vrot.slane %v2055_v38, 1  ;;  %v2979_v61 = vcombine.low %v2142_v1, %v1957_v52  ;;  %v2229_v14 = vld [vmem:[#allocation2 + $0x20] sm:$0xf] }
 0x252   :  { %v2985_v9 = vcombine.low %v2229_v14, %v2230_v44  ;;  %v2415_v34 = vld [vmem:[#allocation2 + $0x20] sm:$0xe]  ;;  %v2503_v52 = vld [vmem:[#allocation2 + $0x28] sm:$0xf] }
 0x253   :  { %3374 = vmatmul.mubr.msk.bf16.vlgmr.msra.gmra.mxu0 %vm578_vm7, %v2968_v55  ;;  %v2051_v16 = vshll.u32 %v2968_v55, 16  ;;  %v2049_v56 = vshrl.u32 %v2968_v55, 16  ;;  %v2061_v39 = vor.u32 %v2059_v43, %v2057_v35  ;;  %v2151_v5 = vrot.slane %v2979_v61, 1  ;;  %v3552_v43 = vld [vmem:[#allocation2 + $0x34] ss:$0 sps:$4 sm:$0x77]  }
 0x254   :  { %3400 = vmatpush3.bf16.msra.mxu0 %v2166_v58  ;;  %3377 = vmatprep.mubr.msk.bf16.mxu0 %vm3556_vm3, %v3555_v51  ;;  %v3542_v59 = vld [vmem:[#allocation2 + $0x2c] ss:$0 sps:$4 sm:$0x77]   ;;  %v2324_v23 = vshll.u32 %v2985_v9, 16  ;;  %v2322_v28 = vshrl.u32 %v2985_v9, 16  ;;  %v2996_v42 = vcombine.low %v2415_v34, %v2230_v44 }
 0x255   :  { %v2053_v57 = vrot.slane %v2051_v16, 1  ;;  %3427 = vmatprep.subr.bf16.mxu0 %v3555_v51  ;;  %v2062_v63 = vshll.u32 %v3542_v59, 16  ;;  %v2066_v2 = vshrl.u32 %v3542_v59, 16  ;;  %v2153_v10 = vsel %vm758_vm8, %v2151_v5, %v2152_v7  ;;  %v3545_v11 = vld [vmem:[#allocation2 + $0x2c] ss:$0 sps:$4 sm:$0xff]  }
 0x256   :  { %v2154_v15 = vrot.slane %v3545_v11, 1  ;;  %v3546_v22 = vld [vmem:[#allocation2 + $0x28] sm:$0xff]   ;;  %v2326_v26 = vrot.slane %v2324_v23, 1  ;;  %v2424_v12 = vrot.slane %v2996_v42, 1  ;;  %v2502_v16 = vld [vmem:[#allocation2 + $0x24] sm:$0xf] }
 0x257   :  { %v2054_v13 = vor.u32 %v2053_v57, %v2049_v56  ;;  %v2064_v17 = vrot.slane %v2062_v63, 1  ;;  %v2328_v27 = vshll.u32 %v3546_v22, 16  ;;  %v2425_v45 = vrot.slane %v3546_v22, 1  ;;  %v3012_v57 = vld [vmem:[%s4168_s3 + $0x20] sm:$0xf] }
 0x258   :  { %v2155_v54 = vsel %vm758_vm8, %v2152_v7, %v2154_v15  ;;  %v3547_v31 = vld [vmem:[#allocation2 + $0x30] ss:$0 sps:$4 sm:$0x77]   ;;  %v2327_v19 = vor.u32 %v2326_v26, %v2322_v28  ;;  %v2332_v47 = vshrl.u32 %v3546_v22, 16  ;;  %v3002_v38 = vcombine.low %v2502_v16, %v2503_v52  ;;  %v2688_v5 = vld [vmem:[#allocation2 + $0x24] sm:$0xe] }
 0x259   :  { %v2058_v60 = vsel %vm149_vm0, %v2054_v13, %v2057_v35  ;;  %v2065_v0 = vsel %vm149_vm0, %v2061_v39, %v2064_v17  ;;  %v2068_v24 = vor.u32 %v2066_v2, %v2064_v17  ;;  %v2330_v32 = vrot.slane %v2328_v27, 1  ;;  %v3549_v49 = vld [vmem:[#allocation2 + $0x30] ss:$0 sps:$4 sm:$0xff]   ;;  %v3554_v14 = vld [vmem:[#allocation2 + $0x34] ss:$0 sps:$4 sm:$0xff]  }
 0x25a   :  { %3388 = vmatmul.mubr.msk.bf16.vlgmr.msra.gmra.mxu1 %vm578_vm7, %v2058_v60  ;;  %v2335_v6 = vshll.u32 %v3547_v31, 16  ;;  %v2426_v33 = vsel %vm758_vm8, %v2424_v12, %v2425_v45  ;;  %v2339_v30 = vshrl.u32 %v3547_v31, 16  ;;  %v3551_v56 = vld [vmem:[#allocation2 + $0x2c] sm:$0xff]   ;;  %v2712_v53 = vsel %vm588_vm2, %v3012_v57, 0 }
 0x25b   :  { %3378 = vmatmul.mubr.msk.bf16.gmra.mxu0 %vm578_vm7, %v3541_v8  ;;  %3391 = vmatprep.mubr.msk.bf16.mxu1 %vm3556_vm3, %v3555_v51  ;;  %v2331_v41 = vsel %vm149_vm0, %v2327_v19, %v2330_v32  ;;  %v2334_v25 = vor.u32 %v2332_v47, %v2330_v32  ;;  %v2427_v8 = vrot.slane %v3549_v49, 1  ;;  %v2601_v13 = vshll.u32 %v3551_v56, 16 }
 0x25c   :  { %3381 = vmatprep.mubr.msk.bf16.mxu0 %vm3556_vm3, %v3555_v51  ;;  %3414 = vmatpush3.bf16.msra.mxu1 %v2258_v20  ;;  %v2337_v40 = vrot.slane %v2335_v6, 1  ;;  %v2595_v60 = vshrl.u32 %v3002_v38, 16  ;;  %v2605_v39 = vshrl.u32 %v3551_v56, 16  ;;  %v3013_v4 = vcombine.low %v2688_v5, %v2503_v52 }
 0x25d   :  { %3441 = vmatprep.subr.bf16.mxu1 %v3555_v51  ;;  %v2428_v58 = vsel %vm758_vm8, %v2425_v45, %v2427_v8  ;;  %v2603_v63 = vrot.slane %v2601_v13, 1  ;;  %v2698_v7 = vrot.slane %v3551_v56, 1 }
 0x25e   :  { %v2338_v46 = vsel %vm149_vm0, %v2334_v25, %v2337_v40  ;;  %v2341_v55 = vor.u32 %v2339_v30, %v2337_v40 }
 0x25f   :  { %v2607_v1 = vor.u32 %v2605_v39, %v2603_v63 }
 0x262   :  { %3392 = vmatmul.mubr.msk.bf16.gmra.mxu1 %vm578_vm7, %v2065_v0  ;;  %v2608_v0 = vshll.u32 %v3552_v43, 16 }
 0x263   :  { %3382 = vmatmul.mubr.msk.bf16.gmra.mxu0 %vm578_vm7, %v3542_v59  ;;  %3395 = vmatprep.mubr.msk.bf16.mxu1 %vm3556_vm3, %v3555_v51  ;;  %v2597_v59 = vshll.u32 %v3002_v38, 16 }
 0x264   :  { %3401 = vmatprep.mubr.msk.bf16.mxu0 %vm3556_vm3, %v3555_v51  ;;  %v2610_v61 = vrot.slane %v2608_v0, 1 }
 0x265   :  { %v2599_v35 = vrot.slane %v2597_v59, 1 }
 0x266   :  { %v2611_v2 = vsel %vm149_vm0, %v2607_v1, %v2610_v61 }
 0x267   :  { %v2600_v20 = vor.u32 %v2599_v35, %v2595_v60 }
 0x269   :  { %v2604_v17 = vsel %vm149_vm0, %v2600_v20, %v2603_v63 }
 0x26a   :  { %3396 = vmatmul.mubr.msk.bf16.gmra.mxu1 %vm578_vm7, %v2068_v24  ;;  %v2612_v24 = vshrl.u32 %v3552_v43, 16 }
 0x26b   :  { %3402 = vmatmul.mubr.msk.bf16.vlgmr.msra.gmra.mxu0 %vm578_vm7, %v2153_v10  ;;  %3415 = vmatprep.mubr.msk.bf16.mxu1 %vm3556_vm3, %v3555_v51  ;;  %v2697_v10 = vrot.slane %v3013_v4, 1 }
 0x26c   :  { %3428 = vmatpush3.bf16.msra.mxu0 %v2352_v48  ;;  %3405 = vmatprep.mubr.msk.bf16.mxu0 %vm3556_vm3, %v3555_v51  ;;  %v2614_v48 = vor.u32 %v2612_v24, %v2610_v61 }
 0x26d   :  { %3455 = vmatprep.subr.bf16.mxu0 %v3555_v51  ;;  %v2699_v11 = vsel %vm758_vm8, %v2697_v10, %v2698_v7 }
 0x272   :  { %3416 = vmatmul.mubr.msk.bf16.vlgmr.msra.gmra.mxu1 %vm578_vm7, %v2985_v9 }
 0x273   :  { %3406 = vmatmul.mubr.msk.bf16.gmra.mxu0 %vm578_vm7, %v2155_v54  ;;  %3419 = vmatprep.mubr.msk.bf16.mxu1 %vm3556_vm3, %v3555_v51 }
 0x274   :  { %3409 = vmatprep.mubr.msk.bf16.mxu0 %vm3556_vm3, %v3555_v51  ;;  %3442 = vmatpush3.bf16.msra.mxu1 %v2439_v21 }
 0x275   :  { %3469 = vmatprep.subr.bf16.mxu1 %v3555_v51 }
 0x27a   :  { %3420 = vmatmul.mubr.msk.bf16.gmra.mxu1 %vm578_vm7, %v3546_v22 }
 0x27b   :  { %3410 = vmatmul.mubr.msk.bf16.gmra.mxu0 %vm578_vm7, %v2154_v15  ;;  %3423 = vmatprep.mubr.msk.bf16.mxu1 %vm3556_vm3, %v3555_v51  ;;  %v2700_v15 = vrot.slane %v3554_v14, 1 }
 0x27c   :  { %3429 = vmatprep.mubr.msk.bf16.mxu0 %vm3556_vm3, %v3555_v51 }
 0x27d   :  { %v2701_v18 = vsel %vm758_vm8, %v2698_v7, %v2700_v15 }
 0x282   :  { %3424 = vmatmul.mubr.msk.bf16.gmra.mxu1 %vm578_vm7, %v3547_v31 }
 0x283   :  { %3430 = vmatmul.mubr.msk.bf16.vlgmr.msra.gmra.mxu0 %vm578_vm7, %v2331_v41  ;;  %3443 = vmatprep.mubr.msk.bf16.mxu1 %vm3556_vm3, %v3555_v51 }
 0x284   :  { %3456 = vmatpush3.bf16.msra.mxu0 %v2531_v62  ;;  %3433 = vmatprep.mubr.msk.bf16.mxu0 %vm3556_vm3, %v3555_v51 }
 0x285   :  { %3483 = vmatprep.subr.bf16.mxu0 %v3555_v51 }
 0x28a   :  { %3444 = vmatmul.mubr.msk.bf16.vlgmr.msra.gmra.mxu1 %vm578_vm7, %v2426_v33 }
 0x28b   :  { %3434 = vmatmul.mubr.msk.bf16.gmra.mxu0 %vm578_vm7, %v2338_v46  ;;  %3447 = vmatprep.mubr.msk.bf16.mxu1 %vm3556_vm3, %v3555_v51 }
 0x28c   :  { %3437 = vmatprep.mubr.msk.bf16.mxu0 %vm3556_vm3, %v3555_v51  ;;  %3470 = vmatpush3.bf16.msra.mxu1 %v2625_v50 }
 0x292   :  { %3448 = vmatmul.mubr.msk.bf16.gmra.mxu1 %vm578_vm7, %v2428_v58 }
 0x293   :  { %3438 = vmatmul.mubr.msk.bf16.gmra.mxu0 %vm578_vm7, %v2341_v55  ;;  %3451 = vmatprep.mubr.msk.bf16.mxu1 %vm3556_vm3, %v3555_v51 }
 0x294   :  { %3457 = vmatprep.mubr.msk.bf16.mxu0 %vm3556_vm3, %v3555_v51 }
 0x29a   :  { %3452 = vmatmul.mubr.msk.bf16.gmra.mxu1 %vm578_vm7, %v2427_v8 }
 0x29b   :  { %3458 = vmatmul.mubr.msk.bf16.vlgmr.msra.gmra.mxu0 %vm578_vm7, %v3002_v38  ;;  %3471 = vmatprep.mubr.msk.bf16.mxu1 %vm3556_vm3, %v3555_v51 }
 0x29c   :  { %3484 = vmatpush3.bf16.msra.mxu0 %v2712_v53  ;;  %3461 = vmatprep.mubr.msk.bf16.mxu0 %vm3556_vm3, %v3555_v51 }
 0x2a2   :  { %3472 = vmatmul.mubr.msk.bf16.vlgmr.msra.gmra.mxu1 %vm578_vm7, %v2604_v17 }
 0x2a3   :  { %3462 = vmatmul.mubr.msk.bf16.gmra.mxu0 %vm578_vm7, %v3551_v56  ;;  %3475 = vmatprep.mubr.msk.bf16.mxu1 %vm3556_vm3, %v3555_v51 }
 0x2a4   :  { %3465 = vmatprep.mubr.msk.bf16.mxu0 %vm3556_vm3, %v3555_v51 }
 0x2aa   :  { %3476 = vmatmul.mubr.msk.bf16.gmra.mxu1 %vm578_vm7, %v2611_v2 }
 0x2ab   :  { %3466 = vmatmul.mubr.msk.bf16.gmra.mxu0 %vm578_vm7, %v3552_v43  ;;  %3479 = vmatprep.mubr.msk.bf16.mxu1 %vm3556_vm3, %v3555_v51 }
 0x2ac   :  { %3485 = vmatprep.mubr.msk.bf16.mxu0 %vm3556_vm3, %v3555_v51 }
 0x2b2   :  { %3480 = vmatmul.mubr.msk.bf16.gmra.mxu1 %vm578_vm7, %v2614_v48 }
 0x2b3   :  { %3486 = vmatmul.mubr.msk.bf16.vlgmr.msra.gmra.mxu0 %vm578_vm7, %v2699_v11 }
 0x2b4   :  { %3489 = vmatprep.mubr.msk.bf16.mxu0 %vm3556_vm3, %v3555_v51 }
 0x2bb   :  { %3490 = vmatmul.mubr.msk.bf16.gmra.mxu0 %vm578_vm7, %v2701_v18 }
 0x2bc   :  { %3493 = vmatprep.mubr.msk.bf16.mxu0 %vm3556_vm3, %v3555_v51 }
 0x2c3   :  { %3494 = vmatmul.mubr.msk.bf16.gmra.mxu0 %vm578_vm7, %v2700_v15 }
 0x313   :  { %v2021_v44 = vpop.f32.mrf.mxu0 }
 0x314   :  { %v2043_v54 = vadd.f32 %v3866_v29, %v2021_v44 }
 0x315   :  { %v3375_v9 = vpop.f32.mrf.mxu0 }
 0x317   :  { %v2024_v21 = vpop.f32.mrf.mxu0 }
 0x318   :  { %v2044_v31 = vadd.f32 %v3866_v29, %v2024_v21 }
 0x319   :  { %v3376_v22 = vpop.f32.mrf.mxu0 }
 0x31a   :  { %v2115_v23 = vpop.f32.mrf.mxu1 }
 0x31b   :  { %v4096_v26 = vadd.f32 %v2115_v23, %v2043_v54  ;;  %v2029_v27 = vpop.f32.mrf.mxu0 }
 0x31c   :  { %v3389_v28 = vpop.f32.mrf.mxu1  ;;  %v2045_v62 = vadd.f32 %v3866_v29, %v2029_v27 }
 0x31d   :  { %v3379_v19 = vpop.f32.mrf.mxu0 }
 0x31e   :  { %v2118_v32 = vpop.f32.mrf.mxu1 }
 0x31f   :  { %v4099_v37 = vadd.f32 %v2118_v32, %v2044_v31  ;;  %v2032_v51 = vpop.f32.mrf.mxu0 }
 0x320   :  { %v3390_v34 = vpop.f32.mrf.mxu1  ;;  %v2046_v40 = vadd.f32 %v3866_v29, %v2032_v51 }
 0x321   :  { %v3380_v41 = vpop.f32.mrf.mxu0 }
 0x322   :  { %v2123_v6 = vpop.f32.mrf.mxu1 }
 0x323   :  { %v4102_v42 = vadd.f32 %v2123_v6, %v2045_v62  ;;  %v2037_v45 = vpop.f32.mrf.mxu0 }
 0x324   :  { %v3393_v47 = vpop.f32.mrf.mxu1  ;;  %v2047_v50 = vadd.f32 %v3866_v29, %v2037_v45 }
 0x325   :  { %v3383_v3 = vpop.f32.mrf.mxu0 }
 0x326   :  { %v2126_v12 = vpop.f32.mrf.mxu1 }
 0x327   :  { %v4105_v25 = vadd.f32 %v2126_v12, %v2046_v40  ;;  %v2040_v33 = vpop.f32.mrf.mxu0 }
 0x328   :  { %v3394_v49 = vpop.f32.mrf.mxu1 }
 0x329   :  { %v3384_v46 = vpop.f32.mrf.mxu0 }
 0x32a   :  { %v2131_v8 = vpop.f32.mrf.mxu1 }
 0x32b   :  { %v4108_v30 = vadd.f32 %v2131_v8, %v2047_v50  ;;  %v2202_v52 = vpop.f32.mrf.mxu0 }
 0x32c   :  { %v3397_v55 = vpop.f32.mrf.mxu1 }
 0x32d   :  { %v3403_v58 = vpop.f32.mrf.mxu0 }
 0x32e   :  { %v2134_v16 = vpop.f32.mrf.mxu1 }
 0x32f   :  { %v4110_v38 = vpop.f32.mrf.mxu0 }
 0x330   :  { %v3398_v56 = vpop.f32.mrf.mxu1 }
 0x331   :  { %v3404_v57 = vpop.f32.mrf.mxu0  ;;  %v2224_v56 = vadd.f32 %v2202_v52, %v4096_v26 }
 0x332   :  { %v2294_v59 = vpop.f32.mrf.mxu1 }
 0x333   :  { %v4112_v53 = vpop.f32.mrf.mxu0 }
 0x334   :  { %v3417_v13 = vpop.f32.mrf.mxu1 }
 0x335   :  { %v3407_v35 = vpop.f32.mrf.mxu0 }
 0x336   :  { %v2297_v60 = vpop.f32.mrf.mxu1  ;;  %v2316_v35 = vadd.f32 %v2294_v59, %v2224_v56 }
 0x337   :  { %v4114_v63 = vpop.f32.mrf.mxu0 }
 0x338   :  { %v3418_v29 = vpop.f32.mrf.mxu1 }
 0x339   :  { %v3408_v20 = vpop.f32.mrf.mxu0 }
 0x33a   :  { %v4116_v43 = vpop.f32.mrf.mxu1 }
 0x33b   :  { %v4118_v17 = vpop.f32.mrf.mxu0 }
 0x33c   :  { %v3421_v39 = vpop.f32.mrf.mxu1 }
 0x33d   :  { %v3411_v0 = vpop.f32.mrf.mxu0  ;;  %v2225_v39 = vadd.f32 %v4110_v38, %v4099_v37  ;;  %v2227_v38 = vadd.f32 %v4114_v63, %v4105_v25 }
 0x33e   :  { %v4120_v1 = vpop.f32.mrf.mxu1 }
 0x33f   :  { %v2221_v61 = vpop.f32.mrf.mxu0 }
 0x340   :  { %v3422_v2 = vpop.f32.mrf.mxu1 }
 0x341   :  { %v3412_v5 = vpop.f32.mrf.mxu0 }
 0x342   :  { %v4122_v4 = vpop.f32.mrf.mxu1  ;;  %v2317_v5 = vadd.f32 %v2297_v60, %v2225_v39 }
 0x343   :  { %v2388_v24 = vpop.f32.mrf.mxu0 }
 0x344   :  { %v3425_v7 = vpop.f32.mrf.mxu1  ;;  %v2410_v0 = vadd.f32 %v2388_v24, %v2316_v35 }
 0x345   :  { %v3431_v48 = vpop.f32.mrf.mxu0 }
 0x346   :  { %v2313_v10 = vpop.f32.mrf.mxu1 }
 0x347   :  { %v2391_v11 = vpop.f32.mrf.mxu0 }
 0x348   :  { %v3426_v14 = vpop.f32.mrf.mxu1 }
 0x349   :  { %v3432_v15 = vpop.f32.mrf.mxu0  ;;  %v2226_v14 = vadd.f32 %v4112_v53, %v4102_v42  ;;  %v2319_v42 = vadd.f32 %v4120_v1, %v2227_v38 }
 0x34a   :  { %v2475_v18 = vpop.f32.mrf.mxu1  ;;  %v2411_v15 = vadd.f32 %v2391_v11, %v2317_v5 }
 0x34b   :  { %v2396_v44 = vpop.f32.mrf.mxu0  ;;  %v2497_v7 = vadd.f32 %v2475_v18, %v2410_v0  ;;  %v2318_v59 = vadd.f32 %v4116_v43, %v2226_v14  ;;  %v2228_v43 = vadd.f32 %v4118_v17, %v4108_v30 }
 0x34c   :  { %v3445_v9 = vpop.f32.mrf.mxu1 }
 0x34d   :  { %v3435_v21 = vpop.f32.mrf.mxu0  ;;  %v2412_v60 = vadd.f32 %v2396_v44, %v2318_v59  ;;  %v2320_v44 = vadd.f32 %v4122_v4, %v2228_v43 }
 0x34e   :  { %v2478_v54 = vpop.f32.mrf.mxu1 }
 0x34f   :  { %v2399_v22 = vpop.f32.mrf.mxu0  ;;  %v2498_v21 = vadd.f32 %v2478_v54, %v2411_v15 }
 0x350   :  { %v3446_v23 = vpop.f32.mrf.mxu1 }
 0x351   :  { %v3436_v27 = vpop.f32.mrf.mxu0 }
 0x352   :  { %v2483_v28 = vpop.f32.mrf.mxu1 }
 0x353   :  { %v4124_v31 = vpop.f32.mrf.mxu0  ;;  %v2499_v53 = vadd.f32 %v2483_v28, %v2412_v60 }
 0x354   :  { %v3449_v19 = vpop.f32.mrf.mxu1  ;;  %v2414_v30 = vadd.f32 %v4124_v31, %v2320_v44 }
 0x355   :  { %v3439_v32 = vpop.f32.mrf.mxu0 }
 0x356   :  { %v2486_v51 = vpop.f32.mrf.mxu1 }
 0x357   :  { %v2407_v34 = vpop.f32.mrf.mxu0 }
 0x358   :  { %v3450_v62 = vpop.f32.mrf.mxu1 }
 0x359   :  { %v3440_v41 = vpop.f32.mrf.mxu0 }
 0x35a   :  { %v4126_v6 = vpop.f32.mrf.mxu1  ;;  %v2413_v41 = vadd.f32 %v2399_v22, %v2319_v42 }
 0x35b   :  { %v2567_v45 = vpop.f32.mrf.mxu0 }
 0x35c   :  { %v3453_v47 = vpop.f32.mrf.mxu1  ;;  %v2589_v26 = vadd.f32 %v2567_v45, %v2497_v7 }
 0x35d   :  { %v3459_v40 = vpop.f32.mrf.mxu0 }
 0x35e   :  { %v2494_v3 = vpop.f32.mrf.mxu1 }
 0x35f   :  { %v2570_v12 = vpop.f32.mrf.mxu0  ;;  %v2500_v3 = vadd.f32 %v2486_v51, %v2413_v41 }
 0x360   :  { %v3454_v33 = vpop.f32.mrf.mxu1  ;;  %v2590_v24 = vadd.f32 %v2570_v12, %v2498_v21 }
 0x361   :  { %v3460_v49 = vpop.f32.mrf.mxu0 }
 0x362   :  { %v2661_v50 = vpop.f32.mrf.mxu1 }
 0x363   :  { %v2575_v46 = vpop.f32.mrf.mxu0  ;;  %v2683_v23 = vadd.f32 %v2661_v50, %v2589_v26  ;;  %v2501_v50 = vadd.f32 %v4126_v6, %v2414_v30 }
 0x364   :  { %v3473_v8 = vpop.f32.mrf.mxu1  ;;  %v2591_v45 = vadd.f32 %v2575_v46, %v2499_v53 }
 0x365   :  { %v3463_v55 = vpop.f32.mrf.mxu0 }
 0x366   :  { %v2664_v58 = vpop.f32.mrf.mxu1 }
 0x367   :  { %v2578_v16 = vpop.f32.mrf.mxu0  ;;  %v2684_v11 = vadd.f32 %v2664_v58, %v2590_v24 }
 0x368   :  { %v3474_v57 = vpop.f32.mrf.mxu1  ;;  %v2592_v17 = vadd.f32 %v2578_v16, %v2500_v3 }
 0x369   :  { %v3464_v13 = vpop.f32.mrf.mxu0 }
 0x36a   :  { %v2669_v29 = vpop.f32.mrf.mxu1 }
 0x36b   :  { %v2583_v20 = vpop.f32.mrf.mxu0  ;;  %v2685_v12 = vadd.f32 %v2669_v29, %v2591_v45 }
 0x36c   :  { %v3477_v61 = vpop.f32.mrf.mxu1  ;;  %v2593_v8 = vadd.f32 %v2583_v20, %v2501_v50  ;;  %v3027_v20 = vld [vmem:[%s4171_s5 + $0x24] sm:$0x7] }
 0x36d   :  { %v3467_v2 = vpop.f32.mrf.mxu0 }
 0x36e   :  { %v2672_v48 = vpop.f32.mrf.mxu1 }
 0x36f   :  { %v2586_v10 = vpop.f32.mrf.mxu0  ;;  %v2686_v46 = vadd.f32 %v2672_v48, %v2592_v17 }
 0x370   :  { %v3478_v52 = vpop.f32.mrf.mxu1 }
 0x371   :  { %v3468_v9 = vpop.f32.mrf.mxu0 }
 0x372   :  { %v2677_v27 = vpop.f32.mrf.mxu1 }
 0x373   :  { %v2748_v37 = vpop.f32.mrf.mxu0  ;;  %v2687_v57 = vadd.f32 %v2677_v27, %v2593_v8 }
 0x374   :  { %v2770_v18 = vadd.f32 %v2748_v37, %v2683_v23  ;;  %v3481_v19 = vpop.f32.mrf.mxu1 }
 0x375   :  { %v3487_v32 = vpop.f32.mrf.mxu0 }
 0x376   :  { %v2775_v34 = vmax.f32 %v2770_v18, 0.0  ;;  %v2680_v62 = vpop.f32.mrf.mxu1 }
 0x377   :  { %v2751_v54 = vpop.f32.mrf.mxu0 }
 0x378   :  { %v3048_v47 = vpack.c.bf16 %v2775_v34, %v2775_v34  ;;  %v2771_v40 = vadd.f32 %v2751_v54, %v2684_v11  ;;  %v3482_v25 = vpop.f32.mrf.mxu1 }
 0x379   :  { %v3488_v63 = vpop.f32.mrf.mxu0 }
 0x37a   :  { %3023 = vst.msk [vmem:[%s4171_s5 + $0x14] sm:$0xf] %vm538_vm4, %v3048_v47  ;;  %v2776_v1 = vmax.f32 %v2771_v40, 0.0 }
 0x37b   :  { %v2756_v28 = vpop.f32.mrf.mxu0 }
 0x37c   :  { %v3049_v22 = vpack.c.bf16 %v2776_v1, %v2776_v1  ;;  %v2772_v33 = vadd.f32 %v2756_v28, %v2685_v12 }
 0x37d   :  { %v3491_v49 = vpop.f32.mrf.mxu0 }
 0x37e   :  { %3024 = vst.msk [vmem:[%s4171_s5 + $0x18] sm:$0xf] %vm538_vm4, %v3049_v22  ;;  %v2777_v4 = vmax.f32 %v2772_v33, 0.0 }
 0x37f   :  { %v2759_v51 = vpop.f32.mrf.mxu0 }
 0x380   :  { %v3050_v55 = vpack.c.bf16 %v2777_v4, %v2777_v4  ;;  %v2773_v58 = vadd.f32 %v2759_v51, %v2686_v46 }
 0x381   :  { %v3492_v56 = vpop.f32.mrf.mxu0 }
 0x382   :  { %3025 = vst.msk [vmem:[%s4171_s5 + $0x1c] sm:$0xf] %vm538_vm4, %v3050_v55  ;;  %v2778_v31 = vmax.f32 %v2773_v58, 0.0 }
 0x383   :  { %v2764_v6 = vpop.f32.mrf.mxu0 }
 0x384   :  { %v3051_v16 = vpack.c.bf16 %v2778_v31, %v2778_v31  ;;  %v2774_v13 = vadd.f32 %v2764_v6, %v2687_v57 }
 0x385   :  { %v3495_v35 = vpop.f32.mrf.mxu0 }
 0x386   :  { %3026 = vst.msk [vmem:[%s4171_s5 + $0x20] sm:$0xf] %vm538_vm4, %v3051_v16  ;;  %v2779_v29 = vmax.f32 %v2774_v13, 0.0 }
 0x387   :  { %v2767_v39 = vpop.f32.mrf.mxu0 }
 0x388   :  { %v3052_v0 = vpack.c.bf16 %v2779_v29, %v2779_v29 }
 0x389   :  { %v3496_v61 = vpop.f32.mrf.mxu0 }
 0x38a   :  { %v2807_v2 = vsel %vm3950_vm11, %v3052_v0, %v3027_v20 }
 0x38b   :  { %3028 = vst [vmem:[%s4171_s5 + $0x24] sm:$0x7] %v2807_v2 }

</bundles_post_ra>
